<compile_context>
chip_gen: v5e
topology: v5e:2x2
jax: 0.10.0
libtpu: 0.0.40
codegen_flags: <defaults>
</compile_context>

<pallas_src>
import math

import jax
import jax.numpy as jnp
from jax.experimental import pallas as pl
from jax.experimental.pallas import tpu as pltpu

# ----------------------------- model sizes (small) -----------------------------
B, S, H = 2, 16, 32          # batch, src sequence length, hidden size
HEADS, DH = 4, 8             # attention heads, head dim (DH == sublane count)
FF = 64                      # feed-forward size
BERT_LAYERS = 2              # synthetic BERT encoder depth
EXT_LAYERS = 2               # args.ext_layers
VOCAB = 64
N_SENTS = 4                  # number of [CLS] positions per example
MAX_POS = 64
EPS_BERT = 1e-12             # BertLayerNorm eps
EPS_EXT = 1e-6               # PreSumm LayerNorm eps
OUT_LANES = 128              # lane-dense output slab width


# ----------------------------- in-kernel building blocks -----------------------------

def _ln(x, g, b, eps):
    """LayerNorm with fused statistics: var = E[x^2] - mu^2 (independent reductions)."""
    mu = jnp.mean(x, axis=-1, keepdims=True)
    ex2 = jnp.mean(x * x, axis=-1, keepdims=True)
    var = jnp.maximum(ex2 - mu * mu, 0.0)
    return (x - mu) * jax.lax.rsqrt(var + eps) * g + b


def _mha(x, wqkvT, bqkvT, wo, bo, key_bias):
    """Multi-head self-attention for ONE batch element.

    x:        (T, H)
    wqkvT:    (3H, H)  fused QKV weight, transposed; Q rows pre-scaled by 1/sqrt(DH)
    bqkvT:    (3H, 1)
    wo:       (H, H)   output projection
    bo:       (1, H)
    key_bias: (1, T)   additive key-padding bias

    QKV is kept transposed (features on sublanes) so each head slice is an
    aligned 8-sublane block — no sub-tile lane slicing.
    """
    # (3H, H) x (T, H)^T -> (3H, T)
    qkvT = jax.lax.dot_general(wqkvT, x, (((1,), (1,)), ((), ())),
                               preferred_element_type=jnp.float32) + bqkvT

    ctxT_parts = []
    for h in range(HEADS):                                   # static unroll
        qT = qkvT[h * DH:(h + 1) * DH, :]                    # (DH, T) sublane-aligned
        kT = qkvT[H + h * DH:H + (h + 1) * DH, :]
        vT = qkvT[2 * H + h * DH:2 * H + (h + 1) * DH, :]
        # scores: q @ k^T with both stored transposed -> contract over DH (axis 0)
        s = jax.lax.dot_general(qT, kT, (((0,), (0,)), ((), ())),
                                preferred_element_type=jnp.float32)      # (Tq, Tk)
        s = s + key_bias
        s = s - jnp.max(s, axis=-1, keepdims=True)           # kept for padded-row safety
        p = jnp.exp(s)
        p = p * pl.reciprocal(jnp.sum(p, axis=-1, keepdims=True), approx=True)
        # ctx^T = v^T @ p^T -> (DH, Tq)
        ctxT_parts.append(jax.lax.dot_general(vT, p, (((1,), (1,)), ((), ())),
                                              preferred_element_type=jnp.float32))

    ctxT = jnp.concatenate(ctxT_parts, axis=0)               # (H, Tq), heads on sublanes
    # single output projection: ctx @ wo == contract ctxT/wo over H (axis 0 of both)
    out = jax.lax.dot_general(ctxT, wo, (((0,), (0,)), ((), ())),
                              preferred_element_type=jnp.float32)        # (Tq, H)
    return out + bo


# ----------------------------- fused kernel (one batch element per grid step) -----------------------------

def _ext_summarizer_kernel(
        # per-batch data
        emb_ref, src_bias_ref, cls_bias_ref, cls_oh_ref, mask_rows_ref, pe_ref,
        # BERT embedding layernorm
        emb_ln_g_ref, emb_ln_b_ref,
        # BERT layers (stacked over layer axis)
        b_wqkvT_ref, b_bqkvT_ref, b_wo_ref, b_bo_ref,
        b_ln1_g_ref, b_ln1_b_ref, b_w1_ref, b_b1_ref, b_w2_ref, b_b2_ref,
        b_ln2_g_ref, b_ln2_b_ref,
        # ext layers (stacked over layer axis)
        e_wqkvT_ref, e_bqkvT_ref, e_wo_ref, e_bo_ref,
        e_ln_g_ref, e_ln_b_ref, e_ffln_g_ref, e_ffln_b_ref,
        e_w1_ref, e_b1_ref, e_w2_ref, e_b2_ref,
        # ext final
        f_ln_g_ref, f_ln_b_ref, score_w_ref, score_b_ref,
        # output
        o_ref):
    src_bias = src_bias_ref[...]                 # (1, S)  BERT key-padding bias
    cls_bias = cls_bias_ref[...]                 # (1, N_SENTS)
    mask_rows = mask_rows_ref[...]               # (N_SENTS, 1)

    # ---------------- BERT encoder ----------------
    x = _ln(emb_ref[...], emb_ln_g_ref[...], emb_ln_b_ref[...], EPS_BERT)   # (S, H)
    for l in range(BERT_LAYERS):                                            # static unroll
        attn = _mha(x, b_wqkvT_ref[l], b_bqkvT_ref[l], b_wo_ref[l], b_bo_ref[l],
                    src_bias)
        x = _ln(x + attn, b_ln1_g_ref[l], b_ln1_b_ref[l], EPS_BERT)
        h1 = jnp.dot(x, b_w1_ref[l], preferred_element_type=jnp.float32) + b_b1_ref[l]
        # TODO(synk): pretrained KoBERT uses exact erf-GELU; tanh approximation here.
        h1 = jax.nn.gelu(h1, approximate=True)
        ff = jnp.dot(h1, b_w2_ref[l], preferred_element_type=jnp.float32) + b_b2_ref[l]
        x = _ln(x + ff, b_ln2_g_ref[l], b_ln2_b_ref[l], EPS_BERT)

    # ---------------- [CLS] gather (one-hot matmul, fine at this size) ----------------
    sents = jnp.dot(cls_oh_ref[...], x, preferred_element_type=jnp.float32)  # (N_SENTS, H)
    sents = sents * mask_rows

    # ---------------- ExtTransformerEncoder ----------------
    y = sents * mask_rows + pe_ref[...]          # PreSumm: mask again, then add PE
    for l in range(EXT_LAYERS):                                              # static unroll
        inp = y if l == 0 else _ln(y, e_ln_g_ref[l], e_ln_b_ref[l], EPS_EXT)
        ctx = _mha(inp, e_wqkvT_ref[l], e_bqkvT_ref[l], e_wo_ref[l], e_bo_ref[l],
                   cls_bias)
        out = ctx + y                            # dropout is a no-op (eval)
        hin = _ln(out, e_ffln_g_ref[l], e_ffln_b_ref[l], EPS_EXT)
        h1 = jax.nn.gelu(
            jnp.dot(hin, e_w1_ref[l], preferred_element_type=jnp.float32) + e_b1_ref[l],
            approximate=True)
        y = jnp.dot(h1, e_w2_ref[l], preferred_element_type=jnp.float32) + e_b2_ref[l] + out

    y = _ln(y, f_ln_g_ref[...], f_ln_b_ref[...], EPS_EXT)
    logits = jnp.sum(y * score_w_ref[...], axis=-1, keepdims=True) + score_b_ref[...]
    sc = jax.nn.sigmoid(logits) * mask_rows                                  # (N_SENTS, 1)
    # lane-dense output slab (unmasked full-width store); wrapper slices column 0
    o_ref[...] = jnp.broadcast_to(sc, (N_SENTS, OUT_LANES))


# ----------------------------- wrapper (glue in XLA, compute in Pallas) -----------------------------

def sinusoidal_pe(n, dim):
    position = jnp.arange(n, dtype=jnp.float32)[:, None]
    div_term = jnp.exp(jnp.arange(0, dim, 2, dtype=jnp.float32)
                       * -(math.log(10000.0) / dim))
    pe = jnp.zeros((n, dim), jnp.float32)
    pe = pe.at[:, 0::2].set(jnp.sin(position * div_term))
    pe = pe.at[:, 1::2].set(jnp.cos(position * div_term))
    return pe


def _fold_qkv(wqkv, bqkv):
    """Transpose fused QKV to (L, 3H, H)/(L, 3H, 1) so heads land on the sublane axis,
    and fold the 1/sqrt(DH) attention scale into the Q rows (static weight transform)."""
    scale = jnp.concatenate([jnp.full((H,), 1.0 / math.sqrt(DH), jnp.float32),
                             jnp.ones((2 * H,), jnp.float32)])[None, :, None]
    return jnp.swapaxes(wqkv, -1, -2) * scale, jnp.swapaxes(bqkv, -1, -2) * scale


def ext_summarizer_forward(params, src, segs, clss, mask_src, mask_cls):
    bp, ep = params['bert'], params['ext']

    # embedding lookup is glue (dynamic int gather); everything else runs in the fused kernel
    emb = (jnp.take(bp['word_emb'], src, axis=0)
           + bp['pos_emb'][None, :S, :]
           + jnp.take(bp['type_emb'], segs, axis=0))                        # (B, S, H)

    src_key_bias = ((1.0 - mask_src) * -10000.0).reshape(B, 1, S)
    cls_key_bias = ((1.0 - mask_cls) * -1e18).reshape(B, 1, N_SENTS)
    cls_onehot = jax.nn.one_hot(clss, S, dtype=jnp.float32)                 # (B, N_SENTS, S)
    mask_rows = mask_cls.reshape(B, N_SENTS, 1)
    pe = sinusoidal_pe(N_SENTS, H)                                          # (N_SENTS, H)

    b_wqkvT, b_bqkvT = _fold_qkv(bp['wqkv'], bp['bqkv'])
    e_wqkvT, e_bqkvT = _fold_qkv(ep['wqkv'], ep['bqkv'])

    VMEM = pltpu.MemorySpace.VMEM

    def per_batch(*tail):
        nd = len(tail)
        return pl.BlockSpec((None,) + tail, lambda b, nd=nd: (b,) + (0,) * nd,
                            memory_space=VMEM)

    def shared(*shape):
        nd = len(shape)
        return pl.BlockSpec(shape, lambda b, nd=nd: (0,) * nd, memory_space=VMEM)

    in_specs = [
        per_batch(S, H),                 # emb
        per_batch(1, S),                 # src key bias
        per_batch(1, N_SENTS),           # cls key bias
        per_batch(N_SENTS, S),           # cls one-hot gather matrix
        per_batch(N_SENTS, 1),           # mask_cls rows
        shared(N_SENTS, H),              # positional encoding (shared)
        shared(1, H), shared(1, H),      # embedding LN
        # BERT layer stacks
        shared(BERT_LAYERS, 3 * H, H), shared(BERT_LAYERS, 3 * H, 1),
        shared(BERT_LAYERS, H, H), shared(BERT_LAYERS, 1, H),
        shared(BERT_LAYERS, 1, H), shared(BERT_LAYERS, 1, H),
        shared(BERT_LAYERS, H, FF), shared(BERT_LAYERS, 1, FF),
        shared(BERT_LAYERS, FF, H), shared(BERT_LAYERS, 1, H),
        shared(BERT_LAYERS, 1, H), shared(BERT_LAYERS, 1, H),
        # ext layer stacks
        shared(EXT_LAYERS, 3 * H, H), shared(EXT_LAYERS, 3 * H, 1),
        shared(EXT_LAYERS, H, H), shared(EXT_LAYERS, 1, H),
        shared(EXT_LAYERS, 1, H), shared(EXT_LAYERS, 1, H),
        shared(EXT_LAYERS, 1, H), shared(EXT_LAYERS, 1, H),
        shared(EXT_LAYERS, H, FF), shared(EXT_LAYERS, 1, FF),
        shared(EXT_LAYERS, FF, H), shared(EXT_LAYERS, 1, H),
        # final LN + scorer
        shared(1, H), shared(1, H), shared(1, H), shared(1, 1),
    ]

    out = pl.pallas_call(
        _ext_summarizer_kernel,
        grid=(B,),
        in_specs=in_specs,
        out_specs=per_batch(N_SENTS, OUT_LANES),
        out_shape=jax.ShapeDtypeStruct((B, N_SENTS, OUT_LANES), jnp.float32),
        compiler_params=pltpu.CompilerParams(
            dimension_semantics=("parallel",),
            vmem_limit_bytes=32 * 1024 * 1024),
    )(emb, src_key_bias, cls_key_bias, cls_onehot, mask_rows, pe,
      bp['emb_ln_g'], bp['emb_ln_b'],
      b_wqkvT, b_bqkvT, bp['wo'], bp['bo'],
      bp['ln1_g'], bp['ln1_b'], bp['w1'], bp['b1'], bp['w2'], bp['b2'],
      bp['ln2_g'], bp['ln2_b'],
      e_wqkvT, e_bqkvT, ep['wo'], ep['bo'],
      ep['ln_g'], ep['ln_b'], ep['ffln_g'], ep['ffln_b'],
      ep['w1'], ep['b1'], ep['w2'], ep['b2'],
      ep['final_ln_g'], ep['final_ln_b'], ep['score_w'], ep['score_b'])

    sent_scores = out[:, :, 0]                                              # (B, N_SENTS)
    return sent_scores, mask_cls


# ----------------------------- pure-JAX reference (numerical check) -----------------------------

def _reference_forward(params, src, segs, clss, mask_src, mask_cls):
    bp, ep = params['bert'], params['ext']

    def ln(v, g, b, eps):
        mu = v.mean(-1, keepdims=True)
        var = ((v - mu) ** 2).mean(-1, keepdims=True)
        return (v - mu) / jnp.sqrt(var + eps) * g + b

    def mha(v, wqkv, bqkv, wo, bo, key_mask, neg):
        qkv = v @ wqkv + bqkv
        q, k, vv = qkv[..., :H], qkv[..., H:2 * H], qkv[..., 2 * H:]
        t = v.shape[1]
        q = q.reshape(B, t, HEADS, DH).transpose(0, 2, 1, 3) / math.sqrt(DH)
        k = k.reshape(B, t, HEADS, DH).transpose(0, 2, 1, 3)
        vv = vv.reshape(B, t, HEADS, DH).transpose(0, 2, 1, 3)
        s = jnp.einsum('bhqd,bhkd->bhqk', q, k) + (1.0 - key_mask)[:, None, None, :] * neg
        p = jax.nn.softmax(s, axis=-1)
        ctx = jnp.einsum('bhqk,bhkd->bhqd', p, vv).transpose(0, 2, 1, 3).reshape(B, t, H)
        return ctx @ wo + bo

    x = (jnp.take(bp['word_emb'], src, axis=0) + bp['pos_emb'][None, :S, :]
         + jnp.take(bp['type_emb'], segs, axis=0))
    x = ln(x, bp['emb_ln_g'], bp['emb_ln_b'], EPS_BERT)
    for l in range(BERT_LAYERS):
        a = mha(x, bp['wqkv'][l], bp['bqkv'][l], bp['wo'][l], bp['bo'][l], mask_src, -10000.0)
        x = ln(x + a, bp['ln1_g'][l], bp['ln1_b'][l], EPS_BERT)
        f = jax.nn.gelu(x @ bp['w1'][l] + bp['b1'][l], approximate=True) @ bp['w2'][l] + bp['b2'][l]
        x = ln(x + f, bp['ln2_g'][l], bp['ln2_b'][l], EPS_BERT)

    sents = x[jnp.arange(B)[:, None], clss] * mask_cls[:, :, None]
    y = sents * mask_cls[:, :, None] + sinusoidal_pe(N_SENTS, H)[None]
    for l in range(EXT_LAYERS):
        inp = y if l == 0 else ln(y, ep['ln_g'][l], ep['ln_b'][l], EPS_EXT)
        ctx = mha(inp, ep['wqkv'][l], ep['bqkv'][l], ep['wo'][l], ep['bo'][l], mask_cls, -1e18)
        out = ctx + y
        h1 = jax.nn.gelu(ln(out, ep['ffln_g'][l], ep['ffln_b'][l], EPS_EXT) @ ep['w1'][l]
                         + ep['b1'][l], approximate=True)
        y = h1 @ ep['w2'][l] + ep['b2'][l] + out
    y = ln(y, ep['final_ln_g'], ep['final_ln_b'], EPS_EXT)
    logits = (y * ep['score_w']).sum(-1) + ep['score_b'][0, 0]
    return jax.nn.sigmoid(logits) * mask_cls


# ----------------------------- deterministic parameter init -----------------------------

def init_params(key):
    kiter = iter(jax.random.split(key, 64))

    def nrm(shape, std=0.02):
        return std * jax.random.normal(next(kiter), shape, jnp.float32)

    def ones(shape):
        return jnp.ones(shape, jnp.float32)

    def zeros(shape):
        return jnp.zeros(shape, jnp.float32)

    def enc_stack(n):
        return dict(
            wqkv=nrm((n, H, 3 * H)), bqkv=zeros((n, 1, 3 * H)),
            wo=nrm((n, H, H)), bo=zeros((n, 1, H)),
            w1=nrm((n, H, FF)), b1=zeros((n, 1, FF)),
            w2=nrm((n, FF, H)), b2=zeros((n, 1, H)))

    bert = dict(
        word_emb=nrm((VOCAB, H)), pos_emb=nrm((MAX_POS, H)), type_emb=nrm((2, H)),
        emb_ln_g=ones((1, H)), emb_ln_b=zeros((1, H)),
        ln1_g=ones((BERT_LAYERS, 1, H)), ln1_b=zeros((BERT_LAYERS, 1, H)),
        ln2_g=ones((BERT_LAYERS, 1, H)), ln2_b=zeros((BERT_LAYERS, 1, H)),
        **enc_stack(BERT_LAYERS))

    ext = dict(
        ln_g=ones((EXT_LAYERS, 1, H)), ln_b=zeros((EXT_LAYERS, 1, H)),
        ffln_g=ones((EXT_LAYERS, 1, H)), ffln_b=zeros((EXT_LAYERS, 1, H)),
        final_ln_g=ones((1, H)), final_ln_b=zeros((1, H)),
        score_w=nrm((1, H)), score_b=zeros((1, 1)),
        **enc_stack(EXT_LAYERS))

    return dict(bert=bert, ext=ext)


# ----------------------------- main -----------------------------

if __name__ == "__main__":
    key = jax.random.PRNGKey(0)
    kp, k1 = jax.random.split(key, 2)
    params = init_params(kp)

    src = jax.random.randint(k1, (B, S), 0, VOCAB, dtype=jnp.int32)
    segs = jnp.concatenate([jnp.zeros((B, S // 2), jnp.int32),
                            jnp.ones((B, S // 2), jnp.int32)], axis=1)
    clss = jnp.array([[0, 4, 8, 12], [0, 5, 10, 15]], jnp.int32)
    mask_src = jnp.ones((B, S), jnp.float32).at[1, 14:].set(0.0)
    mask_cls = jnp.array([[1.0, 1.0, 1.0, 1.0], [1.0, 1.0, 1.0, 0.0]], jnp.float32)

    fwd = jax.jit(ext_summarizer_forward)
    sent_scores, out_mask = fwd(params, src, segs, clss, mask_src, mask_cls)
    jax.block_until_ready(sent_scores)

    assert sent_scores.shape == (B, N_SENTS)
    assert out_mask.shape == (B, N_SENTS)
    assert bool(jnp.all(jnp.isfinite(sent_scores)))

    ref_scores = jax.jit(_reference_forward)(params, src, segs, clss, mask_src, mask_cls)
    err = float(jnp.max(jnp.abs(sent_scores - ref_scores)))
    assert err < 5e-2, f"kernel vs reference mismatch: max abs err = {err}"

    print("KERNEL_OK")
</pallas_src>

<mosaic_0001>
module attributes {stable_mosaic.version = 11 : i64} {
  func.func @_ext_summarizer_kernel(%arg0: i32, %arg1: memref<1x16x32xf32, #tpu.memory_space<vmem>>, %arg2: memref<1x1x16xf32, #tpu.memory_space<vmem>>, %arg3: memref<1x1x4xf32, #tpu.memory_space<vmem>>, %arg4: memref<1x4x16xf32, #tpu.memory_space<vmem>>, %arg5: memref<1x4x1xf32, #tpu.memory_space<vmem>>, %arg6: memref<4x32xf32, #tpu.memory_space<vmem>>, %arg7: memref<1x32xf32, #tpu.memory_space<vmem>>, %arg8: memref<1x32xf32, #tpu.memory_space<vmem>>, %arg9: memref<2x96x32xf32, #tpu.memory_space<vmem>>, %arg10: memref<2x96x1xf32, #tpu.memory_space<vmem>>, %arg11: memref<2x32x32xf32, #tpu.memory_space<vmem>>, %arg12: memref<2x1x32xf32, #tpu.memory_space<vmem>>, %arg13: memref<2x1x32xf32, #tpu.memory_space<vmem>>, %arg14: memref<2x1x32xf32, #tpu.memory_space<vmem>>, %arg15: memref<2x32x64xf32, #tpu.memory_space<vmem>>, %arg16: memref<2x1x64xf32, #tpu.memory_space<vmem>>, %arg17: memref<2x64x32xf32, #tpu.memory_space<vmem>>, %arg18: memref<2x1x32xf32, #tpu.memory_space<vmem>>, %arg19: memref<2x1x32xf32, #tpu.memory_space<vmem>>, %arg20: memref<2x1x32xf32, #tpu.memory_space<vmem>>, %arg21: memref<2x96x32xf32, #tpu.memory_space<vmem>>, %arg22: memref<2x96x1xf32, #tpu.memory_space<vmem>>, %arg23: memref<2x32x32xf32, #tpu.memory_space<vmem>>, %arg24: memref<2x1x32xf32, #tpu.memory_space<vmem>>, %arg25: memref<2x1x32xf32, #tpu.memory_space<vmem>>, %arg26: memref<2x1x32xf32, #tpu.memory_space<vmem>>, %arg27: memref<2x1x32xf32, #tpu.memory_space<vmem>>, %arg28: memref<2x1x32xf32, #tpu.memory_space<vmem>>, %arg29: memref<2x32x64xf32, #tpu.memory_space<vmem>>, %arg30: memref<2x1x64xf32, #tpu.memory_space<vmem>>, %arg31: memref<2x64x32xf32, #tpu.memory_space<vmem>>, %arg32: memref<2x1x32xf32, #tpu.memory_space<vmem>>, %arg33: memref<1x32xf32, #tpu.memory_space<vmem>>, %arg34: memref<1x32xf32, #tpu.memory_space<vmem>>, %arg35: memref<1x32xf32, #tpu.memory_space<vmem>>, %arg36: memref<1x1xf32, #tpu.memory_space<vmem>>, %arg37: memref<1x4x128xf32, #tpu.memory_space<vmem>>) attributes {dimension_semantics = [#tpu.dimension_semantics<parallel>], iteration_bounds = array<i64: 2>, scalar_prefetch = 0 : i64, scratch_operands = 0 : i64, tpu.core_type = #tpu.core_type<tc>, window_params = [{transform_indices = @transform_0, window_bounds = array<i64: 1, 16, 32>}, {transform_indices = @transform_1, window_bounds = array<i64: 1, 1, 16>}, {transform_indices = @transform_2, window_bounds = array<i64: 1, 1, 4>}, {transform_indices = @transform_3, window_bounds = array<i64: 1, 4, 16>}, {transform_indices = @transform_4, window_bounds = array<i64: 1, 4, 1>}, {pipeline_mode = #tpu.pipeline_mode<synchronous>, transform_indices = @transform_5, window_bounds = array<i64: 4, 32>}, {pipeline_mode = #tpu.pipeline_mode<synchronous>, transform_indices = @transform_6, window_bounds = array<i64: 1, 32>}, {pipeline_mode = #tpu.pipeline_mode<synchronous>, transform_indices = @transform_7, window_bounds = array<i64: 1, 32>}, {pipeline_mode = #tpu.pipeline_mode<synchronous>, transform_indices = @transform_8, window_bounds = array<i64: 2, 96, 32>}, {pipeline_mode = #tpu.pipeline_mode<synchronous>, transform_indices = @transform_9, window_bounds = array<i64: 2, 96, 1>}, {pipeline_mode = #tpu.pipeline_mode<synchronous>, transform_indices = @transform_10, window_bounds = array<i64: 2, 32, 32>}, {pipeline_mode = #tpu.pipeline_mode<synchronous>, transform_indices = @transform_11, window_bounds = array<i64: 2, 1, 32>}, {pipeline_mode = #tpu.pipeline_mode<synchronous>, transform_indices = @transform_12, window_bounds = array<i64: 2, 1, 32>}, {pipeline_mode = #tpu.pipeline_mode<synchronous>, transform_indices = @transform_13, window_bounds = array<i64: 2, 1, 32>}, {pipeline_mode = #tpu.pipeline_mode<synchronous>, transform_indices = @transform_14, window_bounds = array<i64: 2, 32, 64>}, {pipeline_mode = #tpu.pipeline_mode<synchronous>, transform_indices = @transform_15, window_bounds = array<i64: 2, 1, 64>}, {pipeline_mode = #tpu.pipeline_mode<synchronous>, transform_indices = @transform_16, window_bounds = array<i64: 2, 64, 32>}, {pipeline_mode = #tpu.pipeline_mode<synchronous>, transform_indices = @transform_17, window_bounds = array<i64: 2, 1, 32>}, {pipeline_mode = #tpu.pipeline_mode<synchronous>, transform_indices = @transform_18, window_bounds = array<i64: 2, 1, 32>}, {pipeline_mode = #tpu.pipeline_mode<synchronous>, transform_indices = @transform_19, window_bounds = array<i64: 2, 1, 32>}, {pipeline_mode = #tpu.pipeline_mode<synchronous>, transform_indices = @transform_20, window_bounds = array<i64: 2, 96, 32>}, {pipeline_mode = #tpu.pipeline_mode<synchronous>, transform_indices = @transform_21, window_bounds = array<i64: 2, 96, 1>}, {pipeline_mode = #tpu.pipeline_mode<synchronous>, transform_indices = @transform_22, window_bounds = array<i64: 2, 32, 32>}, {pipeline_mode = #tpu.pipeline_mode<synchronous>, transform_indices = @transform_23, window_bounds = array<i64: 2, 1, 32>}, {pipeline_mode = #tpu.pipeline_mode<synchronous>, transform_indices = @transform_24, window_bounds = array<i64: 2, 1, 32>}, {pipeline_mode = #tpu.pipeline_mode<synchronous>, transform_indices = @transform_25, window_bounds = array<i64: 2, 1, 32>}, {pipeline_mode = #tpu.pipeline_mode<synchronous>, transform_indices = @transform_26, window_bounds = array<i64: 2, 1, 32>}, {pipeline_mode = #tpu.pipeline_mode<synchronous>, transform_indices = @transform_27, window_bounds = array<i64: 2, 1, 32>}, {pipeline_mode = #tpu.pipeline_mode<synchronous>, transform_indices = @transform_28, window_bounds = array<i64: 2, 32, 64>}, {pipeline_mode = #tpu.pipeline_mode<synchronous>, transform_indices = @transform_29, window_bounds = array<i64: 2, 1, 64>}, {pipeline_mode = #tpu.pipeline_mode<synchronous>, transform_indices = @transform_30, window_bounds = array<i64: 2, 64, 32>}, {pipeline_mode = #tpu.pipeline_mode<synchronous>, transform_indices = @transform_31, window_bounds = array<i64: 2, 1, 32>}, {pipeline_mode = #tpu.pipeline_mode<synchronous>, transform_indices = @transform_32, window_bounds = array<i64: 1, 32>}, {pipeline_mode = #tpu.pipeline_mode<synchronous>, transform_indices = @transform_33, window_bounds = array<i64: 1, 32>}, {pipeline_mode = #tpu.pipeline_mode<synchronous>, transform_indices = @transform_34, window_bounds = array<i64: 1, 32>}, {pipeline_mode = #tpu.pipeline_mode<synchronous>, transform_indices = @transform_35, window_bounds = array<i64: 1, 1>}, {transform_indices = @transform_36, window_bounds = array<i64: 1, 4, 128>}]} {
    %c0 = arith.constant 0 : index
    %c0_0 = arith.constant 0 : index
    %c0_1 = arith.constant 0 : index
    %0 = vector.load %arg2[%c0, %c0_0, %c0_1] : memref<1x1x16xf32, #tpu.memory_space<vmem>>, vector<1x1x16xf32>
    %1 = vector.shape_cast %0 : vector<1x1x16xf32> to vector<1x16xf32>
    %c0_2 = arith.constant 0 : index
    %c0_3 = arith.constant 0 : index
    %c0_4 = arith.constant 0 : index
    %2 = vector.load %arg3[%c0_2, %c0_3, %c0_4] : memref<1x1x4xf32, #tpu.memory_space<vmem>>, vector<1x1x4xf32>
    %3 = vector.shape_cast %2 : vector<1x1x4xf32> to vector<1x4xf32>
    %c0_5 = arith.constant 0 : index
    %c0_6 = arith.constant 0 : index
    %c0_7 = arith.constant 0 : index
    %4 = vector.load %arg5[%c0_5, %c0_6, %c0_7] : memref<1x4x1xf32, #tpu.memory_space<vmem>>, vector<1x4x1xf32>
    %5 = vector.shape_cast %4 : vector<1x4x1xf32> to vector<4x1xf32>
    %c0_8 = arith.constant 0 : index
    %c0_9 = arith.constant 0 : index
    %c0_10 = arith.constant 0 : index
    %6 = vector.load %arg1[%c0_8, %c0_9, %c0_10] : memref<1x16x32xf32, #tpu.memory_space<vmem>>, vector<1x16x32xf32>
    %7 = vector.shape_cast %6 : vector<1x16x32xf32> to vector<16x32xf32>
    %c0_11 = arith.constant 0 : index
    %c0_12 = arith.constant 0 : index
    %8 = vector.load %arg7[%c0_11, %c0_12] : memref<1x32xf32, #tpu.memory_space<vmem>>, vector<1x32xf32>
    %c0_13 = arith.constant 0 : index
    %c0_14 = arith.constant 0 : index
    %9 = vector.load %arg8[%c0_13, %c0_14] : memref<1x32xf32, #tpu.memory_space<vmem>>, vector<1x32xf32>
    %cst = arith.constant dense<0.000000e+00> : vector<16xf32>
    %10 = vector.multi_reduction <add>, %7, %cst [1] : vector<16x32xf32> to vector<16xf32>
    %11 = vector.shape_cast %10 : vector<16xf32> to vector<16x1xf32>
    %cst_15 = arith.constant 3.200000e+01 : f32
    %12 = vector.broadcast %cst_15 : f32 to vector<16x1xf32>
    %13 = arith.divf %11, %12 : vector<16x1xf32>
    %14 = arith.mulf %7, %7 : vector<16x32xf32>
    %cst_16 = arith.constant dense<0.000000e+00> : vector<16xf32>
    %15 = vector.multi_reduction <add>, %14, %cst_16 [1] : vector<16x32xf32> to vector<16xf32>
    %16 = vector.shape_cast %15 : vector<16xf32> to vector<16x1xf32>
    %cst_17 = arith.constant 3.200000e+01 : f32
    %17 = vector.broadcast %cst_17 : f32 to vector<16x1xf32>
    %18 = arith.divf %16, %17 : vector<16x1xf32>
    %19 = arith.mulf %13, %13 : vector<16x1xf32>
    %20 = arith.subf %18, %19 : vector<16x1xf32>
    %cst_18 = arith.constant 0.000000e+00 : f32
    %21 = vector.broadcast %cst_18 : f32 to vector<16x1xf32>
    %22 = arith.maximumf %20, %21 : vector<16x1xf32>
    %23 = vector.broadcast %13 : vector<16x1xf32> to vector<16x32xf32>
    %24 = arith.subf %7, %23 : vector<16x32xf32>
    %cst_19 = arith.constant 9.99999996E-13 : f32
    %25 = vector.broadcast %cst_19 : f32 to vector<16x1xf32>
    %26 = arith.addf %22, %25 : vector<16x1xf32>
    %27 = math.rsqrt %26 : vector<16x1xf32>
    %28 = vector.broadcast %27 : vector<16x1xf32> to vector<16x32xf32>
    %29 = arith.mulf %24, %28 : vector<16x32xf32>
    %30 = vector.broadcast %8 : vector<1x32xf32> to vector<16x32xf32>
    %31 = arith.mulf %29, %30 : vector<16x32xf32>
    %32 = vector.broadcast %9 : vector<1x32xf32> to vector<16x32xf32>
    %33 = arith.addf %31, %32 : vector<16x32xf32>
    %c0_20 = arith.constant 0 : index
    %c0_21 = arith.constant 0 : index
    %c0_22 = arith.constant 0 : index
    %34 = vector.load %arg9[%c0_20, %c0_21, %c0_22] : memref<2x96x32xf32, #tpu.memory_space<vmem>>, vector<1x96x32xf32>
    %35 = vector.shape_cast %34 : vector<1x96x32xf32> to vector<96x32xf32>
    %c0_23 = arith.constant 0 : index
    %c0_24 = arith.constant 0 : index
    %c0_25 = arith.constant 0 : index
    %36 = vector.load %arg10[%c0_23, %c0_24, %c0_25] : memref<2x96x1xf32, #tpu.memory_space<vmem>>, vector<1x96x1xf32>
    %37 = vector.shape_cast %36 : vector<1x96x1xf32> to vector<96x1xf32>
    %c0_26 = arith.constant 0 : index
    %c0_27 = arith.constant 0 : index
    %c0_28 = arith.constant 0 : index
    %38 = vector.load %arg11[%c0_26, %c0_27, %c0_28] : memref<2x32x32xf32, #tpu.memory_space<vmem>>, vector<1x32x32xf32>
    %39 = vector.shape_cast %38 : vector<1x32x32xf32> to vector<32x32xf32>
    %c0_29 = arith.constant 0 : index
    %c0_30 = arith.constant 0 : index
    %c0_31 = arith.constant 0 : index
    %40 = vector.load %arg12[%c0_29, %c0_30, %c0_31] : memref<2x1x32xf32, #tpu.memory_space<vmem>>, vector<1x1x32xf32>
    %41 = vector.shape_cast %40 : vector<1x1x32xf32> to vector<1x32xf32>
    %cst_32 = arith.constant dense<0.000000e+00> : vector<96x16xf32>
    %42 = tpu.matmul %35, %33, %cst_32 {dimension_numbers = #tpu.dot_dimension_numbers<[1], [1], [0], [0], [0, 0, 1, 0], [], []>} : vector<96x32xf32>, vector<16x32xf32>, vector<96x16xf32> -> vector<96x16xf32>
    %43 = vector.broadcast %37 : vector<96x1xf32> to vector<96x16xf32>
    %44 = arith.addf %42, %43 : vector<96x16xf32>
    %45 = vector.extract_strided_slice %44 {offsets = [0, 0], sizes = [8, 16], strides = [1, 1]} : vector<96x16xf32> to vector<8x16xf32>
    %46 = vector.extract_strided_slice %44 {offsets = [32, 0], sizes = [8, 16], strides = [1, 1]} : vector<96x16xf32> to vector<8x16xf32>
    %47 = vector.extract_strided_slice %44 {offsets = [64, 0], sizes = [8, 16], strides = [1, 1]} : vector<96x16xf32> to vector<8x16xf32>
    %cst_33 = arith.constant dense<0.000000e+00> : vector<16x16xf32>
    %48 = tpu.matmul %45, %46, %cst_33 {dimension_numbers = #tpu.dot_dimension_numbers<[0], [0], [1], [1], [0, 1, 1, 1], [], []>} : vector<8x16xf32>, vector<8x16xf32>, vector<16x16xf32> -> vector<16x16xf32>
    %49 = vector.broadcast %1 : vector<1x16xf32> to vector<16x16xf32>
    %50 = arith.addf %48, %49 : vector<16x16xf32>
    %cst_34 = arith.constant dense<0xFF800000> : vector<16xf32>
    %51 = vector.multi_reduction <maximumf>, %50, %cst_34 [1] : vector<16x16xf32> to vector<16xf32>
    %52 = vector.shape_cast %51 : vector<16xf32> to vector<16x1xf32>
    %53 = vector.broadcast %52 : vector<16x1xf32> to vector<16x16xf32>
    %54 = arith.subf %50, %53 : vector<16x16xf32>
    %55 = math.exp %54 : vector<16x16xf32>
    %cst_35 = arith.constant dense<0.000000e+00> : vector<16xf32>
    %56 = vector.multi_reduction <add>, %55, %cst_35 [1] : vector<16x16xf32> to vector<16xf32>
    %57 = vector.shape_cast %56 : vector<16xf32> to vector<16x1xf32>
    %58 = tpu.reciprocal %57 {approx = true} : vector<16x1xf32> -> vector<16x1xf32>
    %59 = vector.broadcast %58 : vector<16x1xf32> to vector<16x16xf32>
    %60 = arith.mulf %55, %59 : vector<16x16xf32>
    %cst_36 = arith.constant dense<0.000000e+00> : vector<8x16xf32>
    %61 = tpu.matmul %47, %60, %cst_36 {dimension_numbers = #tpu.dot_dimension_numbers<[1], [1], [0], [0], [0, 0, 1, 0], [], []>} : vector<8x16xf32>, vector<16x16xf32>, vector<8x16xf32> -> vector<8x16xf32>
    %62 = vector.extract_strided_slice %44 {offsets = [8, 0], sizes = [8, 16], strides = [1, 1]} : vector<96x16xf32> to vector<8x16xf32>
    %63 = vector.extract_strided_slice %44 {offsets = [40, 0], sizes = [8, 16], strides = [1, 1]} : vector<96x16xf32> to vector<8x16xf32>
    %64 = vector.extract_strided_slice %44 {offsets = [72, 0], sizes = [8, 16], strides = [1, 1]} : vector<96x16xf32> to vector<8x16xf32>
    %cst_37 = arith.constant dense<0.000000e+00> : vector<16x16xf32>
    %65 = tpu.matmul %62, %63, %cst_37 {dimension_numbers = #tpu.dot_dimension_numbers<[0], [0], [1], [1], [0, 1, 1, 1], [], []>} : vector<8x16xf32>, vector<8x16xf32>, vector<16x16xf32> -> vector<16x16xf32>
    %66 = vector.broadcast %1 : vector<1x16xf32> to vector<16x16xf32>
    %67 = arith.addf %65, %66 : vector<16x16xf32>
    %cst_38 = arith.constant dense<0xFF800000> : vector<16xf32>
    %68 = vector.multi_reduction <maximumf>, %67, %cst_38 [1] : vector<16x16xf32> to vector<16xf32>
    %69 = vector.shape_cast %68 : vector<16xf32> to vector<16x1xf32>
    %70 = vector.broadcast %69 : vector<16x1xf32> to vector<16x16xf32>
    %71 = arith.subf %67, %70 : vector<16x16xf32>
    %72 = math.exp %71 : vector<16x16xf32>
    %cst_39 = arith.constant dense<0.000000e+00> : vector<16xf32>
    %73 = vector.multi_reduction <add>, %72, %cst_39 [1] : vector<16x16xf32> to vector<16xf32>
    %74 = vector.shape_cast %73 : vector<16xf32> to vector<16x1xf32>
    %75 = tpu.reciprocal %74 {approx = true} : vector<16x1xf32> -> vector<16x1xf32>
    %76 = vector.broadcast %75 : vector<16x1xf32> to vector<16x16xf32>
    %77 = arith.mulf %72, %76 : vector<16x16xf32>
    %cst_40 = arith.constant dense<0.000000e+00> : vector<8x16xf32>
    %78 = tpu.matmul %64, %77, %cst_40 {dimension_numbers = #tpu.dot_dimension_numbers<[1], [1], [0], [0], [0, 0, 1, 0], [], []>} : vector<8x16xf32>, vector<16x16xf32>, vector<8x16xf32> -> vector<8x16xf32>
    %79 = vector.extract_strided_slice %44 {offsets = [16, 0], sizes = [8, 16], strides = [1, 1]} : vector<96x16xf32> to vector<8x16xf32>
    %80 = vector.extract_strided_slice %44 {offsets = [48, 0], sizes = [8, 16], strides = [1, 1]} : vector<96x16xf32> to vector<8x16xf32>
    %81 = vector.extract_strided_slice %44 {offsets = [80, 0], sizes = [8, 16], strides = [1, 1]} : vector<96x16xf32> to vector<8x16xf32>
    %cst_41 = arith.constant dense<0.000000e+00> : vector<16x16xf32>
    %82 = tpu.matmul %79, %80, %cst_41 {dimension_numbers = #tpu.dot_dimension_numbers<[0], [0], [1], [1], [0, 1, 1, 1], [], []>} : vector<8x16xf32>, vector<8x16xf32>, vector<16x16xf32> -> vector<16x16xf32>
    %83 = vector.broadcast %1 : vector<1x16xf32> to vector<16x16xf32>
    %84 = arith.addf %82, %83 : vector<16x16xf32>
    %cst_42 = arith.constant dense<0xFF800000> : vector<16xf32>
    %85 = vector.multi_reduction <maximumf>, %84, %cst_42 [1] : vector<16x16xf32> to vector<16xf32>
    %86 = vector.shape_cast %85 : vector<16xf32> to vector<16x1xf32>
    %87 = vector.broadcast %86 : vector<16x1xf32> to vector<16x16xf32>
    %88 = arith.subf %84, %87 : vector<16x16xf32>
    %89 = math.exp %88 : vector<16x16xf32>
    %cst_43 = arith.constant dense<0.000000e+00> : vector<16xf32>
    %90 = vector.multi_reduction <add>, %89, %cst_43 [1] : vector<16x16xf32> to vector<16xf32>
    %91 = vector.shape_cast %90 : vector<16xf32> to vector<16x1xf32>
    %92 = tpu.reciprocal %91 {approx = true} : vector<16x1xf32> -> vector<16x1xf32>
    %93 = vector.broadcast %92 : vector<16x1xf32> to vector<16x16xf32>
    %94 = arith.mulf %89, %93 : vector<16x16xf32>
    %cst_44 = arith.constant dense<0.000000e+00> : vector<8x16xf32>
    %95 = tpu.matmul %81, %94, %cst_44 {dimension_numbers = #tpu.dot_dimension_numbers<[1], [1], [0], [0], [0, 0, 1, 0], [], []>} : vector<8x16xf32>, vector<16x16xf32>, vector<8x16xf32> -> vector<8x16xf32>
    %96 = vector.extract_strided_slice %44 {offsets = [24, 0], sizes = [8, 16], strides = [1, 1]} : vector<96x16xf32> to vector<8x16xf32>
    %97 = vector.extract_strided_slice %44 {offsets = [56, 0], sizes = [8, 16], strides = [1, 1]} : vector<96x16xf32> to vector<8x16xf32>
    %98 = vector.extract_strided_slice %44 {offsets = [88, 0], sizes = [8, 16], strides = [1, 1]} : vector<96x16xf32> to vector<8x16xf32>
    %cst_45 = arith.constant dense<0.000000e+00> : vector<16x16xf32>
    %99 = tpu.matmul %96, %97, %cst_45 {dimension_numbers = #tpu.dot_dimension_numbers<[0], [0], [1], [1], [0, 1, 1, 1], [], []>} : vector<8x16xf32>, vector<8x16xf32>, vector<16x16xf32> -> vector<16x16xf32>
    %100 = vector.broadcast %1 : vector<1x16xf32> to vector<16x16xf32>
    %101 = arith.addf %99, %100 : vector<16x16xf32>
    %cst_46 = arith.constant dense<0xFF800000> : vector<16xf32>
    %102 = vector.multi_reduction <maximumf>, %101, %cst_46 [1] : vector<16x16xf32> to vector<16xf32>
    %103 = vector.shape_cast %102 : vector<16xf32> to vector<16x1xf32>
    %104 = vector.broadcast %103 : vector<16x1xf32> to vector<16x16xf32>
    %105 = arith.subf %101, %104 : vector<16x16xf32>
    %106 = math.exp %105 : vector<16x16xf32>
    %cst_47 = arith.constant dense<0.000000e+00> : vector<16xf32>
    %107 = vector.multi_reduction <add>, %106, %cst_47 [1] : vector<16x16xf32> to vector<16xf32>
    %108 = vector.shape_cast %107 : vector<16xf32> to vector<16x1xf32>
    %109 = tpu.reciprocal %108 {approx = true} : vector<16x1xf32> -> vector<16x1xf32>
    %110 = vector.broadcast %109 : vector<16x1xf32> to vector<16x16xf32>
    %111 = arith.mulf %106, %110 : vector<16x16xf32>
    %cst_48 = arith.constant dense<0.000000e+00> : vector<8x16xf32>
    %112 = tpu.matmul %98, %111, %cst_48 {dimension_numbers = #tpu.dot_dimension_numbers<[1], [1], [0], [0], [0, 0, 1, 0], [], []>} : vector<8x16xf32>, vector<16x16xf32>, vector<8x16xf32> -> vector<8x16xf32>
    %113 = tpu.concatenate %61, %78, %95, %112 in 0 : vector<8x16xf32>, vector<8x16xf32>, vector<8x16xf32>, vector<8x16xf32> -> vector<32x16xf32>
    %cst_49 = arith.constant dense<0.000000e+00> : vector<16x32xf32>
    %114 = tpu.matmul %113, %39, %cst_49 {dimension_numbers = #tpu.dot_dimension_numbers<[0], [0], [1], [1], [0, 1, 1, 1], [], []>} : vector<32x16xf32>, vector<32x32xf32>, vector<16x32xf32> -> vector<16x32xf32>
    %115 = vector.broadcast %41 : vector<1x32xf32> to vector<16x32xf32>
    %116 = arith.addf %114, %115 : vector<16x32xf32>
    %117 = arith.addf %33, %116 : vector<16x32xf32>
    %c0_50 = arith.constant 0 : index
    %c0_51 = arith.constant 0 : index
    %c0_52 = arith.constant 0 : index
    %118 = vector.load %arg13[%c0_50, %c0_51, %c0_52] : memref<2x1x32xf32, #tpu.memory_space<vmem>>, vector<1x1x32xf32>
    %119 = vector.shape_cast %118 : vector<1x1x32xf32> to vector<1x32xf32>
    %c0_53 = arith.constant 0 : index
    %c0_54 = arith.constant 0 : index
    %c0_55 = arith.constant 0 : index
    %120 = vector.load %arg14[%c0_53, %c0_54, %c0_55] : memref<2x1x32xf32, #tpu.memory_space<vmem>>, vector<1x1x32xf32>
    %121 = vector.shape_cast %120 : vector<1x1x32xf32> to vector<1x32xf32>
    %cst_56 = arith.constant dense<0.000000e+00> : vector<16xf32>
    %122 = vector.multi_reduction <add>, %117, %cst_56 [1] : vector<16x32xf32> to vector<16xf32>
    %123 = vector.shape_cast %122 : vector<16xf32> to vector<16x1xf32>
    %cst_57 = arith.constant 3.200000e+01 : f32
    %124 = vector.broadcast %cst_57 : f32 to vector<16x1xf32>
    %125 = arith.divf %123, %124 : vector<16x1xf32>
    %126 = arith.mulf %117, %117 : vector<16x32xf32>
    %cst_58 = arith.constant dense<0.000000e+00> : vector<16xf32>
    %127 = vector.multi_reduction <add>, %126, %cst_58 [1] : vector<16x32xf32> to vector<16xf32>
    %128 = vector.shape_cast %127 : vector<16xf32> to vector<16x1xf32>
    %cst_59 = arith.constant 3.200000e+01 : f32
    %129 = vector.broadcast %cst_59 : f32 to vector<16x1xf32>
    %130 = arith.divf %128, %129 : vector<16x1xf32>
    %131 = arith.mulf %125, %125 : vector<16x1xf32>
    %132 = arith.subf %130, %131 : vector<16x1xf32>
    %cst_60 = arith.constant 0.000000e+00 : f32
    %133 = vector.broadcast %cst_60 : f32 to vector<16x1xf32>
    %134 = arith.maximumf %132, %133 : vector<16x1xf32>
    %135 = vector.broadcast %125 : vector<16x1xf32> to vector<16x32xf32>
    %136 = arith.subf %117, %135 : vector<16x32xf32>
    %cst_61 = arith.constant 9.99999996E-13 : f32
    %137 = vector.broadcast %cst_61 : f32 to vector<16x1xf32>
    %138 = arith.addf %134, %137 : vector<16x1xf32>
    %139 = math.rsqrt %138 : vector<16x1xf32>
    %140 = vector.broadcast %139 : vector<16x1xf32> to vector<16x32xf32>
    %141 = arith.mulf %136, %140 : vector<16x32xf32>
    %142 = vector.broadcast %119 : vector<1x32xf32> to vector<16x32xf32>
    %143 = arith.mulf %141, %142 : vector<16x32xf32>
    %144 = vector.broadcast %121 : vector<1x32xf32> to vector<16x32xf32>
    %145 = arith.addf %143, %144 : vector<16x32xf32>
    %c0_62 = arith.constant 0 : index
    %c0_63 = arith.constant 0 : index
    %c0_64 = arith.constant 0 : index
    %146 = vector.load %arg15[%c0_62, %c0_63, %c0_64] : memref<2x32x64xf32, #tpu.memory_space<vmem>>, vector<1x32x64xf32>
    %147 = vector.shape_cast %146 : vector<1x32x64xf32> to vector<32x64xf32>
    %cst_65 = arith.constant dense<0.000000e+00> : vector<16x64xf32>
    %148 = tpu.matmul %145, %147, %cst_65 {dimension_numbers = #tpu.dot_dimension_numbers<[1], [0], [0], [1], [0, 0, 1, 1], [], []>} : vector<16x32xf32>, vector<32x64xf32>, vector<16x64xf32> -> vector<16x64xf32>
    %c0_66 = arith.constant 0 : index
    %c0_67 = arith.constant 0 : index
    %c0_68 = arith.constant 0 : index
    %149 = vector.load %arg16[%c0_66, %c0_67, %c0_68] : memref<2x1x64xf32, #tpu.memory_space<vmem>>, vector<1x1x64xf32>
    %150 = vector.shape_cast %149 : vector<1x1x64xf32> to vector<1x64xf32>
    %151 = vector.broadcast %150 : vector<1x64xf32> to vector<16x64xf32>
    %152 = arith.addf %148, %151 : vector<16x64xf32>
    %153 = arith.mulf %152, %152 : vector<16x64xf32>
    %154 = arith.mulf %152, %153 : vector<16x64xf32>
    %cst_69 = arith.constant 4.471500e-02 : f32
    %155 = vector.broadcast %cst_69 : f32 to vector<16x64xf32>
    %156 = arith.mulf %155, %154 : vector<16x64xf32>
    %157 = arith.addf %152, %156 : vector<16x64xf32>
    %cst_70 = arith.constant 0.797884583 : f32
    %158 = vector.broadcast %cst_70 : f32 to vector<16x64xf32>
    %159 = arith.mulf %158, %157 : vector<16x64xf32>
    %160 = math.tanh %159 : vector<16x64xf32>
    %cst_71 = arith.constant 1.000000e+00 : f32
    %161 = vector.broadcast %cst_71 : f32 to vector<16x64xf32>
    %162 = arith.addf %161, %160 : vector<16x64xf32>
    %cst_72 = arith.constant 5.000000e-01 : f32
    %163 = vector.broadcast %cst_72 : f32 to vector<16x64xf32>
    %164 = arith.mulf %163, %162 : vector<16x64xf32>
    %165 = arith.mulf %152, %164 : vector<16x64xf32>
    %c0_73 = arith.constant 0 : index
    %c0_74 = arith.constant 0 : index
    %c0_75 = arith.constant 0 : index
    %166 = vector.load %arg17[%c0_73, %c0_74, %c0_75] : memref<2x64x32xf32, #tpu.memory_space<vmem>>, vector<1x64x32xf32>
    %167 = vector.shape_cast %166 : vector<1x64x32xf32> to vector<64x32xf32>
    %cst_76 = arith.constant dense<0.000000e+00> : vector<16x32xf32>
    %168 = tpu.matmul %165, %167, %cst_76 {dimension_numbers = #tpu.dot_dimension_numbers<[1], [0], [0], [1], [0, 0, 1, 1], [], []>} : vector<16x64xf32>, vector<64x32xf32>, vector<16x32xf32> -> vector<16x32xf32>
    %c0_77 = arith.constant 0 : index
    %c0_78 = arith.constant 0 : index
    %c0_79 = arith.constant 0 : index
    %169 = vector.load %arg18[%c0_77, %c0_78, %c0_79] : memref<2x1x32xf32, #tpu.memory_space<vmem>>, vector<1x1x32xf32>
    %170 = vector.shape_cast %169 : vector<1x1x32xf32> to vector<1x32xf32>
    %171 = vector.broadcast %170 : vector<1x32xf32> to vector<16x32xf32>
    %172 = arith.addf %168, %171 : vector<16x32xf32>
    %173 = arith.addf %145, %172 : vector<16x32xf32>
    %c0_80 = arith.constant 0 : index
    %c0_81 = arith.constant 0 : index
    %c0_82 = arith.constant 0 : index
    %174 = vector.load %arg19[%c0_80, %c0_81, %c0_82] : memref<2x1x32xf32, #tpu.memory_space<vmem>>, vector<1x1x32xf32>
    %175 = vector.shape_cast %174 : vector<1x1x32xf32> to vector<1x32xf32>
    %c0_83 = arith.constant 0 : index
    %c0_84 = arith.constant 0 : index
    %c0_85 = arith.constant 0 : index
    %176 = vector.load %arg20[%c0_83, %c0_84, %c0_85] : memref<2x1x32xf32, #tpu.memory_space<vmem>>, vector<1x1x32xf32>
    %177 = vector.shape_cast %176 : vector<1x1x32xf32> to vector<1x32xf32>
    %cst_86 = arith.constant dense<0.000000e+00> : vector<16xf32>
    %178 = vector.multi_reduction <add>, %173, %cst_86 [1] : vector<16x32xf32> to vector<16xf32>
    %179 = vector.shape_cast %178 : vector<16xf32> to vector<16x1xf32>
    %cst_87 = arith.constant 3.200000e+01 : f32
    %180 = vector.broadcast %cst_87 : f32 to vector<16x1xf32>
    %181 = arith.divf %179, %180 : vector<16x1xf32>
    %182 = arith.mulf %173, %173 : vector<16x32xf32>
    %cst_88 = arith.constant dense<0.000000e+00> : vector<16xf32>
    %183 = vector.multi_reduction <add>, %182, %cst_88 [1] : vector<16x32xf32> to vector<16xf32>
    %184 = vector.shape_cast %183 : vector<16xf32> to vector<16x1xf32>
    %cst_89 = arith.constant 3.200000e+01 : f32
    %185 = vector.broadcast %cst_89 : f32 to vector<16x1xf32>
    %186 = arith.divf %184, %185 : vector<16x1xf32>
    %187 = arith.mulf %181, %181 : vector<16x1xf32>
    %188 = arith.subf %186, %187 : vector<16x1xf32>
    %cst_90 = arith.constant 0.000000e+00 : f32
    %189 = vector.broadcast %cst_90 : f32 to vector<16x1xf32>
    %190 = arith.maximumf %188, %189 : vector<16x1xf32>
    %191 = vector.broadcast %181 : vector<16x1xf32> to vector<16x32xf32>
    %192 = arith.subf %173, %191 : vector<16x32xf32>
    %cst_91 = arith.constant 9.99999996E-13 : f32
    %193 = vector.broadcast %cst_91 : f32 to vector<16x1xf32>
    %194 = arith.addf %190, %193 : vector<16x1xf32>
    %195 = math.rsqrt %194 : vector<16x1xf32>
    %196 = vector.broadcast %195 : vector<16x1xf32> to vector<16x32xf32>
    %197 = arith.mulf %192, %196 : vector<16x32xf32>
    %198 = vector.broadcast %175 : vector<1x32xf32> to vector<16x32xf32>
    %199 = arith.mulf %197, %198 : vector<16x32xf32>
    %200 = vector.broadcast %177 : vector<1x32xf32> to vector<16x32xf32>
    %201 = arith.addf %199, %200 : vector<16x32xf32>
    %c1 = arith.constant 1 : index
    %c0_92 = arith.constant 0 : index
    %c0_93 = arith.constant 0 : index
    %202 = vector.load %arg9[%c1, %c0_92, %c0_93] : memref<2x96x32xf32, #tpu.memory_space<vmem>>, vector<1x96x32xf32>
    %203 = vector.shape_cast %202 : vector<1x96x32xf32> to vector<96x32xf32>
    %c1_94 = arith.constant 1 : index
    %c0_95 = arith.constant 0 : index
    %c0_96 = arith.constant 0 : index
    %204 = vector.load %arg10[%c1_94, %c0_95, %c0_96] : memref<2x96x1xf32, #tpu.memory_space<vmem>>, vector<1x96x1xf32>
    %205 = vector.shape_cast %204 : vector<1x96x1xf32> to vector<96x1xf32>
    %c1_97 = arith.constant 1 : index
    %c0_98 = arith.constant 0 : index
    %c0_99 = arith.constant 0 : index
    %206 = vector.load %arg11[%c1_97, %c0_98, %c0_99] : memref<2x32x32xf32, #tpu.memory_space<vmem>>, vector<1x32x32xf32>
    %207 = vector.shape_cast %206 : vector<1x32x32xf32> to vector<32x32xf32>
    %c1_100 = arith.constant 1 : index
    %c0_101 = arith.constant 0 : index
    %c0_102 = arith.constant 0 : index
    %208 = vector.load %arg12[%c1_100, %c0_101, %c0_102] : memref<2x1x32xf32, #tpu.memory_space<vmem>>, vector<1x1x32xf32>
    %209 = vector.shape_cast %208 : vector<1x1x32xf32> to vector<1x32xf32>
    %cst_103 = arith.constant dense<0.000000e+00> : vector<96x16xf32>
    %210 = tpu.matmul %203, %201, %cst_103 {dimension_numbers = #tpu.dot_dimension_numbers<[1], [1], [0], [0], [0, 0, 1, 0], [], []>} : vector<96x32xf32>, vector<16x32xf32>, vector<96x16xf32> -> vector<96x16xf32>
    %211 = vector.broadcast %205 : vector<96x1xf32> to vector<96x16xf32>
    %212 = arith.addf %210, %211 : vector<96x16xf32>
    %213 = vector.extract_strided_slice %212 {offsets = [0, 0], sizes = [8, 16], strides = [1, 1]} : vector<96x16xf32> to vector<8x16xf32>
    %214 = vector.extract_strided_slice %212 {offsets = [32, 0], sizes = [8, 16], strides = [1, 1]} : vector<96x16xf32> to vector<8x16xf32>
    %215 = vector.extract_strided_slice %212 {offsets = [64, 0], sizes = [8, 16], strides = [1, 1]} : vector<96x16xf32> to vector<8x16xf32>
    %cst_104 = arith.constant dense<0.000000e+00> : vector<16x16xf32>
    %216 = tpu.matmul %213, %214, %cst_104 {dimension_numbers = #tpu.dot_dimension_numbers<[0], [0], [1], [1], [0, 1, 1, 1], [], []>} : vector<8x16xf32>, vector<8x16xf32>, vector<16x16xf32> -> vector<16x16xf32>
    %217 = vector.broadcast %1 : vector<1x16xf32> to vector<16x16xf32>
    %218 = arith.addf %216, %217 : vector<16x16xf32>
    %cst_105 = arith.constant dense<0xFF800000> : vector<16xf32>
    %219 = vector.multi_reduction <maximumf>, %218, %cst_105 [1] : vector<16x16xf32> to vector<16xf32>
    %220 = vector.shape_cast %219 : vector<16xf32> to vector<16x1xf32>
    %221 = vector.broadcast %220 : vector<16x1xf32> to vector<16x16xf32>
    %222 = arith.subf %218, %221 : vector<16x16xf32>
    %223 = math.exp %222 : vector<16x16xf32>
    %cst_106 = arith.constant dense<0.000000e+00> : vector<16xf32>
    %224 = vector.multi_reduction <add>, %223, %cst_106 [1] : vector<16x16xf32> to vector<16xf32>
    %225 = vector.shape_cast %224 : vector<16xf32> to vector<16x1xf32>
    %226 = tpu.reciprocal %225 {approx = true} : vector<16x1xf32> -> vector<16x1xf32>
    %227 = vector.broadcast %226 : vector<16x1xf32> to vector<16x16xf32>
    %228 = arith.mulf %223, %227 : vector<16x16xf32>
    %cst_107 = arith.constant dense<0.000000e+00> : vector<8x16xf32>
    %229 = tpu.matmul %215, %228, %cst_107 {dimension_numbers = #tpu.dot_dimension_numbers<[1], [1], [0], [0], [0, 0, 1, 0], [], []>} : vector<8x16xf32>, vector<16x16xf32>, vector<8x16xf32> -> vector<8x16xf32>
    %230 = vector.extract_strided_slice %212 {offsets = [8, 0], sizes = [8, 16], strides = [1, 1]} : vector<96x16xf32> to vector<8x16xf32>
    %231 = vector.extract_strided_slice %212 {offsets = [40, 0], sizes = [8, 16], strides = [1, 1]} : vector<96x16xf32> to vector<8x16xf32>
    %232 = vector.extract_strided_slice %212 {offsets = [72, 0], sizes = [8, 16], strides = [1, 1]} : vector<96x16xf32> to vector<8x16xf32>
    %cst_108 = arith.constant dense<0.000000e+00> : vector<16x16xf32>
    %233 = tpu.matmul %230, %231, %cst_108 {dimension_numbers = #tpu.dot_dimension_numbers<[0], [0], [1], [1], [0, 1, 1, 1], [], []>} : vector<8x16xf32>, vector<8x16xf32>, vector<16x16xf32> -> vector<16x16xf32>
    %234 = vector.broadcast %1 : vector<1x16xf32> to vector<16x16xf32>
    %235 = arith.addf %233, %234 : vector<16x16xf32>
    %cst_109 = arith.constant dense<0xFF800000> : vector<16xf32>
    %236 = vector.multi_reduction <maximumf>, %235, %cst_109 [1] : vector<16x16xf32> to vector<16xf32>
    %237 = vector.shape_cast %236 : vector<16xf32> to vector<16x1xf32>
    %238 = vector.broadcast %237 : vector<16x1xf32> to vector<16x16xf32>
    %239 = arith.subf %235, %238 : vector<16x16xf32>
    %240 = math.exp %239 : vector<16x16xf32>
    %cst_110 = arith.constant dense<0.000000e+00> : vector<16xf32>
    %241 = vector.multi_reduction <add>, %240, %cst_110 [1] : vector<16x16xf32> to vector<16xf32>
    %242 = vector.shape_cast %241 : vector<16xf32> to vector<16x1xf32>
    %243 = tpu.reciprocal %242 {approx = true} : vector<16x1xf32> -> vector<16x1xf32>
    %244 = vector.broadcast %243 : vector<16x1xf32> to vector<16x16xf32>
    %245 = arith.mulf %240, %244 : vector<16x16xf32>
    %cst_111 = arith.constant dense<0.000000e+00> : vector<8x16xf32>
    %246 = tpu.matmul %232, %245, %cst_111 {dimension_numbers = #tpu.dot_dimension_numbers<[1], [1], [0], [0], [0, 0, 1, 0], [], []>} : vector<8x16xf32>, vector<16x16xf32>, vector<8x16xf32> -> vector<8x16xf32>
    %247 = vector.extract_strided_slice %212 {offsets = [16, 0], sizes = [8, 16], strides = [1, 1]} : vector<96x16xf32> to vector<8x16xf32>
    %248 = vector.extract_strided_slice %212 {offsets = [48, 0], sizes = [8, 16], strides = [1, 1]} : vector<96x16xf32> to vector<8x16xf32>
    %249 = vector.extract_strided_slice %212 {offsets = [80, 0], sizes = [8, 16], strides = [1, 1]} : vector<96x16xf32> to vector<8x16xf32>
    %cst_112 = arith.constant dense<0.000000e+00> : vector<16x16xf32>
    %250 = tpu.matmul %247, %248, %cst_112 {dimension_numbers = #tpu.dot_dimension_numbers<[0], [0], [1], [1], [0, 1, 1, 1], [], []>} : vector<8x16xf32>, vector<8x16xf32>, vector<16x16xf32> -> vector<16x16xf32>
    %251 = vector.broadcast %1 : vector<1x16xf32> to vector<16x16xf32>
    %252 = arith.addf %250, %251 : vector<16x16xf32>
    %cst_113 = arith.constant dense<0xFF800000> : vector<16xf32>
    %253 = vector.multi_reduction <maximumf>, %252, %cst_113 [1] : vector<16x16xf32> to vector<16xf32>
    %254 = vector.shape_cast %253 : vector<16xf32> to vector<16x1xf32>
    %255 = vector.broadcast %254 : vector<16x1xf32> to vector<16x16xf32>
    %256 = arith.subf %252, %255 : vector<16x16xf32>
    %257 = math.exp %256 : vector<16x16xf32>
    %cst_114 = arith.constant dense<0.000000e+00> : vector<16xf32>
    %258 = vector.multi_reduction <add>, %257, %cst_114 [1] : vector<16x16xf32> to vector<16xf32>
    %259 = vector.shape_cast %258 : vector<16xf32> to vector<16x1xf32>
    %260 = tpu.reciprocal %259 {approx = true} : vector<16x1xf32> -> vector<16x1xf32>
    %261 = vector.broadcast %260 : vector<16x1xf32> to vector<16x16xf32>
    %262 = arith.mulf %257, %261 : vector<16x16xf32>
    %cst_115 = arith.constant dense<0.000000e+00> : vector<8x16xf32>
    %263 = tpu.matmul %249, %262, %cst_115 {dimension_numbers = #tpu.dot_dimension_numbers<[1], [1], [0], [0], [0, 0, 1, 0], [], []>} : vector<8x16xf32>, vector<16x16xf32>, vector<8x16xf32> -> vector<8x16xf32>
    %264 = vector.extract_strided_slice %212 {offsets = [24, 0], sizes = [8, 16], strides = [1, 1]} : vector<96x16xf32> to vector<8x16xf32>
    %265 = vector.extract_strided_slice %212 {offsets = [56, 0], sizes = [8, 16], strides = [1, 1]} : vector<96x16xf32> to vector<8x16xf32>
    %266 = vector.extract_strided_slice %212 {offsets = [88, 0], sizes = [8, 16], strides = [1, 1]} : vector<96x16xf32> to vector<8x16xf32>
    %cst_116 = arith.constant dense<0.000000e+00> : vector<16x16xf32>
    %267 = tpu.matmul %264, %265, %cst_116 {dimension_numbers = #tpu.dot_dimension_numbers<[0], [0], [1], [1], [0, 1, 1, 1], [], []>} : vector<8x16xf32>, vector<8x16xf32>, vector<16x16xf32> -> vector<16x16xf32>
    %268 = vector.broadcast %1 : vector<1x16xf32> to vector<16x16xf32>
    %269 = arith.addf %267, %268 : vector<16x16xf32>
    %cst_117 = arith.constant dense<0xFF800000> : vector<16xf32>
    %270 = vector.multi_reduction <maximumf>, %269, %cst_117 [1] : vector<16x16xf32> to vector<16xf32>
    %271 = vector.shape_cast %270 : vector<16xf32> to vector<16x1xf32>
    %272 = vector.broadcast %271 : vector<16x1xf32> to vector<16x16xf32>
    %273 = arith.subf %269, %272 : vector<16x16xf32>
    %274 = math.exp %273 : vector<16x16xf32>
    %cst_118 = arith.constant dense<0.000000e+00> : vector<16xf32>
    %275 = vector.multi_reduction <add>, %274, %cst_118 [1] : vector<16x16xf32> to vector<16xf32>
    %276 = vector.shape_cast %275 : vector<16xf32> to vector<16x1xf32>
    %277 = tpu.reciprocal %276 {approx = true} : vector<16x1xf32> -> vector<16x1xf32>
    %278 = vector.broadcast %277 : vector<16x1xf32> to vector<16x16xf32>
    %279 = arith.mulf %274, %278 : vector<16x16xf32>
    %cst_119 = arith.constant dense<0.000000e+00> : vector<8x16xf32>
    %280 = tpu.matmul %266, %279, %cst_119 {dimension_numbers = #tpu.dot_dimension_numbers<[1], [1], [0], [0], [0, 0, 1, 0], [], []>} : vector<8x16xf32>, vector<16x16xf32>, vector<8x16xf32> -> vector<8x16xf32>
    %281 = tpu.concatenate %229, %246, %263, %280 in 0 : vector<8x16xf32>, vector<8x16xf32>, vector<8x16xf32>, vector<8x16xf32> -> vector<32x16xf32>
    %cst_120 = arith.constant dense<0.000000e+00> : vector<16x32xf32>
    %282 = tpu.matmul %281, %207, %cst_120 {dimension_numbers = #tpu.dot_dimension_numbers<[0], [0], [1], [1], [0, 1, 1, 1], [], []>} : vector<32x16xf32>, vector<32x32xf32>, vector<16x32xf32> -> vector<16x32xf32>
    %283 = vector.broadcast %209 : vector<1x32xf32> to vector<16x32xf32>
    %284 = arith.addf %282, %283 : vector<16x32xf32>
    %285 = arith.addf %201, %284 : vector<16x32xf32>
    %c1_121 = arith.constant 1 : index
    %c0_122 = arith.constant 0 : index
    %c0_123 = arith.constant 0 : index
    %286 = vector.load %arg13[%c1_121, %c0_122, %c0_123] : memref<2x1x32xf32, #tpu.memory_space<vmem>>, vector<1x1x32xf32>
    %287 = vector.shape_cast %286 : vector<1x1x32xf32> to vector<1x32xf32>
    %c1_124 = arith.constant 1 : index
    %c0_125 = arith.constant 0 : index
    %c0_126 = arith.constant 0 : index
    %288 = vector.load %arg14[%c1_124, %c0_125, %c0_126] : memref<2x1x32xf32, #tpu.memory_space<vmem>>, vector<1x1x32xf32>
    %289 = vector.shape_cast %288 : vector<1x1x32xf32> to vector<1x32xf32>
    %cst_127 = arith.constant dense<0.000000e+00> : vector<16xf32>
    %290 = vector.multi_reduction <add>, %285, %cst_127 [1] : vector<16x32xf32> to vector<16xf32>
    %291 = vector.shape_cast %290 : vector<16xf32> to vector<16x1xf32>
    %cst_128 = arith.constant 3.200000e+01 : f32
    %292 = vector.broadcast %cst_128 : f32 to vector<16x1xf32>
    %293 = arith.divf %291, %292 : vector<16x1xf32>
    %294 = arith.mulf %285, %285 : vector<16x32xf32>
    %cst_129 = arith.constant dense<0.000000e+00> : vector<16xf32>
    %295 = vector.multi_reduction <add>, %294, %cst_129 [1] : vector<16x32xf32> to vector<16xf32>
    %296 = vector.shape_cast %295 : vector<16xf32> to vector<16x1xf32>
    %cst_130 = arith.constant 3.200000e+01 : f32
    %297 = vector.broadcast %cst_130 : f32 to vector<16x1xf32>
    %298 = arith.divf %296, %297 : vector<16x1xf32>
    %299 = arith.mulf %293, %293 : vector<16x1xf32>
    %300 = arith.subf %298, %299 : vector<16x1xf32>
    %cst_131 = arith.constant 0.000000e+00 : f32
    %301 = vector.broadcast %cst_131 : f32 to vector<16x1xf32>
    %302 = arith.maximumf %300, %301 : vector<16x1xf32>
    %303 = vector.broadcast %293 : vector<16x1xf32> to vector<16x32xf32>
    %304 = arith.subf %285, %303 : vector<16x32xf32>
    %cst_132 = arith.constant 9.99999996E-13 : f32
    %305 = vector.broadcast %cst_132 : f32 to vector<16x1xf32>
    %306 = arith.addf %302, %305 : vector<16x1xf32>
    %307 = math.rsqrt %306 : vector<16x1xf32>
    %308 = vector.broadcast %307 : vector<16x1xf32> to vector<16x32xf32>
    %309 = arith.mulf %304, %308 : vector<16x32xf32>
    %310 = vector.broadcast %287 : vector<1x32xf32> to vector<16x32xf32>
    %311 = arith.mulf %309, %310 : vector<16x32xf32>
    %312 = vector.broadcast %289 : vector<1x32xf32> to vector<16x32xf32>
    %313 = arith.addf %311, %312 : vector<16x32xf32>
    %c1_133 = arith.constant 1 : index
    %c0_134 = arith.constant 0 : index
    %c0_135 = arith.constant 0 : index
    %314 = vector.load %arg15[%c1_133, %c0_134, %c0_135] : memref<2x32x64xf32, #tpu.memory_space<vmem>>, vector<1x32x64xf32>
    %315 = vector.shape_cast %314 : vector<1x32x64xf32> to vector<32x64xf32>
    %cst_136 = arith.constant dense<0.000000e+00> : vector<16x64xf32>
    %316 = tpu.matmul %313, %315, %cst_136 {dimension_numbers = #tpu.dot_dimension_numbers<[1], [0], [0], [1], [0, 0, 1, 1], [], []>} : vector<16x32xf32>, vector<32x64xf32>, vector<16x64xf32> -> vector<16x64xf32>
    %c1_137 = arith.constant 1 : index
    %c0_138 = arith.constant 0 : index
    %c0_139 = arith.constant 0 : index
    %317 = vector.load %arg16[%c1_137, %c0_138, %c0_139] : memref<2x1x64xf32, #tpu.memory_space<vmem>>, vector<1x1x64xf32>
    %318 = vector.shape_cast %317 : vector<1x1x64xf32> to vector<1x64xf32>
    %319 = vector.broadcast %318 : vector<1x64xf32> to vector<16x64xf32>
    %320 = arith.addf %316, %319 : vector<16x64xf32>
    %321 = arith.mulf %320, %320 : vector<16x64xf32>
    %322 = arith.mulf %320, %321 : vector<16x64xf32>
    %cst_140 = arith.constant 4.471500e-02 : f32
    %323 = vector.broadcast %cst_140 : f32 to vector<16x64xf32>
    %324 = arith.mulf %323, %322 : vector<16x64xf32>
    %325 = arith.addf %320, %324 : vector<16x64xf32>
    %cst_141 = arith.constant 0.797884583 : f32
    %326 = vector.broadcast %cst_141 : f32 to vector<16x64xf32>
    %327 = arith.mulf %326, %325 : vector<16x64xf32>
    %328 = math.tanh %327 : vector<16x64xf32>
    %cst_142 = arith.constant 1.000000e+00 : f32
    %329 = vector.broadcast %cst_142 : f32 to vector<16x64xf32>
    %330 = arith.addf %329, %328 : vector<16x64xf32>
    %cst_143 = arith.constant 5.000000e-01 : f32
    %331 = vector.broadcast %cst_143 : f32 to vector<16x64xf32>
    %332 = arith.mulf %331, %330 : vector<16x64xf32>
    %333 = arith.mulf %320, %332 : vector<16x64xf32>
    %c1_144 = arith.constant 1 : index
    %c0_145 = arith.constant 0 : index
    %c0_146 = arith.constant 0 : index
    %334 = vector.load %arg17[%c1_144, %c0_145, %c0_146] : memref<2x64x32xf32, #tpu.memory_space<vmem>>, vector<1x64x32xf32>
    %335 = vector.shape_cast %334 : vector<1x64x32xf32> to vector<64x32xf32>
    %cst_147 = arith.constant dense<0.000000e+00> : vector<16x32xf32>
    %336 = tpu.matmul %333, %335, %cst_147 {dimension_numbers = #tpu.dot_dimension_numbers<[1], [0], [0], [1], [0, 0, 1, 1], [], []>} : vector<16x64xf32>, vector<64x32xf32>, vector<16x32xf32> -> vector<16x32xf32>
    %c1_148 = arith.constant 1 : index
    %c0_149 = arith.constant 0 : index
    %c0_150 = arith.constant 0 : index
    %337 = vector.load %arg18[%c1_148, %c0_149, %c0_150] : memref<2x1x32xf32, #tpu.memory_space<vmem>>, vector<1x1x32xf32>
    %338 = vector.shape_cast %337 : vector<1x1x32xf32> to vector<1x32xf32>
    %339 = vector.broadcast %338 : vector<1x32xf32> to vector<16x32xf32>
    %340 = arith.addf %336, %339 : vector<16x32xf32>
    %341 = arith.addf %313, %340 : vector<16x32xf32>
    %c1_151 = arith.constant 1 : index
    %c0_152 = arith.constant 0 : index
    %c0_153 = arith.constant 0 : index
    %342 = vector.load %arg19[%c1_151, %c0_152, %c0_153] : memref<2x1x32xf32, #tpu.memory_space<vmem>>, vector<1x1x32xf32>
    %343 = vector.shape_cast %342 : vector<1x1x32xf32> to vector<1x32xf32>
    %c1_154 = arith.constant 1 : index
    %c0_155 = arith.constant 0 : index
    %c0_156 = arith.constant 0 : index
    %344 = vector.load %arg20[%c1_154, %c0_155, %c0_156] : memref<2x1x32xf32, #tpu.memory_space<vmem>>, vector<1x1x32xf32>
    %345 = vector.shape_cast %344 : vector<1x1x32xf32> to vector<1x32xf32>
    %cst_157 = arith.constant dense<0.000000e+00> : vector<16xf32>
    %346 = vector.multi_reduction <add>, %341, %cst_157 [1] : vector<16x32xf32> to vector<16xf32>
    %347 = vector.shape_cast %346 : vector<16xf32> to vector<16x1xf32>
    %cst_158 = arith.constant 3.200000e+01 : f32
    %348 = vector.broadcast %cst_158 : f32 to vector<16x1xf32>
    %349 = arith.divf %347, %348 : vector<16x1xf32>
    %350 = arith.mulf %341, %341 : vector<16x32xf32>
    %cst_159 = arith.constant dense<0.000000e+00> : vector<16xf32>
    %351 = vector.multi_reduction <add>, %350, %cst_159 [1] : vector<16x32xf32> to vector<16xf32>
    %352 = vector.shape_cast %351 : vector<16xf32> to vector<16x1xf32>
    %cst_160 = arith.constant 3.200000e+01 : f32
    %353 = vector.broadcast %cst_160 : f32 to vector<16x1xf32>
    %354 = arith.divf %352, %353 : vector<16x1xf32>
    %355 = arith.mulf %349, %349 : vector<16x1xf32>
    %356 = arith.subf %354, %355 : vector<16x1xf32>
    %cst_161 = arith.constant 0.000000e+00 : f32
    %357 = vector.broadcast %cst_161 : f32 to vector<16x1xf32>
    %358 = arith.maximumf %356, %357 : vector<16x1xf32>
    %359 = vector.broadcast %349 : vector<16x1xf32> to vector<16x32xf32>
    %360 = arith.subf %341, %359 : vector<16x32xf32>
    %cst_162 = arith.constant 9.99999996E-13 : f32
    %361 = vector.broadcast %cst_162 : f32 to vector<16x1xf32>
    %362 = arith.addf %358, %361 : vector<16x1xf32>
    %363 = math.rsqrt %362 : vector<16x1xf32>
    %364 = vector.broadcast %363 : vector<16x1xf32> to vector<16x32xf32>
    %365 = arith.mulf %360, %364 : vector<16x32xf32>
    %366 = vector.broadcast %343 : vector<1x32xf32> to vector<16x32xf32>
    %367 = arith.mulf %365, %366 : vector<16x32xf32>
    %368 = vector.broadcast %345 : vector<1x32xf32> to vector<16x32xf32>
    %369 = arith.addf %367, %368 : vector<16x32xf32>
    %c0_163 = arith.constant 0 : index
    %c0_164 = arith.constant 0 : index
    %c0_165 = arith.constant 0 : index
    %370 = vector.load %arg4[%c0_163, %c0_164, %c0_165] : memref<1x4x16xf32, #tpu.memory_space<vmem>>, vector<1x4x16xf32>
    %371 = vector.shape_cast %370 : vector<1x4x16xf32> to vector<4x16xf32>
    %cst_166 = arith.constant dense<0.000000e+00> : vector<4x32xf32>
    %372 = tpu.matmul %371, %369, %cst_166 {dimension_numbers = #tpu.dot_dimension_numbers<[1], [0], [0], [1], [0, 0, 1, 1], [], []>} : vector<4x16xf32>, vector<16x32xf32>, vector<4x32xf32> -> vector<4x32xf32>
    %373 = vector.broadcast %5 : vector<4x1xf32> to vector<4x32xf32>
    %374 = arith.mulf %372, %373 : vector<4x32xf32>
    %375 = vector.broadcast %5 : vector<4x1xf32> to vector<4x32xf32>
    %376 = arith.mulf %374, %375 : vector<4x32xf32>
    %c0_167 = arith.constant 0 : index
    %c0_168 = arith.constant 0 : index
    %377 = vector.load %arg6[%c0_167, %c0_168] : memref<4x32xf32, #tpu.memory_space<vmem>>, vector<4x32xf32>
    %378 = arith.addf %376, %377 : vector<4x32xf32>
    %c0_169 = arith.constant 0 : index
    %c0_170 = arith.constant 0 : index
    %c0_171 = arith.constant 0 : index
    %379 = vector.load %arg21[%c0_169, %c0_170, %c0_171] : memref<2x96x32xf32, #tpu.memory_space<vmem>>, vector<1x96x32xf32>
    %380 = vector.shape_cast %379 : vector<1x96x32xf32> to vector<96x32xf32>
    %c0_172 = arith.constant 0 : index
    %c0_173 = arith.constant 0 : index
    %c0_174 = arith.constant 0 : index
    %381 = vector.load %arg22[%c0_172, %c0_173, %c0_174] : memref<2x96x1xf32, #tpu.memory_space<vmem>>, vector<1x96x1xf32>
    %382 = vector.shape_cast %381 : vector<1x96x1xf32> to vector<96x1xf32>
    %c0_175 = arith.constant 0 : index
    %c0_176 = arith.constant 0 : index
    %c0_177 = arith.constant 0 : index
    %383 = vector.load %arg23[%c0_175, %c0_176, %c0_177] : memref<2x32x32xf32, #tpu.memory_space<vmem>>, vector<1x32x32xf32>
    %384 = vector.shape_cast %383 : vector<1x32x32xf32> to vector<32x32xf32>
    %c0_178 = arith.constant 0 : index
    %c0_179 = arith.constant 0 : index
    %c0_180 = arith.constant 0 : index
    %385 = vector.load %arg24[%c0_178, %c0_179, %c0_180] : memref<2x1x32xf32, #tpu.memory_space<vmem>>, vector<1x1x32xf32>
    %386 = vector.shape_cast %385 : vector<1x1x32xf32> to vector<1x32xf32>
    %cst_181 = arith.constant dense<0.000000e+00> : vector<96x4xf32>
    %387 = tpu.matmul %380, %378, %cst_181 {dimension_numbers = #tpu.dot_dimension_numbers<[1], [1], [0], [0], [0, 0, 1, 0], [], []>} : vector<96x32xf32>, vector<4x32xf32>, vector<96x4xf32> -> vector<96x4xf32>
    %388 = vector.broadcast %382 : vector<96x1xf32> to vector<96x4xf32>
    %389 = arith.addf %387, %388 : vector<96x4xf32>
    %390 = vector.extract_strided_slice %389 {offsets = [0, 0], sizes = [8, 4], strides = [1, 1]} : vector<96x4xf32> to vector<8x4xf32>
    %391 = vector.extract_strided_slice %389 {offsets = [32, 0], sizes = [8, 4], strides = [1, 1]} : vector<96x4xf32> to vector<8x4xf32>
    %392 = vector.extract_strided_slice %389 {offsets = [64, 0], sizes = [8, 4], strides = [1, 1]} : vector<96x4xf32> to vector<8x4xf32>
    %cst_182 = arith.constant dense<0.000000e+00> : vector<4x4xf32>
    %393 = tpu.matmul %390, %391, %cst_182 {dimension_numbers = #tpu.dot_dimension_numbers<[0], [0], [1], [1], [0, 1, 1, 1], [], []>} : vector<8x4xf32>, vector<8x4xf32>, vector<4x4xf32> -> vector<4x4xf32>
    %394 = vector.broadcast %3 : vector<1x4xf32> to vector<4x4xf32>
    %395 = arith.addf %393, %394 : vector<4x4xf32>
    %cst_183 = arith.constant dense<0xFF800000> : vector<4xf32>
    %396 = vector.multi_reduction <maximumf>, %395, %cst_183 [1] : vector<4x4xf32> to vector<4xf32>
    %397 = vector.shape_cast %396 : vector<4xf32> to vector<4x1xf32>
    %398 = vector.broadcast %397 : vector<4x1xf32> to vector<4x4xf32>
    %399 = arith.subf %395, %398 : vector<4x4xf32>
    %400 = math.exp %399 : vector<4x4xf32>
    %cst_184 = arith.constant dense<0.000000e+00> : vector<4xf32>
    %401 = vector.multi_reduction <add>, %400, %cst_184 [1] : vector<4x4xf32> to vector<4xf32>
    %402 = vector.shape_cast %401 : vector<4xf32> to vector<4x1xf32>
    %403 = tpu.reciprocal %402 {approx = true} : vector<4x1xf32> -> vector<4x1xf32>
    %404 = vector.broadcast %403 : vector<4x1xf32> to vector<4x4xf32>
    %405 = arith.mulf %400, %404 : vector<4x4xf32>
    %cst_185 = arith.constant dense<0.000000e+00> : vector<8x4xf32>
    %406 = tpu.matmul %392, %405, %cst_185 {dimension_numbers = #tpu.dot_dimension_numbers<[1], [1], [0], [0], [0, 0, 1, 0], [], []>} : vector<8x4xf32>, vector<4x4xf32>, vector<8x4xf32> -> vector<8x4xf32>
    %407 = vector.extract_strided_slice %389 {offsets = [8, 0], sizes = [8, 4], strides = [1, 1]} : vector<96x4xf32> to vector<8x4xf32>
    %408 = vector.extract_strided_slice %389 {offsets = [40, 0], sizes = [8, 4], strides = [1, 1]} : vector<96x4xf32> to vector<8x4xf32>
    %409 = vector.extract_strided_slice %389 {offsets = [72, 0], sizes = [8, 4], strides = [1, 1]} : vector<96x4xf32> to vector<8x4xf32>
    %cst_186 = arith.constant dense<0.000000e+00> : vector<4x4xf32>
    %410 = tpu.matmul %407, %408, %cst_186 {dimension_numbers = #tpu.dot_dimension_numbers<[0], [0], [1], [1], [0, 1, 1, 1], [], []>} : vector<8x4xf32>, vector<8x4xf32>, vector<4x4xf32> -> vector<4x4xf32>
    %411 = vector.broadcast %3 : vector<1x4xf32> to vector<4x4xf32>
    %412 = arith.addf %410, %411 : vector<4x4xf32>
    %cst_187 = arith.constant dense<0xFF800000> : vector<4xf32>
    %413 = vector.multi_reduction <maximumf>, %412, %cst_187 [1] : vector<4x4xf32> to vector<4xf32>
    %414 = vector.shape_cast %413 : vector<4xf32> to vector<4x1xf32>
    %415 = vector.broadcast %414 : vector<4x1xf32> to vector<4x4xf32>
    %416 = arith.subf %412, %415 : vector<4x4xf32>
    %417 = math.exp %416 : vector<4x4xf32>
    %cst_188 = arith.constant dense<0.000000e+00> : vector<4xf32>
    %418 = vector.multi_reduction <add>, %417, %cst_188 [1] : vector<4x4xf32> to vector<4xf32>
    %419 = vector.shape_cast %418 : vector<4xf32> to vector<4x1xf32>
    %420 = tpu.reciprocal %419 {approx = true} : vector<4x1xf32> -> vector<4x1xf32>
    %421 = vector.broadcast %420 : vector<4x1xf32> to vector<4x4xf32>
    %422 = arith.mulf %417, %421 : vector<4x4xf32>
    %cst_189 = arith.constant dense<0.000000e+00> : vector<8x4xf32>
    %423 = tpu.matmul %409, %422, %cst_189 {dimension_numbers = #tpu.dot_dimension_numbers<[1], [1], [0], [0], [0, 0, 1, 0], [], []>} : vector<8x4xf32>, vector<4x4xf32>, vector<8x4xf32> -> vector<8x4xf32>
    %424 = vector.extract_strided_slice %389 {offsets = [16, 0], sizes = [8, 4], strides = [1, 1]} : vector<96x4xf32> to vector<8x4xf32>
    %425 = vector.extract_strided_slice %389 {offsets = [48, 0], sizes = [8, 4], strides = [1, 1]} : vector<96x4xf32> to vector<8x4xf32>
    %426 = vector.extract_strided_slice %389 {offsets = [80, 0], sizes = [8, 4], strides = [1, 1]} : vector<96x4xf32> to vector<8x4xf32>
    %cst_190 = arith.constant dense<0.000000e+00> : vector<4x4xf32>
    %427 = tpu.matmul %424, %425, %cst_190 {dimension_numbers = #tpu.dot_dimension_numbers<[0], [0], [1], [1], [0, 1, 1, 1], [], []>} : vector<8x4xf32>, vector<8x4xf32>, vector<4x4xf32> -> vector<4x4xf32>
    %428 = vector.broadcast %3 : vector<1x4xf32> to vector<4x4xf32>
    %429 = arith.addf %427, %428 : vector<4x4xf32>
    %cst_191 = arith.constant dense<0xFF800000> : vector<4xf32>
    %430 = vector.multi_reduction <maximumf>, %429, %cst_191 [1] : vector<4x4xf32> to vector<4xf32>
    %431 = vector.shape_cast %430 : vector<4xf32> to vector<4x1xf32>
    %432 = vector.broadcast %431 : vector<4x1xf32> to vector<4x4xf32>
    %433 = arith.subf %429, %432 : vector<4x4xf32>
    %434 = math.exp %433 : vector<4x4xf32>
    %cst_192 = arith.constant dense<0.000000e+00> : vector<4xf32>
    %435 = vector.multi_reduction <add>, %434, %cst_192 [1] : vector<4x4xf32> to vector<4xf32>
    %436 = vector.shape_cast %435 : vector<4xf32> to vector<4x1xf32>
    %437 = tpu.reciprocal %436 {approx = true} : vector<4x1xf32> -> vector<4x1xf32>
    %438 = vector.broadcast %437 : vector<4x1xf32> to vector<4x4xf32>
    %439 = arith.mulf %434, %438 : vector<4x4xf32>
    %cst_193 = arith.constant dense<0.000000e+00> : vector<8x4xf32>
    %440 = tpu.matmul %426, %439, %cst_193 {dimension_numbers = #tpu.dot_dimension_numbers<[1], [1], [0], [0], [0, 0, 1, 0], [], []>} : vector<8x4xf32>, vector<4x4xf32>, vector<8x4xf32> -> vector<8x4xf32>
    %441 = vector.extract_strided_slice %389 {offsets = [24, 0], sizes = [8, 4], strides = [1, 1]} : vector<96x4xf32> to vector<8x4xf32>
    %442 = vector.extract_strided_slice %389 {offsets = [56, 0], sizes = [8, 4], strides = [1, 1]} : vector<96x4xf32> to vector<8x4xf32>
    %443 = vector.extract_strided_slice %389 {offsets = [88, 0], sizes = [8, 4], strides = [1, 1]} : vector<96x4xf32> to vector<8x4xf32>
    %cst_194 = arith.constant dense<0.000000e+00> : vector<4x4xf32>
    %444 = tpu.matmul %441, %442, %cst_194 {dimension_numbers = #tpu.dot_dimension_numbers<[0], [0], [1], [1], [0, 1, 1, 1], [], []>} : vector<8x4xf32>, vector<8x4xf32>, vector<4x4xf32> -> vector<4x4xf32>
    %445 = vector.broadcast %3 : vector<1x4xf32> to vector<4x4xf32>
    %446 = arith.addf %444, %445 : vector<4x4xf32>
    %cst_195 = arith.constant dense<0xFF800000> : vector<4xf32>
    %447 = vector.multi_reduction <maximumf>, %446, %cst_195 [1] : vector<4x4xf32> to vector<4xf32>
    %448 = vector.shape_cast %447 : vector<4xf32> to vector<4x1xf32>
    %449 = vector.broadcast %448 : vector<4x1xf32> to vector<4x4xf32>
    %450 = arith.subf %446, %449 : vector<4x4xf32>
    %451 = math.exp %450 : vector<4x4xf32>
    %cst_196 = arith.constant dense<0.000000e+00> : vector<4xf32>
    %452 = vector.multi_reduction <add>, %451, %cst_196 [1] : vector<4x4xf32> to vector<4xf32>
    %453 = vector.shape_cast %452 : vector<4xf32> to vector<4x1xf32>
    %454 = tpu.reciprocal %453 {approx = true} : vector<4x1xf32> -> vector<4x1xf32>
    %455 = vector.broadcast %454 : vector<4x1xf32> to vector<4x4xf32>
    %456 = arith.mulf %451, %455 : vector<4x4xf32>
    %cst_197 = arith.constant dense<0.000000e+00> : vector<8x4xf32>
    %457 = tpu.matmul %443, %456, %cst_197 {dimension_numbers = #tpu.dot_dimension_numbers<[1], [1], [0], [0], [0, 0, 1, 0], [], []>} : vector<8x4xf32>, vector<4x4xf32>, vector<8x4xf32> -> vector<8x4xf32>
    %458 = tpu.concatenate %406, %423, %440, %457 in 0 : vector<8x4xf32>, vector<8x4xf32>, vector<8x4xf32>, vector<8x4xf32> -> vector<32x4xf32>
    %cst_198 = arith.constant dense<0.000000e+00> : vector<4x32xf32>
    %459 = tpu.matmul %458, %384, %cst_198 {dimension_numbers = #tpu.dot_dimension_numbers<[0], [0], [1], [1], [0, 1, 1, 1], [], []>} : vector<32x4xf32>, vector<32x32xf32>, vector<4x32xf32> -> vector<4x32xf32>
    %460 = vector.broadcast %386 : vector<1x32xf32> to vector<4x32xf32>
    %461 = arith.addf %459, %460 : vector<4x32xf32>
    %462 = arith.addf %461, %378 : vector<4x32xf32>
    %c0_199 = arith.constant 0 : index
    %c0_200 = arith.constant 0 : index
    %c0_201 = arith.constant 0 : index
    %463 = vector.load %arg27[%c0_199, %c0_200, %c0_201] : memref<2x1x32xf32, #tpu.memory_space<vmem>>, vector<1x1x32xf32>
    %464 = vector.shape_cast %463 : vector<1x1x32xf32> to vector<1x32xf32>
    %c0_202 = arith.constant 0 : index
    %c0_203 = arith.constant 0 : index
    %c0_204 = arith.constant 0 : index
    %465 = vector.load %arg28[%c0_202, %c0_203, %c0_204] : memref<2x1x32xf32, #tpu.memory_space<vmem>>, vector<1x1x32xf32>
    %466 = vector.shape_cast %465 : vector<1x1x32xf32> to vector<1x32xf32>
    %cst_205 = arith.constant dense<0.000000e+00> : vector<4xf32>
    %467 = vector.multi_reduction <add>, %462, %cst_205 [1] : vector<4x32xf32> to vector<4xf32>
    %468 = vector.shape_cast %467 : vector<4xf32> to vector<4x1xf32>
    %cst_206 = arith.constant 3.200000e+01 : f32
    %469 = vector.broadcast %cst_206 : f32 to vector<4x1xf32>
    %470 = arith.divf %468, %469 : vector<4x1xf32>
    %471 = arith.mulf %462, %462 : vector<4x32xf32>
    %cst_207 = arith.constant dense<0.000000e+00> : vector<4xf32>
    %472 = vector.multi_reduction <add>, %471, %cst_207 [1] : vector<4x32xf32> to vector<4xf32>
    %473 = vector.shape_cast %472 : vector<4xf32> to vector<4x1xf32>
    %cst_208 = arith.constant 3.200000e+01 : f32
    %474 = vector.broadcast %cst_208 : f32 to vector<4x1xf32>
    %475 = arith.divf %473, %474 : vector<4x1xf32>
    %476 = arith.mulf %470, %470 : vector<4x1xf32>
    %477 = arith.subf %475, %476 : vector<4x1xf32>
    %cst_209 = arith.constant 0.000000e+00 : f32
    %478 = vector.broadcast %cst_209 : f32 to vector<4x1xf32>
    %479 = arith.maximumf %477, %478 : vector<4x1xf32>
    %480 = vector.broadcast %470 : vector<4x1xf32> to vector<4x32xf32>
    %481 = arith.subf %462, %480 : vector<4x32xf32>
    %cst_210 = arith.constant 9.99999997E-7 : f32
    %482 = vector.broadcast %cst_210 : f32 to vector<4x1xf32>
    %483 = arith.addf %479, %482 : vector<4x1xf32>
    %484 = math.rsqrt %483 : vector<4x1xf32>
    %485 = vector.broadcast %484 : vector<4x1xf32> to vector<4x32xf32>
    %486 = arith.mulf %481, %485 : vector<4x32xf32>
    %487 = vector.broadcast %464 : vector<1x32xf32> to vector<4x32xf32>
    %488 = arith.mulf %486, %487 : vector<4x32xf32>
    %489 = vector.broadcast %466 : vector<1x32xf32> to vector<4x32xf32>
    %490 = arith.addf %488, %489 : vector<4x32xf32>
    %c0_211 = arith.constant 0 : index
    %c0_212 = arith.constant 0 : index
    %c0_213 = arith.constant 0 : index
    %491 = vector.load %arg29[%c0_211, %c0_212, %c0_213] : memref<2x32x64xf32, #tpu.memory_space<vmem>>, vector<1x32x64xf32>
    %492 = vector.shape_cast %491 : vector<1x32x64xf32> to vector<32x64xf32>
    %cst_214 = arith.constant dense<0.000000e+00> : vector<4x64xf32>
    %493 = tpu.matmul %490, %492, %cst_214 {dimension_numbers = #tpu.dot_dimension_numbers<[1], [0], [0], [1], [0, 0, 1, 1], [], []>} : vector<4x32xf32>, vector<32x64xf32>, vector<4x64xf32> -> vector<4x64xf32>
    %c0_215 = arith.constant 0 : index
    %c0_216 = arith.constant 0 : index
    %c0_217 = arith.constant 0 : index
    %494 = vector.load %arg30[%c0_215, %c0_216, %c0_217] : memref<2x1x64xf32, #tpu.memory_space<vmem>>, vector<1x1x64xf32>
    %495 = vector.shape_cast %494 : vector<1x1x64xf32> to vector<1x64xf32>
    %496 = vector.broadcast %495 : vector<1x64xf32> to vector<4x64xf32>
    %497 = arith.addf %493, %496 : vector<4x64xf32>
    %498 = arith.mulf %497, %497 : vector<4x64xf32>
    %499 = arith.mulf %497, %498 : vector<4x64xf32>
    %cst_218 = arith.constant 4.471500e-02 : f32
    %500 = vector.broadcast %cst_218 : f32 to vector<4x64xf32>
    %501 = arith.mulf %500, %499 : vector<4x64xf32>
    %502 = arith.addf %497, %501 : vector<4x64xf32>
    %cst_219 = arith.constant 0.797884583 : f32
    %503 = vector.broadcast %cst_219 : f32 to vector<4x64xf32>
    %504 = arith.mulf %503, %502 : vector<4x64xf32>
    %505 = math.tanh %504 : vector<4x64xf32>
    %cst_220 = arith.constant 1.000000e+00 : f32
    %506 = vector.broadcast %cst_220 : f32 to vector<4x64xf32>
    %507 = arith.addf %506, %505 : vector<4x64xf32>
    %cst_221 = arith.constant 5.000000e-01 : f32
    %508 = vector.broadcast %cst_221 : f32 to vector<4x64xf32>
    %509 = arith.mulf %508, %507 : vector<4x64xf32>
    %510 = arith.mulf %497, %509 : vector<4x64xf32>
    %c0_222 = arith.constant 0 : index
    %c0_223 = arith.constant 0 : index
    %c0_224 = arith.constant 0 : index
    %511 = vector.load %arg31[%c0_222, %c0_223, %c0_224] : memref<2x64x32xf32, #tpu.memory_space<vmem>>, vector<1x64x32xf32>
    %512 = vector.shape_cast %511 : vector<1x64x32xf32> to vector<64x32xf32>
    %cst_225 = arith.constant dense<0.000000e+00> : vector<4x32xf32>
    %513 = tpu.matmul %510, %512, %cst_225 {dimension_numbers = #tpu.dot_dimension_numbers<[1], [0], [0], [1], [0, 0, 1, 1], [], []>} : vector<4x64xf32>, vector<64x32xf32>, vector<4x32xf32> -> vector<4x32xf32>
    %c0_226 = arith.constant 0 : index
    %c0_227 = arith.constant 0 : index
    %c0_228 = arith.constant 0 : index
    %514 = vector.load %arg32[%c0_226, %c0_227, %c0_228] : memref<2x1x32xf32, #tpu.memory_space<vmem>>, vector<1x1x32xf32>
    %515 = vector.shape_cast %514 : vector<1x1x32xf32> to vector<1x32xf32>
    %516 = vector.broadcast %515 : vector<1x32xf32> to vector<4x32xf32>
    %517 = arith.addf %513, %516 : vector<4x32xf32>
    %518 = arith.addf %517, %462 : vector<4x32xf32>
    %c1_229 = arith.constant 1 : index
    %c0_230 = arith.constant 0 : index
    %c0_231 = arith.constant 0 : index
    %519 = vector.load %arg25[%c1_229, %c0_230, %c0_231] : memref<2x1x32xf32, #tpu.memory_space<vmem>>, vector<1x1x32xf32>
    %520 = vector.shape_cast %519 : vector<1x1x32xf32> to vector<1x32xf32>
    %c1_232 = arith.constant 1 : index
    %c0_233 = arith.constant 0 : index
    %c0_234 = arith.constant 0 : index
    %521 = vector.load %arg26[%c1_232, %c0_233, %c0_234] : memref<2x1x32xf32, #tpu.memory_space<vmem>>, vector<1x1x32xf32>
    %522 = vector.shape_cast %521 : vector<1x1x32xf32> to vector<1x32xf32>
    %cst_235 = arith.constant dense<0.000000e+00> : vector<4xf32>
    %523 = vector.multi_reduction <add>, %518, %cst_235 [1] : vector<4x32xf32> to vector<4xf32>
    %524 = vector.shape_cast %523 : vector<4xf32> to vector<4x1xf32>
    %cst_236 = arith.constant 3.200000e+01 : f32
    %525 = vector.broadcast %cst_236 : f32 to vector<4x1xf32>
    %526 = arith.divf %524, %525 : vector<4x1xf32>
    %527 = arith.mulf %518, %518 : vector<4x32xf32>
    %cst_237 = arith.constant dense<0.000000e+00> : vector<4xf32>
    %528 = vector.multi_reduction <add>, %527, %cst_237 [1] : vector<4x32xf32> to vector<4xf32>
    %529 = vector.shape_cast %528 : vector<4xf32> to vector<4x1xf32>
    %cst_238 = arith.constant 3.200000e+01 : f32
    %530 = vector.broadcast %cst_238 : f32 to vector<4x1xf32>
    %531 = arith.divf %529, %530 : vector<4x1xf32>
    %532 = arith.mulf %526, %526 : vector<4x1xf32>
    %533 = arith.subf %531, %532 : vector<4x1xf32>
    %cst_239 = arith.constant 0.000000e+00 : f32
    %534 = vector.broadcast %cst_239 : f32 to vector<4x1xf32>
    %535 = arith.maximumf %533, %534 : vector<4x1xf32>
    %536 = vector.broadcast %526 : vector<4x1xf32> to vector<4x32xf32>
    %537 = arith.subf %518, %536 : vector<4x32xf32>
    %cst_240 = arith.constant 9.99999997E-7 : f32
    %538 = vector.broadcast %cst_240 : f32 to vector<4x1xf32>
    %539 = arith.addf %535, %538 : vector<4x1xf32>
    %540 = math.rsqrt %539 : vector<4x1xf32>
    %541 = vector.broadcast %540 : vector<4x1xf32> to vector<4x32xf32>
    %542 = arith.mulf %537, %541 : vector<4x32xf32>
    %543 = vector.broadcast %520 : vector<1x32xf32> to vector<4x32xf32>
    %544 = arith.mulf %542, %543 : vector<4x32xf32>
    %545 = vector.broadcast %522 : vector<1x32xf32> to vector<4x32xf32>
    %546 = arith.addf %544, %545 : vector<4x32xf32>
    %c1_241 = arith.constant 1 : index
    %c0_242 = arith.constant 0 : index
    %c0_243 = arith.constant 0 : index
    %547 = vector.load %arg21[%c1_241, %c0_242, %c0_243] : memref<2x96x32xf32, #tpu.memory_space<vmem>>, vector<1x96x32xf32>
    %548 = vector.shape_cast %547 : vector<1x96x32xf32> to vector<96x32xf32>
    %c1_244 = arith.constant 1 : index
    %c0_245 = arith.constant 0 : index
    %c0_246 = arith.constant 0 : index
    %549 = vector.load %arg22[%c1_244, %c0_245, %c0_246] : memref<2x96x1xf32, #tpu.memory_space<vmem>>, vector<1x96x1xf32>
    %550 = vector.shape_cast %549 : vector<1x96x1xf32> to vector<96x1xf32>
    %c1_247 = arith.constant 1 : index
    %c0_248 = arith.constant 0 : index
    %c0_249 = arith.constant 0 : index
    %551 = vector.load %arg23[%c1_247, %c0_248, %c0_249] : memref<2x32x32xf32, #tpu.memory_space<vmem>>, vector<1x32x32xf32>
    %552 = vector.shape_cast %551 : vector<1x32x32xf32> to vector<32x32xf32>
    %c1_250 = arith.constant 1 : index
    %c0_251 = arith.constant 0 : index
    %c0_252 = arith.constant 0 : index
    %553 = vector.load %arg24[%c1_250, %c0_251, %c0_252] : memref<2x1x32xf32, #tpu.memory_space<vmem>>, vector<1x1x32xf32>
    %554 = vector.shape_cast %553 : vector<1x1x32xf32> to vector<1x32xf32>
    %cst_253 = arith.constant dense<0.000000e+00> : vector<96x4xf32>
    %555 = tpu.matmul %548, %546, %cst_253 {dimension_numbers = #tpu.dot_dimension_numbers<[1], [1], [0], [0], [0, 0, 1, 0], [], []>} : vector<96x32xf32>, vector<4x32xf32>, vector<96x4xf32> -> vector<96x4xf32>
    %556 = vector.broadcast %550 : vector<96x1xf32> to vector<96x4xf32>
    %557 = arith.addf %555, %556 : vector<96x4xf32>
    %558 = vector.extract_strided_slice %557 {offsets = [0, 0], sizes = [8, 4], strides = [1, 1]} : vector<96x4xf32> to vector<8x4xf32>
    %559 = vector.extract_strided_slice %557 {offsets = [32, 0], sizes = [8, 4], strides = [1, 1]} : vector<96x4xf32> to vector<8x4xf32>
    %560 = vector.extract_strided_slice %557 {offsets = [64, 0], sizes = [8, 4], strides = [1, 1]} : vector<96x4xf32> to vector<8x4xf32>
    %cst_254 = arith.constant dense<0.000000e+00> : vector<4x4xf32>
    %561 = tpu.matmul %558, %559, %cst_254 {dimension_numbers = #tpu.dot_dimension_numbers<[0], [0], [1], [1], [0, 1, 1, 1], [], []>} : vector<8x4xf32>, vector<8x4xf32>, vector<4x4xf32> -> vector<4x4xf32>
    %562 = vector.broadcast %3 : vector<1x4xf32> to vector<4x4xf32>
    %563 = arith.addf %561, %562 : vector<4x4xf32>
    %cst_255 = arith.constant dense<0xFF800000> : vector<4xf32>
    %564 = vector.multi_reduction <maximumf>, %563, %cst_255 [1] : vector<4x4xf32> to vector<4xf32>
    %565 = vector.shape_cast %564 : vector<4xf32> to vector<4x1xf32>
    %566 = vector.broadcast %565 : vector<4x1xf32> to vector<4x4xf32>
    %567 = arith.subf %563, %566 : vector<4x4xf32>
    %568 = math.exp %567 : vector<4x4xf32>
    %cst_256 = arith.constant dense<0.000000e+00> : vector<4xf32>
    %569 = vector.multi_reduction <add>, %568, %cst_256 [1] : vector<4x4xf32> to vector<4xf32>
    %570 = vector.shape_cast %569 : vector<4xf32> to vector<4x1xf32>
    %571 = tpu.reciprocal %570 {approx = true} : vector<4x1xf32> -> vector<4x1xf32>
    %572 = vector.broadcast %571 : vector<4x1xf32> to vector<4x4xf32>
    %573 = arith.mulf %568, %572 : vector<4x4xf32>
    %cst_257 = arith.constant dense<0.000000e+00> : vector<8x4xf32>
    %574 = tpu.matmul %560, %573, %cst_257 {dimension_numbers = #tpu.dot_dimension_numbers<[1], [1], [0], [0], [0, 0, 1, 0], [], []>} : vector<8x4xf32>, vector<4x4xf32>, vector<8x4xf32> -> vector<8x4xf32>
    %575 = vector.extract_strided_slice %557 {offsets = [8, 0], sizes = [8, 4], strides = [1, 1]} : vector<96x4xf32> to vector<8x4xf32>
    %576 = vector.extract_strided_slice %557 {offsets = [40, 0], sizes = [8, 4], strides = [1, 1]} : vector<96x4xf32> to vector<8x4xf32>
    %577 = vector.extract_strided_slice %557 {offsets = [72, 0], sizes = [8, 4], strides = [1, 1]} : vector<96x4xf32> to vector<8x4xf32>
    %cst_258 = arith.constant dense<0.000000e+00> : vector<4x4xf32>
    %578 = tpu.matmul %575, %576, %cst_258 {dimension_numbers = #tpu.dot_dimension_numbers<[0], [0], [1], [1], [0, 1, 1, 1], [], []>} : vector<8x4xf32>, vector<8x4xf32>, vector<4x4xf32> -> vector<4x4xf32>
    %579 = vector.broadcast %3 : vector<1x4xf32> to vector<4x4xf32>
    %580 = arith.addf %578, %579 : vector<4x4xf32>
    %cst_259 = arith.constant dense<0xFF800000> : vector<4xf32>
    %581 = vector.multi_reduction <maximumf>, %580, %cst_259 [1] : vector<4x4xf32> to vector<4xf32>
    %582 = vector.shape_cast %581 : vector<4xf32> to vector<4x1xf32>
    %583 = vector.broadcast %582 : vector<4x1xf32> to vector<4x4xf32>
    %584 = arith.subf %580, %583 : vector<4x4xf32>
    %585 = math.exp %584 : vector<4x4xf32>
    %cst_260 = arith.constant dense<0.000000e+00> : vector<4xf32>
    %586 = vector.multi_reduction <add>, %585, %cst_260 [1] : vector<4x4xf32> to vector<4xf32>
    %587 = vector.shape_cast %586 : vector<4xf32> to vector<4x1xf32>
    %588 = tpu.reciprocal %587 {approx = true} : vector<4x1xf32> -> vector<4x1xf32>
    %589 = vector.broadcast %588 : vector<4x1xf32> to vector<4x4xf32>
    %590 = arith.mulf %585, %589 : vector<4x4xf32>
    %cst_261 = arith.constant dense<0.000000e+00> : vector<8x4xf32>
    %591 = tpu.matmul %577, %590, %cst_261 {dimension_numbers = #tpu.dot_dimension_numbers<[1], [1], [0], [0], [0, 0, 1, 0], [], []>} : vector<8x4xf32>, vector<4x4xf32>, vector<8x4xf32> -> vector<8x4xf32>
    %592 = vector.extract_strided_slice %557 {offsets = [16, 0], sizes = [8, 4], strides = [1, 1]} : vector<96x4xf32> to vector<8x4xf32>
    %593 = vector.extract_strided_slice %557 {offsets = [48, 0], sizes = [8, 4], strides = [1, 1]} : vector<96x4xf32> to vector<8x4xf32>
    %594 = vector.extract_strided_slice %557 {offsets = [80, 0], sizes = [8, 4], strides = [1, 1]} : vector<96x4xf32> to vector<8x4xf32>
    %cst_262 = arith.constant dense<0.000000e+00> : vector<4x4xf32>
    %595 = tpu.matmul %592, %593, %cst_262 {dimension_numbers = #tpu.dot_dimension_numbers<[0], [0], [1], [1], [0, 1, 1, 1], [], []>} : vector<8x4xf32>, vector<8x4xf32>, vector<4x4xf32> -> vector<4x4xf32>
    %596 = vector.broadcast %3 : vector<1x4xf32> to vector<4x4xf32>
    %597 = arith.addf %595, %596 : vector<4x4xf32>
    %cst_263 = arith.constant dense<0xFF800000> : vector<4xf32>
    %598 = vector.multi_reduction <maximumf>, %597, %cst_263 [1] : vector<4x4xf32> to vector<4xf32>
    %599 = vector.shape_cast %598 : vector<4xf32> to vector<4x1xf32>
    %600 = vector.broadcast %599 : vector<4x1xf32> to vector<4x4xf32>
    %601 = arith.subf %597, %600 : vector<4x4xf32>
    %602 = math.exp %601 : vector<4x4xf32>
    %cst_264 = arith.constant dense<0.000000e+00> : vector<4xf32>
    %603 = vector.multi_reduction <add>, %602, %cst_264 [1] : vector<4x4xf32> to vector<4xf32>
    %604 = vector.shape_cast %603 : vector<4xf32> to vector<4x1xf32>
    %605 = tpu.reciprocal %604 {approx = true} : vector<4x1xf32> -> vector<4x1xf32>
    %606 = vector.broadcast %605 : vector<4x1xf32> to vector<4x4xf32>
    %607 = arith.mulf %602, %606 : vector<4x4xf32>
    %cst_265 = arith.constant dense<0.000000e+00> : vector<8x4xf32>
    %608 = tpu.matmul %594, %607, %cst_265 {dimension_numbers = #tpu.dot_dimension_numbers<[1], [1], [0], [0], [0, 0, 1, 0], [], []>} : vector<8x4xf32>, vector<4x4xf32>, vector<8x4xf32> -> vector<8x4xf32>
    %609 = vector.extract_strided_slice %557 {offsets = [24, 0], sizes = [8, 4], strides = [1, 1]} : vector<96x4xf32> to vector<8x4xf32>
    %610 = vector.extract_strided_slice %557 {offsets = [56, 0], sizes = [8, 4], strides = [1, 1]} : vector<96x4xf32> to vector<8x4xf32>
    %611 = vector.extract_strided_slice %557 {offsets = [88, 0], sizes = [8, 4], strides = [1, 1]} : vector<96x4xf32> to vector<8x4xf32>
    %cst_266 = arith.constant dense<0.000000e+00> : vector<4x4xf32>
    %612 = tpu.matmul %609, %610, %cst_266 {dimension_numbers = #tpu.dot_dimension_numbers<[0], [0], [1], [1], [0, 1, 1, 1], [], []>} : vector<8x4xf32>, vector<8x4xf32>, vector<4x4xf32> -> vector<4x4xf32>
    %613 = vector.broadcast %3 : vector<1x4xf32> to vector<4x4xf32>
    %614 = arith.addf %612, %613 : vector<4x4xf32>
    %cst_267 = arith.constant dense<0xFF800000> : vector<4xf32>
    %615 = vector.multi_reduction <maximumf>, %614, %cst_267 [1] : vector<4x4xf32> to vector<4xf32>
    %616 = vector.shape_cast %615 : vector<4xf32> to vector<4x1xf32>
    %617 = vector.broadcast %616 : vector<4x1xf32> to vector<4x4xf32>
    %618 = arith.subf %614, %617 : vector<4x4xf32>
    %619 = math.exp %618 : vector<4x4xf32>
    %cst_268 = arith.constant dense<0.000000e+00> : vector<4xf32>
    %620 = vector.multi_reduction <add>, %619, %cst_268 [1] : vector<4x4xf32> to vector<4xf32>
    %621 = vector.shape_cast %620 : vector<4xf32> to vector<4x1xf32>
    %622 = tpu.reciprocal %621 {approx = true} : vector<4x1xf32> -> vector<4x1xf32>
    %623 = vector.broadcast %622 : vector<4x1xf32> to vector<4x4xf32>
    %624 = arith.mulf %619, %623 : vector<4x4xf32>
    %cst_269 = arith.constant dense<0.000000e+00> : vector<8x4xf32>
    %625 = tpu.matmul %611, %624, %cst_269 {dimension_numbers = #tpu.dot_dimension_numbers<[1], [1], [0], [0], [0, 0, 1, 0], [], []>} : vector<8x4xf32>, vector<4x4xf32>, vector<8x4xf32> -> vector<8x4xf32>
    %626 = tpu.concatenate %574, %591, %608, %625 in 0 : vector<8x4xf32>, vector<8x4xf32>, vector<8x4xf32>, vector<8x4xf32> -> vector<32x4xf32>
    %cst_270 = arith.constant dense<0.000000e+00> : vector<4x32xf32>
    %627 = tpu.matmul %626, %552, %cst_270 {dimension_numbers = #tpu.dot_dimension_numbers<[0], [0], [1], [1], [0, 1, 1, 1], [], []>} : vector<32x4xf32>, vector<32x32xf32>, vector<4x32xf32> -> vector<4x32xf32>
    %628 = vector.broadcast %554 : vector<1x32xf32> to vector<4x32xf32>
    %629 = arith.addf %627, %628 : vector<4x32xf32>
    %630 = arith.addf %629, %518 : vector<4x32xf32>
    %c1_271 = arith.constant 1 : index
    %c0_272 = arith.constant 0 : index
    %c0_273 = arith.constant 0 : index
    %631 = vector.load %arg27[%c1_271, %c0_272, %c0_273] : memref<2x1x32xf32, #tpu.memory_space<vmem>>, vector<1x1x32xf32>
    %632 = vector.shape_cast %631 : vector<1x1x32xf32> to vector<1x32xf32>
    %c1_274 = arith.constant 1 : index
    %c0_275 = arith.constant 0 : index
    %c0_276 = arith.constant 0 : index
    %633 = vector.load %arg28[%c1_274, %c0_275, %c0_276] : memref<2x1x32xf32, #tpu.memory_space<vmem>>, vector<1x1x32xf32>
    %634 = vector.shape_cast %633 : vector<1x1x32xf32> to vector<1x32xf32>
    %cst_277 = arith.constant dense<0.000000e+00> : vector<4xf32>
    %635 = vector.multi_reduction <add>, %630, %cst_277 [1] : vector<4x32xf32> to vector<4xf32>
    %636 = vector.shape_cast %635 : vector<4xf32> to vector<4x1xf32>
    %cst_278 = arith.constant 3.200000e+01 : f32
    %637 = vector.broadcast %cst_278 : f32 to vector<4x1xf32>
    %638 = arith.divf %636, %637 : vector<4x1xf32>
    %639 = arith.mulf %630, %630 : vector<4x32xf32>
    %cst_279 = arith.constant dense<0.000000e+00> : vector<4xf32>
    %640 = vector.multi_reduction <add>, %639, %cst_279 [1] : vector<4x32xf32> to vector<4xf32>
    %641 = vector.shape_cast %640 : vector<4xf32> to vector<4x1xf32>
    %cst_280 = arith.constant 3.200000e+01 : f32
    %642 = vector.broadcast %cst_280 : f32 to vector<4x1xf32>
    %643 = arith.divf %641, %642 : vector<4x1xf32>
    %644 = arith.mulf %638, %638 : vector<4x1xf32>
    %645 = arith.subf %643, %644 : vector<4x1xf32>
    %cst_281 = arith.constant 0.000000e+00 : f32
    %646 = vector.broadcast %cst_281 : f32 to vector<4x1xf32>
    %647 = arith.maximumf %645, %646 : vector<4x1xf32>
    %648 = vector.broadcast %638 : vector<4x1xf32> to vector<4x32xf32>
    %649 = arith.subf %630, %648 : vector<4x32xf32>
    %cst_282 = arith.constant 9.99999997E-7 : f32
    %650 = vector.broadcast %cst_282 : f32 to vector<4x1xf32>
    %651 = arith.addf %647, %650 : vector<4x1xf32>
    %652 = math.rsqrt %651 : vector<4x1xf32>
    %653 = vector.broadcast %652 : vector<4x1xf32> to vector<4x32xf32>
    %654 = arith.mulf %649, %653 : vector<4x32xf32>
    %655 = vector.broadcast %632 : vector<1x32xf32> to vector<4x32xf32>
    %656 = arith.mulf %654, %655 : vector<4x32xf32>
    %657 = vector.broadcast %634 : vector<1x32xf32> to vector<4x32xf32>
    %658 = arith.addf %656, %657 : vector<4x32xf32>
    %c1_283 = arith.constant 1 : index
    %c0_284 = arith.constant 0 : index
    %c0_285 = arith.constant 0 : index
    %659 = vector.load %arg29[%c1_283, %c0_284, %c0_285] : memref<2x32x64xf32, #tpu.memory_space<vmem>>, vector<1x32x64xf32>
    %660 = vector.shape_cast %659 : vector<1x32x64xf32> to vector<32x64xf32>
    %cst_286 = arith.constant dense<0.000000e+00> : vector<4x64xf32>
    %661 = tpu.matmul %658, %660, %cst_286 {dimension_numbers = #tpu.dot_dimension_numbers<[1], [0], [0], [1], [0, 0, 1, 1], [], []>} : vector<4x32xf32>, vector<32x64xf32>, vector<4x64xf32> -> vector<4x64xf32>
    %c1_287 = arith.constant 1 : index
    %c0_288 = arith.constant 0 : index
    %c0_289 = arith.constant 0 : index
    %662 = vector.load %arg30[%c1_287, %c0_288, %c0_289] : memref<2x1x64xf32, #tpu.memory_space<vmem>>, vector<1x1x64xf32>
    %663 = vector.shape_cast %662 : vector<1x1x64xf32> to vector<1x64xf32>
    %664 = vector.broadcast %663 : vector<1x64xf32> to vector<4x64xf32>
    %665 = arith.addf %661, %664 : vector<4x64xf32>
    %666 = arith.mulf %665, %665 : vector<4x64xf32>
    %667 = arith.mulf %665, %666 : vector<4x64xf32>
    %cst_290 = arith.constant 4.471500e-02 : f32
    %668 = vector.broadcast %cst_290 : f32 to vector<4x64xf32>
    %669 = arith.mulf %668, %667 : vector<4x64xf32>
    %670 = arith.addf %665, %669 : vector<4x64xf32>
    %cst_291 = arith.constant 0.797884583 : f32
    %671 = vector.broadcast %cst_291 : f32 to vector<4x64xf32>
    %672 = arith.mulf %671, %670 : vector<4x64xf32>
    %673 = math.tanh %672 : vector<4x64xf32>
    %cst_292 = arith.constant 1.000000e+00 : f32
    %674 = vector.broadcast %cst_292 : f32 to vector<4x64xf32>
    %675 = arith.addf %674, %673 : vector<4x64xf32>
    %cst_293 = arith.constant 5.000000e-01 : f32
    %676 = vector.broadcast %cst_293 : f32 to vector<4x64xf32>
    %677 = arith.mulf %676, %675 : vector<4x64xf32>
    %678 = arith.mulf %665, %677 : vector<4x64xf32>
    %c1_294 = arith.constant 1 : index
    %c0_295 = arith.constant 0 : index
    %c0_296 = arith.constant 0 : index
    %679 = vector.load %arg31[%c1_294, %c0_295, %c0_296] : memref<2x64x32xf32, #tpu.memory_space<vmem>>, vector<1x64x32xf32>
    %680 = vector.shape_cast %679 : vector<1x64x32xf32> to vector<64x32xf32>
    %cst_297 = arith.constant dense<0.000000e+00> : vector<4x32xf32>
    %681 = tpu.matmul %678, %680, %cst_297 {dimension_numbers = #tpu.dot_dimension_numbers<[1], [0], [0], [1], [0, 0, 1, 1], [], []>} : vector<4x64xf32>, vector<64x32xf32>, vector<4x32xf32> -> vector<4x32xf32>
    %c1_298 = arith.constant 1 : index
    %c0_299 = arith.constant 0 : index
    %c0_300 = arith.constant 0 : index
    %682 = vector.load %arg32[%c1_298, %c0_299, %c0_300] : memref<2x1x32xf32, #tpu.memory_space<vmem>>, vector<1x1x32xf32>
    %683 = vector.shape_cast %682 : vector<1x1x32xf32> to vector<1x32xf32>
    %684 = vector.broadcast %683 : vector<1x32xf32> to vector<4x32xf32>
    %685 = arith.addf %681, %684 : vector<4x32xf32>
    %686 = arith.addf %685, %630 : vector<4x32xf32>
    %c0_301 = arith.constant 0 : index
    %c0_302 = arith.constant 0 : index
    %687 = vector.load %arg33[%c0_301, %c0_302] : memref<1x32xf32, #tpu.memory_space<vmem>>, vector<1x32xf32>
    %c0_303 = arith.constant 0 : index
    %c0_304 = arith.constant 0 : index
    %688 = vector.load %arg34[%c0_303, %c0_304] : memref<1x32xf32, #tpu.memory_space<vmem>>, vector<1x32xf32>
    %cst_305 = arith.constant dense<0.000000e+00> : vector<4xf32>
    %689 = vector.multi_reduction <add>, %686, %cst_305 [1] : vector<4x32xf32> to vector<4xf32>
    %690 = vector.shape_cast %689 : vector<4xf32> to vector<4x1xf32>
    %cst_306 = arith.constant 3.200000e+01 : f32
    %691 = vector.broadcast %cst_306 : f32 to vector<4x1xf32>
    %692 = arith.divf %690, %691 : vector<4x1xf32>
    %693 = arith.mulf %686, %686 : vector<4x32xf32>
    %cst_307 = arith.constant dense<0.000000e+00> : vector<4xf32>
    %694 = vector.multi_reduction <add>, %693, %cst_307 [1] : vector<4x32xf32> to vector<4xf32>
    %695 = vector.shape_cast %694 : vector<4xf32> to vector<4x1xf32>
    %cst_308 = arith.constant 3.200000e+01 : f32
    %696 = vector.broadcast %cst_308 : f32 to vector<4x1xf32>
    %697 = arith.divf %695, %696 : vector<4x1xf32>
    %698 = arith.mulf %692, %692 : vector<4x1xf32>
    %699 = arith.subf %697, %698 : vector<4x1xf32>
    %cst_309 = arith.constant 0.000000e+00 : f32
    %700 = vector.broadcast %cst_309 : f32 to vector<4x1xf32>
    %701 = arith.maximumf %699, %700 : vector<4x1xf32>
    %702 = vector.broadcast %692 : vector<4x1xf32> to vector<4x32xf32>
    %703 = arith.subf %686, %702 : vector<4x32xf32>
    %cst_310 = arith.constant 9.99999997E-7 : f32
    %704 = vector.broadcast %cst_310 : f32 to vector<4x1xf32>
    %705 = arith.addf %701, %704 : vector<4x1xf32>
    %706 = math.rsqrt %705 : vector<4x1xf32>
    %707 = vector.broadcast %706 : vector<4x1xf32> to vector<4x32xf32>
    %708 = arith.mulf %703, %707 : vector<4x32xf32>
    %709 = vector.broadcast %687 : vector<1x32xf32> to vector<4x32xf32>
    %710 = arith.mulf %708, %709 : vector<4x32xf32>
    %711 = vector.broadcast %688 : vector<1x32xf32> to vector<4x32xf32>
    %712 = arith.addf %710, %711 : vector<4x32xf32>
    %c0_311 = arith.constant 0 : index
    %c0_312 = arith.constant 0 : index
    %713 = vector.load %arg35[%c0_311, %c0_312] : memref<1x32xf32, #tpu.memory_space<vmem>>, vector<1x32xf32>
    %714 = vector.broadcast %713 : vector<1x32xf32> to vector<4x32xf32>
    %715 = arith.mulf %712, %714 : vector<4x32xf32>
    %cst_313 = arith.constant dense<0.000000e+00> : vector<4xf32>
    %716 = vector.multi_reduction <add>, %715, %cst_313 [1] : vector<4x32xf32> to vector<4xf32>
    %717 = vector.shape_cast %716 : vector<4xf32> to vector<4x1xf32>
    %c0_314 = arith.constant 0 : index
    %c0_315 = arith.constant 0 : index
    %718 = vector.load %arg36[%c0_314, %c0_315] : memref<1x1xf32, #tpu.memory_space<vmem>>, vector<1x1xf32>
    %719 = vector.broadcast %718 : vector<1x1xf32> to vector<4x1xf32>
    %720 = arith.addf %717, %719 : vector<4x1xf32>
    %721 = arith.negf %720 : vector<4x1xf32>
    %722 = math.exp %721 : vector<4x1xf32>
    %cst_316 = arith.constant 1.000000e+00 : f32
    %723 = vector.broadcast %cst_316 : f32 to vector<4x1xf32>
    %724 = arith.addf %723, %722 : vector<4x1xf32>
    %725 = arith.divf %723, %724 : vector<4x1xf32>
    %726 = arith.mulf %725, %5 : vector<4x1xf32>
    %727 = vector.shape_cast %726 : vector<4x1xf32> to vector<4x1xf32>
    %728 = vector.broadcast %727 : vector<4x1xf32> to vector<4x128xf32>
    %c0_317 = arith.constant 0 : index
    %c0_318 = arith.constant 0 : index
    %c0_319 = arith.constant 0 : index
    %729 = vector.load %arg37[%c0_317, %c0_318, %c0_319] : memref<1x4x128xf32, #tpu.memory_space<vmem>>, vector<1x4x128xf32>
    %730 = vector.shape_cast %729 : vector<1x4x128xf32> to vector<4x128xf32>
    %731 = vector.shape_cast %728 : vector<4x128xf32> to vector<1x4x128xf32>
    tpu.vector_store %arg37[%c0_317, %c0_318, %c0_319], %731 {strides = array<i32>} : memref<1x4x128xf32, #tpu.memory_space<vmem>>, vector<1x4x128xf32>,
    return
  }
  func.func @transform_0(%arg0: i32) -> (i32, i32, i32) {
    %c0_i32 = arith.constant 0 : i32
    %c0_i32_0 = arith.constant 0 : i32
    %c0_i32_1 = arith.constant 0 : i32
    return %arg0, %c0_i32, %c0_i32_0 : i32, i32, i32
  }
  func.func @transform_1(%arg0: i32) -> (i32, i32, i32) {
    %c0_i32 = arith.constant 0 : i32
    %c0_i32_0 = arith.constant 0 : i32
    %c0_i32_1 = arith.constant 0 : i32
    return %arg0, %c0_i32, %c0_i32_0 : i32, i32, i32
  }
  func.func @transform_2(%arg0: i32) -> (i32, i32, i32) {
    %c0_i32 = arith.constant 0 : i32
    %c0_i32_0 = arith.constant 0 : i32
    %c0_i32_1 = arith.constant 0 : i32
    return %arg0, %c0_i32, %c0_i32_0 : i32, i32, i32
  }
  func.func @transform_3(%arg0: i32) -> (i32, i32, i32) {
    %c0_i32 = arith.constant 0 : i32
    %c0_i32_0 = arith.constant 0 : i32
    %c0_i32_1 = arith.constant 0 : i32
    return %arg0, %c0_i32, %c0_i32_0 : i32, i32, i32
  }
  func.func @transform_4(%arg0: i32) -> (i32, i32, i32) {
    %c0_i32 = arith.constant 0 : i32
    %c0_i32_0 = arith.constant 0 : i32
    %c0_i32_1 = arith.constant 0 : i32
    return %arg0, %c0_i32, %c0_i32_0 : i32, i32, i32
  }
  func.func @transform_5(%arg0: i32) -> (i32, i32) {
    %c0_i32 = arith.constant 0 : i32
    %c0_i32_0 = arith.constant 0 : i32
    %c0_i32_1 = arith.constant 0 : i32
    return %c0_i32, %c0_i32_0 : i32, i32
  }
  func.func @transform_6(%arg0: i32) -> (i32, i32) {
    %c0_i32 = arith.constant 0 : i32
    %c0_i32_0 = arith.constant 0 : i32
    %c0_i32_1 = arith.constant 0 : i32
    return %c0_i32, %c0_i32_0 : i32, i32
  }
  func.func @transform_7(%arg0: i32) -> (i32, i32) {
    %c0_i32 = arith.constant 0 : i32
    %c0_i32_0 = arith.constant 0 : i32
    %c0_i32_1 = arith.constant 0 : i32
    return %c0_i32, %c0_i32_0 : i32, i32
  }
  func.func @transform_8(%arg0: i32) -> (i32, i32, i32) {
    %c0_i32 = arith.constant 0 : i32
    %c0_i32_0 = arith.constant 0 : i32
    %c0_i32_1 = arith.constant 0 : i32
    %c0_i32_2 = arith.constant 0 : i32
    return %c0_i32, %c0_i32_0, %c0_i32_1 : i32, i32, i32
  }
  func.func @transform_9(%arg0: i32) -> (i32, i32, i32) {
    %c0_i32 = arith.constant 0 : i32
    %c0_i32_0 = arith.constant 0 : i32
    %c0_i32_1 = arith.constant 0 : i32
    %c0_i32_2 = arith.constant 0 : i32
    return %c0_i32, %c0_i32_0, %c0_i32_1 : i32, i32, i32
  }
  func.func @transform_10(%arg0: i32) -> (i32, i32, i32) {
    %c0_i32 = arith.constant 0 : i32
    %c0_i32_0 = arith.constant 0 : i32
    %c0_i32_1 = arith.constant 0 : i32
    %c0_i32_2 = arith.constant 0 : i32
    return %c0_i32, %c0_i32_0, %c0_i32_1 : i32, i32, i32
  }
  func.func @transform_11(%arg0: i32) -> (i32, i32, i32) {
    %c0_i32 = arith.constant 0 : i32
    %c0_i32_0 = arith.constant 0 : i32
    %c0_i32_1 = arith.constant 0 : i32
    %c0_i32_2 = arith.constant 0 : i32
    return %c0_i32, %c0_i32_0, %c0_i32_1 : i32, i32, i32
  }
  func.func @transform_12(%arg0: i32) -> (i32, i32, i32) {
    %c0_i32 = arith.constant 0 : i32
    %c0_i32_0 = arith.constant 0 : i32
    %c0_i32_1 = arith.constant 0 : i32
    %c0_i32_2 = arith.constant 0 : i32
    return %c0_i32, %c0_i32_0, %c0_i32_1 : i32, i32, i32
  }
  func.func @transform_13(%arg0: i32) -> (i32, i32, i32) {
    %c0_i32 = arith.constant 0 : i32
    %c0_i32_0 = arith.constant 0 : i32
    %c0_i32_1 = arith.constant 0 : i32
    %c0_i32_2 = arith.constant 0 : i32
    return %c0_i32, %c0_i32_0, %c0_i32_1 : i32, i32, i32
  }
  func.func @transform_14(%arg0: i32) -> (i32, i32, i32) {
    %c0_i32 = arith.constant 0 : i32
    %c0_i32_0 = arith.constant 0 : i32
    %c0_i32_1 = arith.constant 0 : i32
    %c0_i32_2 = arith.constant 0 : i32
    return %c0_i32, %c0_i32_0, %c0_i32_1 : i32, i32, i32
  }
  func.func @transform_15(%arg0: i32) -> (i32, i32, i32) {
    %c0_i32 = arith.constant 0 : i32
    %c0_i32_0 = arith.constant 0 : i32
    %c0_i32_1 = arith.constant 0 : i32
    %c0_i32_2 = arith.constant 0 : i32
    return %c0_i32, %c0_i32_0, %c0_i32_1 : i32, i32, i32
  }
  func.func @transform_16(%arg0: i32) -> (i32, i32, i32) {
    %c0_i32 = arith.constant 0 : i32
    %c0_i32_0 = arith.constant 0 : i32
    %c0_i32_1 = arith.constant 0 : i32
    %c0_i32_2 = arith.constant 0 : i32
    return %c0_i32, %c0_i32_0, %c0_i32_1 : i32, i32, i32
  }
  func.func @transform_17(%arg0: i32) -> (i32, i32, i32) {
    %c0_i32 = arith.constant 0 : i32
    %c0_i32_0 = arith.constant 0 : i32
    %c0_i32_1 = arith.constant 0 : i32
    %c0_i32_2 = arith.constant 0 : i32
    return %c0_i32, %c0_i32_0, %c0_i32_1 : i32, i32, i32
  }
  func.func @transform_18(%arg0: i32) -> (i32, i32, i32) {
    %c0_i32 = arith.constant 0 : i32
    %c0_i32_0 = arith.constant 0 : i32
    %c0_i32_1 = arith.constant 0 : i32
    %c0_i32_2 = arith.constant 0 : i32
    return %c0_i32, %c0_i32_0, %c0_i32_1 : i32, i32, i32
  }
  func.func @transform_19(%arg0: i32) -> (i32, i32, i32) {
    %c0_i32 = arith.constant 0 : i32
    %c0_i32_0 = arith.constant 0 : i32
    %c0_i32_1 = arith.constant 0 : i32
    %c0_i32_2 = arith.constant 0 : i32
    return %c0_i32, %c0_i32_0, %c0_i32_1 : i32, i32, i32
  }
  func.func @transform_20(%arg0: i32) -> (i32, i32, i32) {
    %c0_i32 = arith.constant 0 : i32
    %c0_i32_0 = arith.constant 0 : i32
    %c0_i32_1 = arith.constant 0 : i32
    %c0_i32_2 = arith.constant 0 : i32
    return %c0_i32, %c0_i32_0, %c0_i32_1 : i32, i32, i32
  }
  func.func @transform_21(%arg0: i32) -> (i32, i32, i32) {
    %c0_i32 = arith.constant 0 : i32
    %c0_i32_0 = arith.constant 0 : i32
    %c0_i32_1 = arith.constant 0 : i32
    %c0_i32_2 = arith.constant 0 : i32
    return %c0_i32, %c0_i32_0, %c0_i32_1 : i32, i32, i32
  }
  func.func @transform_22(%arg0: i32) -> (i32, i32, i32) {
    %c0_i32 = arith.constant 0 : i32
    %c0_i32_0 = arith.constant 0 : i32
    %c0_i32_1 = arith.constant 0 : i32
    %c0_i32_2 = arith.constant 0 : i32
    return %c0_i32, %c0_i32_0, %c0_i32_1 : i32, i32, i32
  }
  func.func @transform_23(%arg0: i32) -> (i32, i32, i32) {
    %c0_i32 = arith.constant 0 : i32
    %c0_i32_0 = arith.constant 0 : i32
    %c0_i32_1 = arith.constant 0 : i32
    %c0_i32_2 = arith.constant 0 : i32
    return %c0_i32, %c0_i32_0, %c0_i32_1 : i32, i32, i32
  }
  func.func @transform_24(%arg0: i32) -> (i32, i32, i32) {
    %c0_i32 = arith.constant 0 : i32
    %c0_i32_0 = arith.constant 0 : i32
    %c0_i32_1 = arith.constant 0 : i32
    %c0_i32_2 = arith.constant 0 : i32
    return %c0_i32, %c0_i32_0, %c0_i32_1 : i32, i32, i32
  }
  func.func @transform_25(%arg0: i32) -> (i32, i32, i32) {
    %c0_i32 = arith.constant 0 : i32
    %c0_i32_0 = arith.constant 0 : i32
    %c0_i32_1 = arith.constant 0 : i32
    %c0_i32_2 = arith.constant 0 : i32
    return %c0_i32, %c0_i32_0, %c0_i32_1 : i32, i32, i32
  }
  func.func @transform_26(%arg0: i32) -> (i32, i32, i32) {
    %c0_i32 = arith.constant 0 : i32
    %c0_i32_0 = arith.constant 0 : i32
    %c0_i32_1 = arith.constant 0 : i32
    %c0_i32_2 = arith.constant 0 : i32
    return %c0_i32, %c0_i32_0, %c0_i32_1 : i32, i32, i32
  }
  func.func @transform_27(%arg0: i32) -> (i32, i32, i32) {
    %c0_i32 = arith.constant 0 : i32
    %c0_i32_0 = arith.constant 0 : i32
    %c0_i32_1 = arith.constant 0 : i32
    %c0_i32_2 = arith.constant 0 : i32
    return %c0_i32, %c0_i32_0, %c0_i32_1 : i32, i32, i32
  }
  func.func @transform_28(%arg0: i32) -> (i32, i32, i32) {
    %c0_i32 = arith.constant 0 : i32
    %c0_i32_0 = arith.constant 0 : i32
    %c0_i32_1 = arith.constant 0 : i32
    %c0_i32_2 = arith.constant 0 : i32
    return %c0_i32, %c0_i32_0, %c0_i32_1 : i32, i32, i32
  }
  func.func @transform_29(%arg0: i32) -> (i32, i32, i32) {
    %c0_i32 = arith.constant 0 : i32
    %c0_i32_0 = arith.constant 0 : i32
    %c0_i32_1 = arith.constant 0 : i32
    %c0_i32_2 = arith.constant 0 : i32
    return %c0_i32, %c0_i32_0, %c0_i32_1 : i32, i32, i32
  }
  func.func @transform_30(%arg0: i32) -> (i32, i32, i32) {
    %c0_i32 = arith.constant 0 : i32
    %c0_i32_0 = arith.constant 0 : i32
    %c0_i32_1 = arith.constant 0 : i32
    %c0_i32_2 = arith.constant 0 : i32
    return %c0_i32, %c0_i32_0, %c0_i32_1 : i32, i32, i32
  }
  func.func @transform_31(%arg0: i32) -> (i32, i32, i32) {
    %c0_i32 = arith.constant 0 : i32
    %c0_i32_0 = arith.constant 0 : i32
    %c0_i32_1 = arith.constant 0 : i32
    %c0_i32_2 = arith.constant 0 : i32
    return %c0_i32, %c0_i32_0, %c0_i32_1 : i32, i32, i32
  }
  func.func @transform_32(%arg0: i32) -> (i32, i32) {
    %c0_i32 = arith.constant 0 : i32
    %c0_i32_0 = arith.constant 0 : i32
    %c0_i32_1 = arith.constant 0 : i32
    return %c0_i32, %c0_i32_0 : i32, i32
  }
  func.func @transform_33(%arg0: i32) -> (i32, i32) {
    %c0_i32 = arith.constant 0 : i32
    %c0_i32_0 = arith.constant 0 : i32
    %c0_i32_1 = arith.constant 0 : i32
    return %c0_i32, %c0_i32_0 : i32, i32
  }
  func.func @transform_34(%arg0: i32) -> (i32, i32) {
    %c0_i32 = arith.constant 0 : i32
    %c0_i32_0 = arith.constant 0 : i32
    %c0_i32_1 = arith.constant 0 : i32
    return %c0_i32, %c0_i32_0 : i32, i32
  }
  func.func @transform_35(%arg0: i32) -> (i32, i32) {
    %c0_i32 = arith.constant 0 : i32
    %c0_i32_0 = arith.constant 0 : i32
    %c0_i32_1 = arith.constant 0 : i32
    return %c0_i32, %c0_i32_0 : i32, i32
  }
  func.func @transform_36(%arg0: i32) -> (i32, i32, i32) {
    %c0_i32 = arith.constant 0 : i32
    %c0_i32_0 = arith.constant 0 : i32
    %c0_i32_1 = arith.constant 0 : i32
    return %arg0, %c0_i32, %c0_i32_0 : i32, i32, i32
  }
}

</mosaic_0001>

<bundles_post_ra>
// kernel: ext_summarizer_forward.1
= control target key start
LH: loop header
LB: loop body
LE: loop exit
PB: predicated region body
PF: predicated region fallthrough
CT: control target
= control target key end

     0   :  { %s5305_s6 = smov 1   ;;  %s5306_s10 = smov 2   ;;  %s6141_s0 = inlined_call_operand.smem [shape: u32[37], index: -1, kind: input, shape index: {}] }
   0x1   :  { %s5351_s5 = sld [smem:[%s6141_s0]]   ;;  %s5307_s14 = smov 3  }
   0x2   :  { %s5356_s9 = sld [smem:[%s6141_s0 + %s5305_s6]]   ;;  %s5308_s18 = smov 4  }
   0x3   :  { %s5361_s13 = sld [smem:[%s6141_s0 + %s5306_s10]]   ;;  %s5309_s22 = smov 5  }
   0x4   :  { %s5366_s17 = sld [smem:[%s6141_s0 + %s5307_s14]]   ;;  %s5310_s26 = smov 6  }
   0x5   :  { %s5371_s21 = sld [smem:[%s6141_s0 + %s5308_s18]]   ;;  %s5311_s30 = smov 7  }
   0x6   :  { %s5376_s25 = sld [smem:[%s6141_s0 + %s5309_s22]]   ;;  %s5312_s4 = smov 8  }
   0x7   :  { %6157 = sst [smem:[#allocation3_spill]] %s5351_s5  ;;  %s5313_s10 = smov 9  }
   0x8   :  { %s5381_s29 = sld [smem:[%s6141_s0 + %s5310_s26]]   ;;  %s5314_s15 = smov 10  }
   0x9   :  { %s5386_s3 = sld [smem:[%s6141_s0 + %s5311_s30]]   ;;  %s5315_s20 = smov 11  }
   0xa   :  { %6158 = sst [smem:[#allocation4_spill]] %s5366_s17  ;;  %s5316_s26 = smov 12  }
   0xb   :  { %6159 = sst [smem:[#allocation5_spill]] %s5371_s21  ;;  %s5317_s1 = smov 13  }
   0xc   :  { %6160 = sst [smem:[#allocation6_spill]] %s5376_s25  ;;  %s5318_s7 = smov 14  }
   0xd   :  { %s5391_s8 = sld [smem:[%s6141_s0 + %s5312_s4]]   ;;  %s5320_s22 = smov 16  }
   0xe   :  { %s5396_s14 = sld [smem:[%s6141_s0 + %s5313_s10]]   ;;  %s5321_s28 = smov 17  }
   0xf   :  { %6161 = sst [smem:[#allocation7_spill]] %s5386_s3  ;;  %s5340_s23 = smov 36  }
  0x10   :  { %s5401_s19 = sld [smem:[%s6141_s0 + %s5314_s15]]   ;;  %s5319_s15 = smov 15  }
  0x11   :  { %s5406_s24 = sld [smem:[%s6141_s0 + %s5315_s20]]  }
  0x12   :  { %s5411_s30 = sld [smem:[%s6141_s0 + %s5316_s26]]  }
  0x13   :  { %6162 = sst [smem:[#allocation8_spill]] %s5391_s8 }
  0x14   :  { %s5416_s6 = sld [smem:[%s6141_s0 + %s5317_s1]]  }
  0x15   :  { %s5421_s12 = sld [smem:[%s6141_s0 + %s5318_s7]]   ;;  %s5322_s7 = smov 18  }
  0x16   :  { %s5426_s20 = sld [smem:[%s6141_s0 + %s5319_s15]]   ;;  %s5323_s15 = smov 19  }
  0x17   :  { %s5431_s27 = sld [smem:[%s6141_s0 + %s5320_s22]]   ;;  %s5324_s22 = smov 20  }
  0x18   :  { %s5436_s4 = sld [smem:[%s6141_s0 + %s5321_s28]]   ;;  %s5325_s28 = smov 21  }
  0x19   :  { %s5441_s25 = sld [smem:[%s6141_s0 + %s5322_s7]]   ;;  %s5326_s7 = smov 22  }
  0x1a   :  { %6163 = sst [smem:[#allocation9_spill]] %s5416_s6 }
  0x1b   :  { %s5446_s17 = sld [smem:[%s6141_s0 + %s5323_s15]]   ;;  %s5327_s15 = smov 23  }
  0x1c   :  { %s5451_s21 = sld [smem:[%s6141_s0 + %s5324_s22]]   ;;  %s5328_s22 = smov 24  }
  0x1e   :  { %6164 = sst [smem:[#allocation10_spill]] %s5436_s4 }
  0x1f   :  { %6165 = sst [smem:[#allocation11_spill]] %s5441_s25 }
  0x20   :  { %s5456_s4 = sld [smem:[%s6141_s0 + %s5325_s28]]   ;;  %s5329_s28 = smov 25  }
  0x21   :  { %6166 = sst [smem:[#allocation12_spill]] %s5446_s17 }
  0x22   :  { %6167 = sst [smem:[#allocation13_spill]] %s5451_s21 }
  0x23   :  { %s5461_s25 = sld [smem:[%s6141_s0 + %s5326_s7]]   ;;  %s5330_s7 = smov 26  }
  0x24   :  { %s5466_s17 = sld [smem:[%s6141_s0 + %s5327_s15]]   ;;  %s5331_s15 = smov 27  }
  0x25   :  { %s5471_s21 = sld [smem:[%s6141_s0 + %s5328_s22]]   ;;  %s5332_s22 = smov 28  }
  0x26   :  { %6168 = sst [smem:[#allocation14_spill]] %s5456_s4 }
  0x27   :  { %s5476_s4 = sld [smem:[%s6141_s0 + %s5329_s28]]   ;;  %s5333_s28 = smov 29  }
  0x29   :  { %6169 = sst [smem:[#allocation15_spill]] %s5461_s25 }
  0x2a   :  { %6170 = sst [smem:[#allocation16_spill]] %s5466_s17 }
  0x2b   :  { %6171 = sst [smem:[#allocation17_spill]] %s5471_s21 }
  0x2c   :  { %s5481_s25 = sld [smem:[%s6141_s0 + %s5330_s7]]   ;;  %s5334_s7 = smov 30  }
  0x2d   :  { %6172 = sst [smem:[#allocation18_spill]] %s5476_s4 }
  0x2e   :  { %s5486_s17 = sld [smem:[%s6141_s0 + %s5331_s15]]   ;;  %s5335_s15 = smov 31  }
  0x2f   :  { %s5491_s21 = sld [smem:[%s6141_s0 + %s5332_s22]]   ;;  %s5336_s22 = smov 32  }
  0x30   :  { %s5496_s4 = sld [smem:[%s6141_s0 + %s5333_s28]]   ;;  %s5337_s28 = smov 33  }
  0x32   :  { %6173 = sst [smem:[#allocation19_spill]] %s5481_s25 }
  0x33   :  { %s5501_s25 = sld [smem:[%s6141_s0 + %s5334_s7]]   ;;  %s5338_s7 = smov 34  }
  0x34   :  { %6174 = sst [smem:[#allocation20_spill]] %s5486_s17 }
  0x35   :  { %6175 = sst [smem:[#allocation21_spill]] %s5491_s21 }
  0x36   :  { %6176 = sst [smem:[#allocation22_spill]] %s5496_s4 }
  0x37   :  { %s5506_s17 = sld [smem:[%s6141_s0 + %s5335_s15]]   ;;  %s5339_s15 = smov 35  }
  0x38   :  { %s5511_s21 = sld [smem:[%s6141_s0 + %s5336_s22]]  }
  0x39   :  { %6177 = sst [smem:[#allocation23_spill]] %s5501_s25 }
  0x3a   :  { %s5516_s4 = sld [smem:[%s6141_s0 + %s5337_s28]]   ;;  %s5531_s28 = smov 0  }
  0x3b   :  { %s5521_s25 = sld [smem:[%s6141_s0 + %s5338_s7]]  }
  0x3d   :  { %6178 = sst [smem:[#allocation24_spill]] %s5506_s17 }
  0x3e   :  { %6179 = sst [smem:[#allocation25_spill]] %s5511_s21 }
  0x3f   :  { %s4821_s17 = sld [smem:[%s6141_s0 + %s5339_s15]]  }
  0x40   :  { %s5529_s21 = sld [smem:[%s6141_s0 + %s5340_s23]]  }
  0x45   :  { %v78_v0 = vstv %s4821_s17 }
  0x46   :  { %79 = vst [vmem:[#allocation2] sm:$0x1] %v78_v0 }
  0x47 LB: > { %s6180_s8 = sld [smem:[#allocation8_spill]]  ;;  %s4823_s1 = sadd.s32 4294967295, %s5303_s28   ;;  %s5303_s28 = sphi %s5531_s28, %s85_s28  }
  0x48   : > { %s6181_s6 = sld [smem:[#allocation9_spill]]  ;;  %p4827_p0 = scmp.ge.s32.totalorder %s5303_s28, 1 }
  0x49   : > { %p1035_p1 = scmp.lt.s32.totalorder %s5303_s28, 3 }
  0x4b   : > { %p1036_p2 = pnand %p4827_p0, %p1035_p1 }
  0x4c   : > { %p1138_p3 = scmp.lt.s32.totalorder (!%p1036_p2), %s4823_s1, 1  ;;  %s6182_s5 = sld [smem:[#allocation3_spill]] (!%p1036_p2) }
  0x4d   : > { %1039 = sbr.rel (%p1036_p2) target bundleno = 9774 (0x262e), region = 164  ;;  %s6183_s3 = sld [smem:[#allocation7_spill]] (!%p1036_p2) }
  0x4e   : > { %s6184_s10 = sld [smem:[#allocation10_spill]] (!%p1036_p2) }
  0x4f   : > { %s6185_s11 = sld [smem:[#allocation11_spill]] (!%p1036_p2) }
  0x50   : > { %s6186_s15 = sld [smem:[#allocation12_spill]] (!%p1036_p2) }
  0x51   : > { %s6187_s16 = sld [smem:[#allocation14_spill]] (!%p1036_p2) }
  0x52   : > { %s6204_s1 = smov (!%p1138_p3, %s4823_s1), 1  ;;  %vm1168_vm0 = vcmask 261120   ;;  %v5341_v9 = vmov 32.0   ;;  %v1248_v35 = vld [vmem:[%s5396_s14] sm:$0xff]  ;;  %v5342_v37 = vmov 0   ;;  %v1249_v45 = vld [vmem:[%s5396_s14 + $0x8] sm:$0xff] }
  0x53   : > { %s5067_s0 = sshll.u32 %s6204_s1, 4  ;;  %s5544_s17 = scalar_lea.vmem %s5356_s9, %s6204_s1  ;;  %5153 = vrcp.f32 %v5341_v9  ;;  %5117 = vset.pattern.permute.xlu1 %v5342_v37  ;;  %5116 = vset.pattern.permute.xlu2 %v5342_v37  ;;  %v5121_v47 = vld [vmem:[%s5381_s29] ss:$0 sm:$0xff]  ;;  %v1253_v58 = vld [vmem:[%s5396_s14 + $0x28] sm:$0xff]  ;;  %v1250_v61 = vld [vmem:[%s5396_s14 + $0x10] sm:$0xff]  ;;  %vm1455_vm8 = vcmask 64512  }
  0x54   : > { %s1142_s2 = scalar_lea.vmem %s6182_s5, %s5067_s0  ;;  %s1148_s7 = scalar_lea.vmem %s5361_s13, %s6204_s1  ;;  %1272 = vperm.xlu2 %5116, %v1249_v45   ;;  %v5122_v52 = vld [vmem:[%s6183_s3] ss:$0 sm:$0xff]  ;;  %v1237_v62 = vld [vmem:[%s6180_s8 + $0x8] sm:$0xff]  ;;  %v1251_v63 = vld [vmem:[%s5396_s14 + $0x18] sm:$0xff]  ;;  %vm1485_vm9 = vcmask 130048  }
  0x55   : > { %v5549_v1 = vld [vmem:[%s1142_s2 + $0x8] sm:$0xff]  ;;  %v5553_v3 = vld [vmem:[%s1142_s2] sm:$0xff]  ;;  %v1238_v0 = vld [vmem:[%s6180_s8 + $0x10] sm:$0xff]  ;;  %s6188_s18 = sld [smem:[#allocation5_spill]]  ;;  %s5894_s23 = sshll.u32 %s6204_s1, 2 }
  0x56   : > { %v1172_v2 = vsel %vm1168_vm0, %v5549_v1, 0.0  ;;  %v1185_v4 = vmul.f32 %v5549_v1, %v5549_v1  ;;  %v1169_v5 = vsel %vm1168_vm0, %v5553_v3, 0.0  ;;  %v1184_v6 = vmul.f32 %v5553_v3, %v5553_v3  ;;  %v1236_v60 = vld [vmem:[%s6180_s8] sm:$0xff]  ;;  %s6189_s26 = sld [smem:[#allocation4_spill]] }
  0x57   : > { %1173 = vadd.xlane.f32.xlu0 %v1172_v2  ;;  %1170 = vadd.xlane.f32.xlu1 %v1169_v5  ;;  %v1240_v2 = vld [vmem:[%s6180_s8 + $0x20] sm:$0xff]  ;;  %s6190_s0 = sld [smem:[#allocation6_spill]] }
  0x58   : > { %v1189_v7 = vsel %vm1168_vm0, %v1185_v4, 0.0  ;;  %v1186_v8 = vsel %vm1168_vm0, %v1184_v6, 0.0  ;;  %s6192_s1 = sld [smem:[#allocation15_spill]] }
  0x59   : > { %v5154_v10 = vpop.eup %5153  ;;  %s6198_s3 = sld [smem:[#allocation22_spill]] }
  0x5a   : > { %v1176_v11 = vmul.f32 32.0, %v5154_v10  ;;  %vm1180_vm1 = vweird.f32 %v5154_v10  ;;  %s6199_s5 = sld [smem:[#allocation24_spill]] }
  0x5b   : > { %s5899_s22 = scalar_lea.vmem %s6188_s18, %s5894_s23  ;;  %s6194_s18 = sld [smem:[#allocation21_spill]] }
  0x5c   : > { %v1177_v12 = vsub.f32 1.0, %v1176_v11  ;;  %1292 = vperm.xlu2 %5116, %v1253_v58   ;;  %s1152_s2 = scalar_lea.vmem %s6189_s26, %s5894_s23  ;;  %s6195_s26 = sld [smem:[#allocation19_spill]] }
  0x5e   : > { %v1178_v13 = vmul.f32 %v5154_v10, %v1177_v12 }
  0x5f   : > { %1190 = vadd.xlane.f32.xlu0 %v1189_v7  ;;  %1187 = vadd.xlane.f32.xlu1 %v1186_v8 }
  0x60   : > { %v1179_v14 = vadd.f32 %v5154_v10, %v1178_v13 }
  0x62   : > { %v5563_v17 = vsel %vm1180_vm1, %v5154_v10, %v1179_v14  ;;  %v1252_v14 = vld [vmem:[%s5396_s14 + $0x20] sm:$0xff]  ;;  %vm2068_vm1 = vcmask 523264  }
  0x64   : > { %1277 = vperm.xlu2 %5116, %v1250_v61  }
  0x6c   : > { %1282 = vperm.xlu2 %5116, %v1251_v63  }
  0x78   : > { %1267 = vperm.xlu1 %5117, %v1248_v35  }
  0xae   : > { %v1273_v5 = vpop.permute.xlu2 %1272 }
  0xb6   : > { %v1293_v11 = vpop.permute.xlu2 %1292 }
  0xca   : > { %v1174_v15 = vpop.xlane.xlu0 %1173  ;;  %v1171_v16 = vpop.xlane.xlu1 %1170 }
  0xcb   : > { %v1183_v18 = vmul.f32 %v5563_v17, %v1174_v15  ;;  %v1182_v19 = vmul.f32 %v5563_v17, %v1171_v16 }
  0xcd   : > { %v1195_v21 = vmul.f32 %v1183_v18, %v1183_v18  ;;  %v1194_v24 = vmul.f32 %v1182_v19, %v1182_v19  ;;  %v1201_v46 = vsub.f32 %v5549_v1, %v1183_v18  ;;  %v1200_v49 = vsub.f32 %v5553_v3, %v1182_v19  ;;  %v1239_v1 = vld [vmem:[%s6180_s8 + $0x18] sm:$0xff]  ;;  %v1241_v3 = vld [vmem:[%s6180_s8 + $0x28] sm:$0xff] }
  0xd2   : > { %v1191_v20 = vpop.xlane.xlu0 %1190  ;;  %v1188_v23 = vpop.xlane.xlu1 %1187 }
  0xd3   : > { %v1193_v22 = vmul.f32 %v1191_v20, %v5563_v17  ;;  %v1192_v25 = vmul.f32 %v1188_v23, %v5563_v17  ;;  %v1242_v20 = vld [vmem:[%s6180_s8 + $0x30] sm:$0xff]  ;;  %v1245_v23 = vld [vmem:[%s6180_s8 + $0x48] sm:$0xff] }
  0xd5   : > { %v1197_v26 = vsub.f32 %v1193_v22, %v1195_v21  ;;  %v1196_v27 = vsub.f32 %v1192_v25, %v1194_v24  ;;  %v1243_v21 = vld [vmem:[%s6180_s8 + $0x38] sm:$0xff]  ;;  %v1244_v22 = vld [vmem:[%s6180_s8 + $0x40] sm:$0xff] }
  0xd6   : > { %v5619_v24 = vld [vmem:[%s5544_s17] ss:$0 sm:$0xff] }
  0xd7   : > { %v1199_v28 = vmax.f32 %v1197_v26, 0.0  ;;  %v1198_v29 = vmax.f32 %v1196_v27, 0.0 }
  0xd9   : > { %v1203_v30 = vadd.f32 1e-12, %v1199_v28  ;;  %v1202_v31 = vadd.f32 1e-12, %v1198_v29 }
  0xdb   : > { %5155 = vrsqrt.f32 %v1203_v30  ;;  %vm1220_vm4 = vweird.f32 %v1203_v30  ;;  %vm1210_vm5 = vweird.f32 %v1202_v31 }
  0xdc   : > { %5157 = vrsqrt.f32 %v1202_v31 }
  0xe1   : > { %v5156_v32 = vpop.eup %5155 }
  0xe2   : > { %v5158_v33 = vpop.eup %5157  ;;  %v1215_v34 = vmul.f32 %v5156_v32, %v1203_v30  ;;  %vm1221_vm2 = vweird.f32 %v5156_v32 }
  0xe3   : > { %v1205_v36 = vmul.f32 %v5158_v33, %v1202_v31  ;;  %vm1211_vm3 = vweird.f32 %v5158_v33  ;;  %vm1222_vm6 = vmor %vm1220_vm4, %vm1221_vm2  ;;  %v1254_v31 = vld [vmem:[%s5396_s14 + $0x30] sm:$0xff] }
  0xe4   : > { %v1216_v38 = vmul.f32 %v5156_v32, %v1215_v34  ;;  %vm1212_vm7 = vmor %vm1210_vm5, %vm1211_vm3  ;;  %v1278_v34 = vpop.permute.xlu2 %1277 }
  0xe5   : > { %v1206_v39 = vmul.f32 %v5158_v33, %v1205_v36 }
  0xe6   : > { %v1217_v40 = vmul.f32 0.5, %v1216_v38 }
  0xe7   : > { %v1207_v41 = vmul.f32 0.5, %v1206_v39 }
  0xe8   : > { %v1218_v42 = vsub.f32 1.5, %v1217_v40 }
  0xe9   : > { %v1208_v43 = vsub.f32 1.5, %v1207_v41 }
  0xea   : > { %v1219_v44 = vmul.f32 %v5156_v32, %v1218_v42  ;;  %v1268_v36 = vpop.permute.xlu1 %1267 }
  0xeb   : > { %v1209_v48 = vmul.f32 %v5158_v33, %v1208_v43 }
  0xec   : > { %v1223_v50 = vsel %vm1222_vm6, %v5156_v32, %v1219_v44  ;;  %v1255_v32 = vld [vmem:[%s5396_s14 + $0x38] sm:$0xff]  ;;  %v1283_v35 = vpop.permute.xlu2 %1282 }
  0xed   : > { %v1225_v51 = vmul.f32 %v1223_v50, %v1201_v46  ;;  %v1213_v53 = vsel %vm1212_vm7, %v5158_v33, %v1209_v48  ;;  %v1257_v33 = vld [vmem:[%s5396_s14 + $0x48] sm:$0xff] }
  0xee   : > { %v1224_v54 = vmul.f32 %v1213_v53, %v1200_v49 }
  0xef   : > { %v1230_v55 = vmul.f32 %v5121_v47, %v1225_v51 }
  0xf0   : > { %v1229_v57 = vmul.f32 %v5121_v47, %v1224_v54 }
  0xf1   : > { %v5577_v56 = vadd.f32 %v5122_v52, %v1230_v55 }
  0xf2   : > { %v5582_v59 = vadd.f32 %v5122_v52, %v1229_v57 }
  0xf3   : > { %4833 = vmatpush.xpose.msk.msra.mxu0 %vm1168_vm0, %v5577_v56 }
  0xf7   : > { %4834 = vmatpush.xpose.msk.msra.mxu0 %vm1168_vm0, %v5582_v59 }
  0xfa   : > { %4835 = vmatmul.msk.f32.vlgmr.msra.gmra.mxu0 %vm1168_vm0, %v1236_v60 }
 0x102   : > { %4836 = vmatmul.msk.f32.gmra.mxu0 %vm1168_vm0, %v1237_v62 }
 0x10a   : > { %4837 = vmatmul.msk.f32.gmra.mxu0 %vm1168_vm0, %v1238_v0 }
 0x112   : > { %4838 = vmatmul.msk.f32.gmra.mxu0 %vm1168_vm0, %v1239_v1 }
 0x11a   : > { %4839 = vmatmul.msk.f32.gmra.mxu0 %vm1168_vm0, %v1240_v2 }
 0x122   : > { %4840 = vmatmul.msk.f32.gmra.mxu0 %vm1168_vm0, %v1241_v3 }
 0x12a   : > { %4841 = vmatmul.msk.f32.gmra.mxu0 %vm1168_vm0, %v1242_v20 }
 0x132   : > { %4842 = vmatmul.msk.f32.gmra.mxu0 %vm1168_vm0, %v1243_v21 }
 0x13a   : > { %4843 = vmatmul.msk.f32.gmra.mxu0 %vm1168_vm0, %v1244_v22 }
 0x142   : > { %4844 = vmatmul.msk.f32.gmra.mxu0 %vm1168_vm0, %v1245_v23 }
 0x177   : > { %v5600_v4 = vpop.f32.mrf.mxu0 }
 0x178   : > { %v1385_v50 = vadd.f32 %v5600_v4, %v1268_v36 }
 0x17f   : > { %v1387_v6 = vpop.f32.mrf.mxu0 }
 0x180   : > { %v1388_v7 = vadd.f32 %v1387_v6, %v1273_v5 }
 0x182   : > { %1537 = vxpose.xlu0.b32.start.end [1/1] (short) (narrow) %v1388_v7, 16 }
 0x187   : > { %v5602_v8 = vpop.f32.mrf.mxu0 }
 0x188   : > { %v1391_v52 = vadd.f32 %v5602_v8, %v1278_v34 }
 0x18f   : > { %v5604_v9 = vpop.f32.mrf.mxu0 }
 0x190   : > { %v1394_v51 = vadd.f32 %v5604_v9, %v1283_v35  ;;  %v1246_v9 = vld [vmem:[%s6180_s8 + $0x50] sm:$0xff] }
 0x191   : > { %4845 = vmatmul.msk.f32.gmra.mxu0 %vm1168_vm0, %v1246_v9 }
 0x197   : > { %v1396_v10 = vpop.f32.mrf.mxu0 }
 0x19f   : > { %v1399_v12 = vpop.f32.mrf.mxu0 }
 0x1a0   : > { %v1400_v13 = vadd.f32 %v1399_v12, %v1293_v11 }
 0x1a2   : > { %1590 = vmatpush.msra.mxu3 %v1400_v13 }
 0x1a7   : > { %v1402_v40 = vpop.f32.mrf.mxu0 }
 0x1af   : > { %v1405_v53 = vpop.f32.mrf.mxu0 }
 0x1b7   : > { %v5633_v60 = vpop.f32.mrf.mxu0 }
 0x1bf   : > { %v1411_v0 = vpop.f32.mrf.mxu0 }
 0x1e9   : > { %5118 = vset.pattern.permute.xlu0 %v5342_v37 }
 0x1f8   : > { %1287 = vperm.xlu0 %5118, %v1252_v14   ;;  %v1247_v14 = vld [vmem:[%s6180_s8 + $0x58] sm:$0xff] }
 0x1f9   : > { %4846 = vmatmul.msk.f32.gmra.mxu0 %vm1168_vm0, %v1247_v14 }
 0x226   : > { %v1553_v15 = vpop.trf.xlu0 }
 0x227   : > { %4852 = vmatmul.msk.f32.vlgmr.msra.gmra.mxu3 %vm1455_vm8, %v1553_v15 }
 0x22e   : > { %v1554_v16 = vpop.trf.xlu0 }
 0x22f   : > { %4853 = vmatmul.msk.f32.gmra.mxu3 %vm1455_vm8, %v1554_v16 }
 0x26a   : > { %v1288_v18 = vpop.permute.xlu0 %1287 }
 0x26b   : > { %v1397_v19 = vadd.f32 %v1396_v10, %v1288_v18 }
 0x26d   : > { %1477 = vmatpush.msra.mxu1 %v1397_v19 }
 0x2aa   : > { %v1592_v25 = vpop.f32.mrf.mxu3 }
 0x2ab   : > { %v1593_v26 = vadd.f32 %v5619_v24, %v1592_v25 }
 0x2ad   : > { %v1598_v27 = vsel %vm1485_vm9, %v1593_v26, -inf }
 0x2ae   : > { %1599 = vmax.xlane.f32.xlu2 %v1598_v27 }
 0x2b2   : > { %v1595_v28 = vpop.f32.mrf.mxu3 }
 0x2b3   : > { %v1596_v29 = vadd.f32 %v5619_v24, %v1595_v28 }
 0x2b5   : > { %v1601_v30 = vsel %vm1485_vm9, %v1596_v29, -inf }
 0x2b6   : > { %1602 = vmax.xlane.f32.xlu1 %v1601_v30 }
 0x2c6   : > { %1297 = vperm.xlu2 %5116, %v1254_v31  }
 0x2ce   : > { %1302 = vperm.xlu2 %5116, %v1255_v32  }
 0x2cf   : > { %1312 = vperm.xlu1 %5117, %v1257_v33  }
 0x321   : > { %v1600_v37 = vpop.xlane.xlu2 %1599 }
 0x322   : > { %v1604_v38 = vsub.f32 %v1593_v26, %v1600_v37  ;;  %v1259_v26 = vld [vmem:[%s5396_s14 + $0x58] sm:$0xff] }
 0x324   : > { %v1606_v39 = vmul.f32 1.442695, %v1604_v38 }
 0x326   : > { %5159 = vpow2.f32 %v1606_v39 }
 0x329   : > { %v1298_v41 = vpop.permute.xlu2 %1297  ;;  %v1603_v42 = vpop.xlane.xlu1 %1602 }
 0x32a   : > { %v1403_v43 = vadd.f32 %v1402_v40, %v1298_v41  ;;  %v1605_v44 = vsub.f32 %v1596_v29, %v1603_v42 }
 0x32c   : > { %v5160_v45 = vpop.eup %5159  ;;  %v1608_v46 = vmul.f32 1.442695, %v1605_v44  ;;  %1702 = vmatpush.msrb.mxu1 %v1403_v43 }
 0x32d   : > { %v1610_v47 = vsel %vm1485_vm9, %v5160_v45, 0.0 }
 0x32e   : > { %5161 = vpow2.f32 %v1608_v46  ;;  %1611 = vadd.xlane.f32.xlu2 %v1610_v47 }
 0x331   : > { %v1303_v54 = vpop.permute.xlu2 %1302 }
 0x332   : > { %v1406_v2 = vadd.f32 %v1405_v53, %v1303_v54 }
 0x334   : > { %v5162_v48 = vpop.eup %5161 }
 0x335   : > { %v1613_v49 = vsel %vm1485_vm9, %v5162_v48, 0.0 }
 0x336   : > { %1614 = vadd.xlane.f32.xlu1 %v1613_v49 }
 0x341   : > { %v1313_v55 = vpop.permute.xlu1 %1312 }
 0x342   : > { %v1412_v3 = vadd.f32 %v1411_v0, %v1313_v55 }
 0x357   : > { %1423 = vxpose.xlu2.b32.start.end [1/1] (short) (narrow) %v1385_v50, 16 }
 0x367   : > { %1761 = vxpose.xlu2.b32.start.end [1/1] (short) (narrow) %v1394_v51, 16 }
 0x370   : > { %1649 = vxpose.xlu1.b32.start.end [1/1] (short) (narrow) %v1391_v52, 16 }
 0x3a1   : > { %v1612_v57 = vpop.xlane.xlu2 %1611 }
 0x3a9   : > { %v1615_v58 = vpop.xlane.xlu1 %1614 }
 0x3aa   : > { %5163 = vrcp.f32 %v1615_v58 }
 0x3ab   : > { %5165 = vrcp.f32 %v1612_v57 }
 0x3b0   : > { %v5164_v61 = vpop.eup %5163 }
 0x3b1   : > { %v1619_v62 = vmul.f32 %v5164_v61, %v5162_v48  ;;  %v5166_v63 = vpop.eup %5165 }
 0x3b2   : > { %v1618_v1 = vmul.f32 %v5166_v63, %v5160_v45 }
 0x3b3   : > { %4854 = vmatpush.xpose.msk.msra.mxu2 %vm1485_vm9, %v1619_v62 }
 0x3b7   : > { %4855 = vmatpush.xpose.msk.msra.mxu2 %vm1485_vm9, %v1618_v1 }
 0x3ba   : > { %4856 = vmatmul.msk.f32.vlgmr.msra.gmra.mxu2 %vm1485_vm9, %v1412_v3 }
 0x3bb   : > { %1814 = vmatpush.msrb.mxu2 %v1406_v2 }
 0x3f0   : > { %v1439_v4 = vpop.trf.xlu2 }
 0x3f1   : > { %4847 = vmatmul.msk.f32.vlgmr.msra.gmra.mxu1 %vm1455_vm8, %v1439_v4 }
 0x3f8   : > { %v1440_v5 = vpop.trf.xlu2 }
 0x3f9   : > { %4848 = vmatmul.msk.f32.gmra.mxu1 %vm1455_vm8, %v1440_v5 }
 0x400   : > { %v1777_v15 = vpop.trf.xlu2 }
 0x401   : > { %4862 = vmatmul.msk.f32.vlgmr.msrb.gmra.mxu2 %vm1455_vm8, %v1777_v15  ;;  %v1256_v15 = vld [vmem:[%s5396_s14 + $0x40] sm:$0xff] }
 0x408   : > { %v1778_v18 = vpop.trf.xlu2 }
 0x409   : > { %4863 = vmatmul.msk.f32.gmra.mxu2 %vm1455_vm8, %v1778_v18 }
 0x414   : > { %v1665_v6 = vpop.trf.xlu1 }
 0x415   : > { %4857 = vmatmul.msk.f32.vlgmr.msrb.gmra.mxu1 %vm1455_vm8, %v1665_v6 }
 0x41c   : > { %v1666_v7 = vpop.trf.xlu1 }
 0x41d   : > { %4858 = vmatmul.msk.f32.gmra.mxu1 %vm1455_vm8, %v1666_v7 }
 0x43d   : > { %v5657_v31 = vpop.f32.mrf.mxu2 }
 0x46e   : > { %v1479_v8 = vpop.f32.mrf.mxu1 }
 0x46f   : > { %v1480_v13 = vadd.f32 %v5619_v24, %v1479_v8 }
 0x471   : > { %v1486_v16 = vsel %vm1485_vm9, %v1480_v13, -inf }
 0x476   : > { %v1482_v10 = vpop.f32.mrf.mxu1 }
 0x477   : > { %v1483_v11 = vadd.f32 %v5619_v24, %v1482_v10 }
 0x479   : > { %v1489_v12 = vsel %vm1485_vm9, %v1483_v11, -inf }
 0x47a   : > { %1490 = vmax.xlane.f32.xlu0 %v1489_v12 }
 0x482   : > { %1487 = vmax.xlane.f32.xlu0 %v1486_v16  ;;  %v1258_v16 = vld [vmem:[%s5396_s14 + $0x50] sm:$0xff] }
 0x484   : > { %v1816_v36 = vpop.f32.mrf.mxu2 }
 0x485   : > { %v1817_v40 = vadd.f32 %v5619_v24, %v1816_v36  ;;  %v1261_v36 = vld [vmem:[%s5401_s19 + $0x8] sm:$0xff] }
 0x487   : > { %v1822_v41 = vsel %vm1485_vm9, %v1817_v40, -inf }
 0x48c   : > { %v1819_v43 = vpop.f32.mrf.mxu2 }
 0x48d   : > { %v1820_v44 = vadd.f32 %v5619_v24, %v1819_v43 }
 0x48f   : > { %v1825_v47 = vsel %vm1485_vm9, %v1820_v44, -inf }
 0x492   : > { %v1704_v19 = vpop.f32.mrf.mxu1 }
 0x493   : > { %v1705_v20 = vadd.f32 %v5619_v24, %v1704_v19 }
 0x495   : > { %v1710_v21 = vsel %vm1485_vm9, %v1705_v20, -inf }
 0x496   : > { %1711 = vmax.xlane.f32.xlu1 %v1710_v21 }
 0x49a   : > { %v1707_v22 = vpop.f32.mrf.mxu1 }
 0x49b   : > { %v1708_v23 = vadd.f32 %v5619_v24, %v1707_v22 }
 0x49d   : > { %v1713_v25 = vsel %vm1485_vm9, %v1708_v23, -inf }
 0x49e   : > { %1714 = vmax.xlane.f32.xlu2 %v1713_v25  ;;  %v1414_v25 = vpop.f32.mrf.mxu0 }
 0x4b6   : > { %1322 = vperm.xlu2 %5116, %v1259_v26  }
 0x4ed   : > { %v1491_v39 = vpop.xlane.xlu0 %1490 }
 0x4ee   : > { %v1493_v42 = vsub.f32 %v1483_v11, %v1491_v39 }
 0x4f0   : > { %v1496_v45 = vmul.f32 1.442695, %v1493_v42  ;;  %v5123_v42 = vld [vmem:[%s5406_s24] ss:$0 sm:$0xff] }
 0x4f5   : > { %v1488_v46 = vpop.xlane.xlu0 %1487 }
 0x4f6   : > { %v1492_v48 = vsub.f32 %v1480_v13, %v1488_v46 }
 0x4f8   : > { %v1494_v49 = vmul.f32 1.442695, %v1492_v48 }
 0x509   : > { %v1712_v27 = vpop.xlane.xlu1 %1711 }
 0x50a   : > { %v1716_v28 = vsub.f32 %v1705_v20, %v1712_v27 }
 0x50c   : > { %v1718_v29 = vmul.f32 1.442695, %v1716_v28 }
 0x50e   : > { %5167 = vpow2.f32 %v1718_v29 }
 0x511   : > { %v1715_v30 = vpop.xlane.xlu2 %1714 }
 0x512   : > { %v1717_v32 = vsub.f32 %v1708_v23, %v1715_v30  ;;  %v1417_v30 = vpop.f32.mrf.mxu0 }
 0x514   : > { %v5168_v33 = vpop.eup %5167  ;;  %v1720_v34 = vmul.f32 1.442695, %v1717_v32 }
 0x515   : > { %v1722_v35 = vsel %vm1485_vm9, %v5168_v33, 0.0 }
 0x516   : > { %5169 = vpow2.f32 %v1720_v34  ;;  %1723 = vadd.xlane.f32.xlu0 %v1722_v35  ;;  %v1263_v34 = vld [vmem:[%s5401_s19 + $0x18] sm:$0xff]  ;;  %v1262_v35 = vld [vmem:[%s5401_s19 + $0x10] sm:$0xff] }
 0x517   : > { %5171 = vpow2.f32 %v1496_v45  ;;  %1926 = vmatpush.msra.mxu1 %v1263_v34 }
 0x518   : > { %5173 = vpow2.f32 %v1494_v49 }
 0x519   : > { %v1323_v32 = vpop.permute.xlu2 %1322  ;;  %1927 = vmatpush.msra.mxu1 %v1262_v35 }
 0x51b   : > { %1928 = vmatpush.msra.mxu1 %v1261_v36 }
 0x51c   : > { %v5170_v37 = vpop.eup %5169 }
 0x51d   : > { %v1725_v38 = vsel %vm1485_vm9, %v5170_v37, 0.0  ;;  %v5172_v50 = vpop.eup %5171 }
 0x51e   : > { %1726 = vadd.xlane.f32.xlu0 %v1725_v38  ;;  %v1501_v51 = vsel %vm1485_vm9, %v5172_v50, 0.0  ;;  %v5174_v52 = vpop.eup %5173 }
 0x51f   : > { %v1498_v53 = vsel %vm1485_vm9, %v5174_v52, 0.0 }
 0x526   : > { %1823 = vmax.xlane.f32.xlu0 %v1822_v41 }
 0x52e   : > { %1826 = vmax.xlane.f32.xlu0 %v1825_v47 }
 0x536   : > { %1502 = vadd.xlane.f32.xlu0 %v1501_v51 }
 0x53e   : > { %1499 = vadd.xlane.f32.xlu0 %v1498_v53  ;;  %v2004_v53 = vld [vmem:[%s5421_s12 + $0x18] sm:$0xff] }
 0x589   : > { %v1724_v54 = vpop.xlane.xlu0 %1723 }
 0x591   : > { %v1727_v55 = vpop.xlane.xlu0 %1726 }
 0x592   : > { %5175 = vrcp.f32 %v1727_v55 }
 0x593   : > { %5177 = vrcp.f32 %v1724_v54  ;;  %v2003_v54 = vld [vmem:[%s5421_s12 + $0x10] sm:$0xff] }
 0x598   : > { %v5176_v57 = vpop.eup %5175 }
 0x599   : > { %v1824_v58 = vpop.xlane.xlu0 %1823  ;;  %v1731_v61 = vmul.f32 %v5176_v57, %v5170_v37  ;;  %v5178_v62 = vpop.eup %5177  ;;  %v1260_v37 = vld [vmem:[%s5401_s19] sm:$0xff]  ;;  %v2002_v57 = vld [vmem:[%s5421_s12 + $0x8] sm:$0xff] }
 0x59a   : > { %v1828_v63 = vsub.f32 %v1817_v40, %v1824_v58  ;;  %v1730_v1 = vmul.f32 %v5178_v62, %v5168_v33  ;;  %v1418_v33 = vadd.f32 %v1417_v30, %v1323_v32  ;;  %1929 = vmatpush.msra.mxu1 %v1260_v37  ;;  %v2001_v62 = vld [vmem:[%s5421_s12] sm:$0xff] }
 0x59b   : > { %4859 = vmatpush.xpose.msk.msrb.mxu3 %vm1485_vm9, %v1731_v61 }
 0x59c   : > { %v1830_v0 = vmul.f32 1.442695, %v1828_v63 }
 0x59e   : > { %5179 = vpow2.f32 %v1830_v0 }
 0x59f   : > { %4860 = vmatpush.xpose.msk.msrb.mxu3 %vm1485_vm9, %v1730_v1 }
 0x5a1   : > { %v1827_v2 = vpop.xlane.xlu0 %1826 }
 0x5a2   : > { %v1829_v3 = vsub.f32 %v1820_v44, %v1827_v2 }
 0x5a4   : > { %v5180_v4 = vpop.eup %5179  ;;  %v1832_v5 = vmul.f32 1.442695, %v1829_v3 }
 0x5a5   : > { %v1834_v6 = vsel %vm1485_vm9, %v5180_v4, 0.0 }
 0x5a6   : > { %5181 = vpow2.f32 %v1832_v5  ;;  %1835 = vadd.xlane.f32.xlu1 %v1834_v6 }
 0x5a9   : > { %v1503_v7 = vpop.xlane.xlu0 %1502 }
 0x5aa   : > { %5183 = vrcp.f32 %v1503_v7 }
 0x5ac   : > { %v5182_v8 = vpop.eup %5181 }
 0x5ad   : > { %v1837_v9 = vsel %vm1485_vm9, %v5182_v8, 0.0 }
 0x5ae   : > { %1838 = vadd.xlane.f32.xlu0 %v1837_v9 }
 0x5b0   : > { %v5184_v10 = vpop.eup %5183 }
 0x5b1   : > { %v1500_v11 = vpop.xlane.xlu0 %1499  ;;  %v1507_v12 = vmul.f32 %v5184_v10, %v5172_v50 }
 0x5b2   : > { %5185 = vrcp.f32 %v1500_v11 }
 0x5b3   : > { %4849 = vmatpush.xpose.msk.msrb.mxu0 %vm1485_vm9, %v1507_v12 }
 0x5b8   : > { %v5186_v13 = vpop.eup %5185 }
 0x5b9   : > { %v1506_v14 = vmul.f32 %v5186_v13, %v5174_v52 }
 0x5bb   : > { %4850 = vmatpush.xpose.msk.msrb.mxu0 %vm1485_vm9, %v1506_v14 }
 0x5bf   : > { %1307 = vperm.xlu1 %5117, %v1256_v15  }
 0x5c2   : > { %1317 = vperm.xlu0 %5118, %v1258_v16  }
 0x619   : > { %v1836_v18 = vpop.xlane.xlu1 %1835 }
 0x621   : > { %v1839_v19 = vpop.xlane.xlu0 %1838 }
 0x622   : > { %5187 = vrcp.f32 %v1839_v19 }
 0x623   : > { %5189 = vrcp.f32 %v1836_v18 }
 0x628   : > { %v5188_v20 = vpop.eup %5187 }
 0x629   : > { %v1843_v21 = vmul.f32 %v5188_v20, %v5182_v8  ;;  %v5190_v22 = vpop.eup %5189 }
 0x62a   : > { %v1842_v23 = vmul.f32 %v5190_v22, %v5180_v4 }
 0x62b   : > { %4864 = vmatpush.xpose.msk.msra.mxu3 %vm1485_vm9, %v1843_v21  ;;  %v5124_v21 = vld [vmem:[%s5411_s30] ss:$0 sm:$0xff] }
 0x62f   : > { %4865 = vmatpush.xpose.msk.msra.mxu3 %vm1485_vm9, %v1842_v23 }
 0x631   : > { %v1308_v26 = vpop.permute.xlu1 %1307 }
 0x632   : > { %v1409_v27 = vadd.f32 %v5633_v60, %v1308_v26  ;;  %v5125_v26 = vld [vmem:[%s6181_s6] ss:$0 sm:$0xff] }
 0x634   : > { %4851 = vmatmul.msk.f32.vlgmr.msrb.gmra.mxu0 %vm1485_vm9, %v1409_v27  ;;  %v1318_v28 = vpop.permute.xlu0 %1317 }
 0x635   : > { %v1415_v29 = vadd.f32 %v1414_v25, %v1318_v28 }
 0x637   : > { %4861 = vmatmul.msk.f32.vlgmr.msrb.gmra.mxu3 %vm1485_vm9, %v1415_v29 }
 0x638   : > { %2027 = vmatpush.msrb.mxu3 %v2004_v53 }
 0x63a   : > { %2028 = vmatpush.msrb.mxu3 %v2003_v54 }
 0x63c   : > { %2029 = vmatpush.msrb.mxu3 %v2002_v57 }
 0x63e   : > { %2030 = vmatpush.msrb.mxu3 %v2001_v62 }
 0x63f   : > { %4866 = vmatmul.msk.f32.vlgmr.msra.gmra.mxu3 %vm1485_vm9, %v1418_v33 }
 0x6b1   : > { %v1534_v60 = vpop.f32.mrf.mxu0 }
 0x6b2   : > { %1876 = vxpose.xlu0.b32.start [1/4] (short) (narrow) %v1534_v60, 16  ;;  %v2063_v60 = vld [vmem:[%s5431_s27 + $0x38] sm:$0xff] }
 0x6b3   : > { %2083 = vmatpush.msra.mxu2 %v2063_v60 }
 0x6ba   : > { %1877 = vxpose.xlu0.b32.cont [2/4] (short) (narrow) %v5657_v31, 16  ;;  %v1758_v38 = vpop.f32.mrf.mxu3 }
 0x6c2   : > { %1878 = vxpose.xlu0.b32.cont [3/4] (short) (narrow) %v1758_v38, 16  ;;  %v1870_v39 = vpop.f32.mrf.mxu3  ;;  %v2062_v38 = vld [vmem:[%s5431_s27 + $0x30] sm:$0xff] }
 0x6c3   : > { %2084 = vmatpush.msra.mxu2 %v2062_v38 }
 0x6ca   : > { %1879 = vxpose.xlu0.b32.end [4/4] (short) (narrow) %v1870_v39, 16  ;;  %v2061_v39 = vld [vmem:[%s5431_s27 + $0x28] sm:$0xff] }
 0x6cb   : > { %2085 = vmatpush.msra.mxu2 %v2061_v39 }
 0x756   : > { %v1892_v40 = vpop.trf.xlu0 }
 0x757   : > { %4867 = vmatmul.msk.f32.vlgmr.msra.gmra.mxu1 %vm1168_vm0, %v1892_v40  ;;  %v2060_v40 = vld [vmem:[%s5431_s27 + $0x20] sm:$0xff] }
 0x758   : > { %2086 = vmatpush.msra.mxu2 %v2060_v40 }
 0x75e   : > { %v1893_v41 = vpop.trf.xlu0 }
 0x75f   : > { %4868 = vmatmul.msk.f32.gmra.mxu1 %vm1168_vm0, %v1893_v41  ;;  %v2059_v41 = vld [vmem:[%s5431_s27 + $0x18] sm:$0xff] }
 0x760   : > { %2087 = vmatpush.msra.mxu2 %v2059_v41 }
 0x7d4   : > { %v1931_v43 = vpop.f32.mrf.mxu1 }
 0x7d5   : > { %v1932_v44 = vadd.f32 %v5123_v42, %v1931_v43  ;;  %v2057_v43 = vld [vmem:[%s5431_s27 + $0x8] sm:$0xff] }
 0x7d7   : > { %v1937_v45 = vadd.f32 %v1932_v44, %v5582_v59  ;;  %v2056_v44 = vld [vmem:[%s5431_s27] sm:$0xff] }
 0x7d9   : > { %v1941_v46 = vsel %vm1168_vm0, %v1937_v45, 0.0  ;;  %v1949_v31 = vmul.f32 %v1937_v45, %v1937_v45 }
 0x7da   : > { %1942 = vadd.xlane.f32.xlu1 %v1941_v46 }
 0x7db   : > { %v1951_v47 = vsel %vm1168_vm0, %v1949_v31, 0.0 }
 0x7dc   : > { %1952 = vadd.xlane.f32.xlu2 %v1951_v47  ;;  %v1934_v48 = vpop.f32.mrf.mxu1 }
 0x7dd   : > { %v1935_v49 = vadd.f32 %v5123_v42, %v1934_v48  ;;  %v2058_v42 = vld [vmem:[%s5431_s27 + $0x10] sm:$0xff] }
 0x7de   : > { %2088 = vmatpush.msra.mxu2 %v2058_v42 }
 0x7df   : > { %v1938_v50 = vadd.f32 %v1935_v49, %v5577_v56 }
 0x7e0   : > { %2089 = vmatpush.msra.mxu2 %v2057_v43 }
 0x7e1   : > { %v1944_v51 = vsel %vm1168_vm0, %v1938_v50, 0.0  ;;  %v1950_v52 = vmul.f32 %v1938_v50, %v1938_v50 }
 0x7e2   : > { %1945 = vadd.xlane.f32.xlu1 %v1944_v51  ;;  %2090 = vmatpush.msra.mxu2 %v2056_v44 }
 0x7e3   : > { %v1954_v59 = vsel %vm1168_vm0, %v1950_v52, 0.0 }
 0x7e4   : > { %1955 = vadd.xlane.f32.xlu2 %v1954_v59 }
 0x84d   : > { %v1943_v55 = vpop.xlane.xlu1 %1942 }
 0x84e   : > { %v1947_v58 = vmul.f32 %v1943_v55, %v5563_v17 }
 0x84f   : > { %v1953_v61 = vpop.xlane.xlu2 %1952 }
 0x850   : > { %v1959_v63 = vmul.f32 %v1947_v58, %v1947_v58  ;;  %v1957_v56 = vmul.f32 %v1953_v61, %v5563_v17  ;;  %v1965_v19 = vsub.f32 %v1937_v45, %v1947_v58  ;;  %v5126_v45 = vld [vmem:[%s5426_s20] ss:$0 sm:$0xff] }
 0x852   : > { %v1961_v0 = vsub.f32 %v1957_v56, %v1959_v63 }
 0x854   : > { %v1963_v1 = vmax.f32 %v1961_v0, 0.0 }
 0x855   : > { %v1946_v2 = vpop.xlane.xlu1 %1945 }
 0x856   : > { %v1967_v3 = vadd.f32 1e-12, %v1963_v1  ;;  %v1948_v4 = vmul.f32 %v1946_v2, %v5563_v17 }
 0x857   : > { %v1956_v5 = vpop.xlane.xlu2 %1955 }
 0x858   : > { %5191 = vrsqrt.f32 %v1967_v3  ;;  %v1960_v6 = vmul.f32 %v1948_v4, %v1948_v4  ;;  %v1958_v7 = vmul.f32 %v1956_v5, %v5563_v17  ;;  %vm1975_vm11 = vweird.f32 %v1967_v3 }
 0x859   : > { %v1966_v33 = vsub.f32 %v1938_v50, %v1948_v4  ;;  %v5127_v4 = vld [vmem:[%s6184_s10] ss:$0 sm:$0xff] }
 0x85a   : > { %v1962_v8 = vsub.f32 %v1958_v7, %v1960_v6 }
 0x85c   : > { %v1964_v9 = vmax.f32 %v1962_v8, 0.0 }
 0x85e   : > { %v5192_v10 = vpop.eup %5191  ;;  %v1968_v12 = vadd.f32 1e-12, %v1964_v9 }
 0x85f   : > { %v1970_v11 = vmul.f32 %v5192_v10, %v1967_v3  ;;  %vm1976_vm10 = vweird.f32 %v5192_v10 }
 0x860   : > { %5193 = vrsqrt.f32 %v1968_v12  ;;  %vm1977_vm12 = vmor %vm1975_vm11, %vm1976_vm10  ;;  %vm1985_vm14 = vweird.f32 %v1968_v12 }
 0x861   : > { %v1971_v13 = vmul.f32 %v5192_v10, %v1970_v11 }
 0x863   : > { %v1972_v14 = vmul.f32 0.5, %v1971_v13 }
 0x865   : > { %v1973_v15 = vsub.f32 1.5, %v1972_v14 }
 0x866   : > { %v5194_v16 = vpop.eup %5193 }
 0x867   : > { %v1974_v18 = vmul.f32 %v5192_v10, %v1973_v15  ;;  %v1980_v20 = vmul.f32 %v5194_v16, %v1968_v12  ;;  %vm1986_vm13 = vweird.f32 %v5194_v16 }
 0x868   : > { %vm1987_vm15 = vmor %vm1985_vm14, %vm1986_vm13 }
 0x869   : > { %v1978_v22 = vsel %vm1977_vm12, %v5192_v10, %v1974_v18  ;;  %v1981_v25 = vmul.f32 %v5194_v16, %v1980_v20  ;;  %v4885_v18 = vld [vmem:[%s5396_s14 + $0x60] sm:$0xff] }
 0x86a   : > { %v1989_v23 = vmul.f32 %v1978_v22, %v1965_v19  ;;  %v4893_v19 = vld [vmem:[%s5396_s14 + $0xa0] sm:$0xff] }
 0x86b   : > { %v1982_v27 = vmul.f32 0.5, %v1981_v25  ;;  %v4889_v20 = vld [vmem:[%s5396_s14 + $0x80] sm:$0xff] }
 0x86c   : > { %v1994_v28 = vmul.f32 %v5124_v21, %v1989_v23 }
 0x86d   : > { %v1983_v29 = vsub.f32 1.5, %v1982_v27 }
 0x86e   : > { %v1999_v30 = vadd.f32 %v5125_v26, %v1994_v28 }
 0x86f   : > { %v1984_v32 = vmul.f32 %v5194_v16, %v1983_v29 }
 0x870   : > { %4869 = vmatmul.msk.f32.vlgmr.msrb.gmra.mxu3 %vm1168_vm0, %v1999_v30 }
 0x871   : > { %v1988_v34 = vsel %vm1987_vm15, %v5194_v16, %v1984_v32 }
 0x872   : > { %v1990_v35 = vmul.f32 %v1988_v34, %v1966_v33 }
 0x874   : > { %v1995_v36 = vmul.f32 %v5124_v21, %v1990_v35  ;;  %v4886_v21 = vld [vmem:[%s5396_s14 + $0x68] sm:$0xff] }
 0x876   : > { %v2000_v37 = vadd.f32 %v5125_v26, %v1995_v36 }
 0x878   : > { %4870 = vmatmul.msk.f32.gmra.mxu3 %vm1168_vm0, %v2000_v37 }
 0x8f3   : > { %v2032_v46 = vpop.f32.mrf.mxu3 }
 0x8f4   : > { %v2033_v31 = vadd.f32 %v5126_v45, %v2032_v46 }
 0x8f6   : > { %v2038_v47 = vmul.f32 %v2033_v31, %v2033_v31 }
 0x8f8   : > { %v2040_v48 = vmul.f32 %v2038_v47, %v2033_v31 }
 0x8fa   : > { %v2042_v49 = vmul.f32 0.044715, %v2040_v48  ;;  %v5128_v48 = vld [vmem:[%s6185_s11] ss:$0 sm:$0xff] }
 0x8fb   : > { %v2035_v51 = vpop.f32.mrf.mxu3 }
 0x8fc   : > { %v2044_v50 = vadd.f32 %v2042_v49, %v2033_v31  ;;  %v2036_v52 = vadd.f32 %v5126_v45, %v2035_v51 }
 0x8fe   : > { %v2046_v59 = vmul.f32 0.7978846, %v2044_v50  ;;  %v2039_v53 = vmul.f32 %v2036_v52, %v2036_v52 }
 0x900   : > { %5195 = vtanh.f32 %v2046_v59  ;;  %v2041_v54 = vmul.f32 %v2039_v53, %v2036_v52 }
 0x902   : > { %v2043_v55 = vmul.f32 0.044715, %v2041_v54 }
 0x904   : > { %v2045_v57 = vadd.f32 %v2043_v55, %v2036_v52 }
 0x906   : > { %v5196_v58 = vpop.eup %5195  ;;  %v2047_v62 = vmul.f32 0.7978846, %v2045_v57 }
 0x907   : > { %v2050_v61 = vadd.f32 1.0, %v5196_v58 }
 0x908   : > { %5197 = vtanh.f32 %v2047_v62 }
 0x909   : > { %v2052_v63 = vmul.f32 0.5, %v2050_v61 }
 0x90b   : > { %v2054_v56 = vmul.f32 %v2052_v63, %v2033_v31 }
 0x90d   : > { %4871 = vmatmul.msk.f32.vlgmr.msra.gmra.mxu2 %vm2068_vm1, %v2054_v56  ;;  %v4873_v56 = vld [vmem:[%s6180_s8 + $0x60] sm:$0xff] }
 0x90e   : > { %v5198_v0 = vpop.eup %5197 }
 0x90f   : > { %v2051_v1 = vadd.f32 1.0, %v5198_v0  ;;  %v4874_v0 = vld [vmem:[%s6180_s8 + $0x68] sm:$0xff] }
 0x911   : > { %v2053_v2 = vmul.f32 0.5, %v2051_v1  ;;  %v4875_v1 = vld [vmem:[%s6180_s8 + $0x70] sm:$0xff] }
 0x913   : > { %v2055_v3 = vmul.f32 %v2053_v2, %v2036_v52  ;;  %v5129_v52 = vld [vmem:[%s6186_s15] ss:$0 sm:$0xff]  ;;  %v4876_v2 = vld [vmem:[%s6180_s8 + $0x78] sm:$0xff] }
 0x915   : > { %4872 = vmatmul.msk.f32.gmra.mxu2 %vm2068_vm1, %v2055_v3  ;;  %v4877_v3 = vld [vmem:[%s6180_s8 + $0x80] sm:$0xff] }
 0x990   : > { %v2092_v5 = vpop.f32.mrf.mxu2 }
 0x991   : > { %v2093_v6 = vadd.f32 %v5127_v4, %v2092_v5  ;;  %v4879_v5 = vld [vmem:[%s6180_s8 + $0x90] sm:$0xff] }
 0x993   : > { %v5719_v7 = vadd.f32 %v2093_v6, %v1999_v30  ;;  %v4880_v6 = vld [vmem:[%s6180_s8 + $0x98] sm:$0xff] }
 0x995   : > { %v2102_v8 = vsel %vm1168_vm0, %v5719_v7, 0.0  ;;  %v2110_v15 = vmul.f32 %v5719_v7, %v5719_v7 }
 0x996   : > { %2103 = vadd.xlane.f32.xlu2 %v2102_v8 }
 0x997   : > { %v2112_v16 = vsel %vm1168_vm0, %v2110_v15, 0.0 }
 0x998   : > { %v2095_v9 = vpop.f32.mrf.mxu2 }
 0x999   : > { %v2096_v10 = vadd.f32 %v5127_v4, %v2095_v9  ;;  %v4878_v4 = vld [vmem:[%s6180_s8 + $0x88] sm:$0xff] }
 0x99b   : > { %v2099_v11 = vadd.f32 %v2096_v10, %v2000_v37 }
 0x99d   : > { %v2105_v12 = vsel %vm1168_vm0, %v2099_v11, 0.0  ;;  %v2111_v13 = vmul.f32 %v2099_v11, %v2099_v11 }
 0x99e   : > { %2106 = vadd.xlane.f32.xlu1 %v2105_v12 }
 0x99f   : > { %v2115_v14 = vsel %vm1168_vm0, %v2111_v13, 0.0 }
 0x9a0   : > { %2116 = vadd.xlane.f32.xlu0 %v2115_v14 }
 0x9a6   : > { %2113 = vadd.xlane.f32.xlu1 %v2112_v16 }
 0x9ae   : > { %2197 = vperm.xlu2 %5116, %v4885_v18  }
 0x9b4   : > { %2237 = vperm.xlu0 %5118, %v4893_v19  }
 0x9bf   : > { %2217 = vperm.xlu1 %5117, %v4889_v20   ;;  %v4882_v20 = vld [vmem:[%s6180_s8 + $0xa8] sm:$0xff] }
 0x9c7   : > { %2202 = vperm.xlu1 %5117, %v4886_v21  }
 0xa09   : > { %v2104_v25 = vpop.xlane.xlu2 %2103 }
 0xa0a   : > { %v2108_v29 = vmul.f32 %v2104_v25, %v5563_v17 }
 0xa0c   : > { %v2120_v34 = vmul.f32 %v2108_v29, %v2108_v29  ;;  %v2126_v55 = vsub.f32 %v5719_v7, %v2108_v29  ;;  %v4881_v7 = vld [vmem:[%s6180_s8 + $0xa0] sm:$0xff]  ;;  %v4890_v29 = vld [vmem:[%s5396_s14 + $0x88] sm:$0xff] }
 0xa11   : > { %v2107_v22 = vpop.xlane.xlu1 %2106  ;;  %v2198_v8 = vpop.permute.xlu2 %2197 }
 0xa12   : > { %v2109_v23 = vmul.f32 %v2107_v22, %v5563_v17 }
 0xa13   : > { %v2117_v26 = vpop.xlane.xlu0 %2116 }
 0xa14   : > { %v2121_v27 = vmul.f32 %v2109_v23, %v2109_v23  ;;  %v2119_v28 = vmul.f32 %v2117_v26, %v5563_v17  ;;  %v2127_v47 = vsub.f32 %v2099_v11, %v2109_v23 }
 0xa16   : > { %v2123_v30 = vsub.f32 %v2119_v28, %v2121_v27  ;;  %v4894_v28 = vld [vmem:[%s5396_s14 + $0xa8] sm:$0xff] }
 0xa18   : > { %v2125_v32 = vmax.f32 %v2123_v30, 0.0 }
 0xa19   : > { %v2114_v33 = vpop.xlane.xlu1 %2113 }
 0xa1a   : > { %v2129_v35 = vadd.f32 1e-12, %v2125_v32  ;;  %v2118_v36 = vmul.f32 %v2114_v33, %v5563_v17 }
 0xa1c   : > { %5199 = vrsqrt.f32 %v2129_v35  ;;  %v2122_v37 = vsub.f32 %v2118_v36, %v2120_v34  ;;  %vm2146_vm3 = vweird.f32 %v2129_v35 }
 0xa1e   : > { %v2124_v60 = vmax.f32 %v2122_v37, 0.0 }
 0xa20   : > { %v2128_v38 = vadd.f32 1e-12, %v2124_v60 }
 0xa22   : > { %v5200_v39 = vpop.eup %5199  ;;  %5201 = vrsqrt.f32 %v2128_v38  ;;  %vm2136_vm6 = vweird.f32 %v2128_v38 }
 0xa23   : > { %v2141_v40 = vmul.f32 %v5200_v39, %v2129_v35  ;;  %vm2147_vm2 = vweird.f32 %v5200_v39 }
 0xa24   : > { %vm2148_vm4 = vmor %vm2146_vm3, %vm2147_vm2 }
 0xa25   : > { %v2142_v41 = vmul.f32 %v5200_v39, %v2141_v40 }
 0xa27   : > { %v2143_v42 = vmul.f32 0.5, %v2142_v41 }
 0xa28   : > { %v5202_v43 = vpop.eup %5201 }
 0xa29   : > { %v2144_v44 = vsub.f32 1.5, %v2143_v42  ;;  %v2131_v45 = vmul.f32 %v5202_v43, %v2128_v38  ;;  %vm2137_vm5 = vweird.f32 %v5202_v43 }
 0xa2a   : > { %vm2138_vm7 = vmor %vm2136_vm6, %vm2137_vm5 }
 0xa2b   : > { %v2145_v46 = vmul.f32 %v5200_v39, %v2144_v44  ;;  %v2132_v31 = vmul.f32 %v5202_v43, %v2131_v45 }
 0xa2d   : > { %v2149_v49 = vsel %vm2148_vm4, %v5200_v39, %v2145_v46  ;;  %v2133_v50 = vmul.f32 0.5, %v2132_v31 }
 0xa2e   : > { %v2151_v51 = vmul.f32 %v2149_v49, %v2127_v47 }
 0xa2f   : > { %v2134_v59 = vsub.f32 1.5, %v2133_v50 }
 0xa30   : > { %v2156_v53 = vmul.f32 %v5128_v48, %v2151_v51 }
 0xa31   : > { %v2135_v54 = vmul.f32 %v5202_v43, %v2134_v59  ;;  %v2218_v14 = vpop.permute.xlu1 %2217  ;;  %v2238_v59 = vpop.permute.xlu0 %2237 }
 0xa32   : > { %v5739_v57 = vadd.f32 %v5129_v52, %v2156_v53 }
 0xa33   : > { %v2139_v58 = vsel %vm2138_vm7, %v5202_v43, %v2135_v54 }
 0xa34   : > { %4902 = vmatpush.xpose.msk.msrb.mxu1 %vm1168_vm0, %v5739_v57  ;;  %v2150_v61 = vmul.f32 %v2139_v58, %v2126_v55 }
 0xa36   : > { %v2155_v62 = vmul.f32 %v5128_v48, %v2150_v61 }
 0xa38   : > { %v5743_v63 = vadd.f32 %v5129_v52, %v2155_v62 }
 0xa39   : > { %v2203_v30 = vpop.permute.xlu1 %2202 }
 0xa3a   : > { %4903 = vmatpush.xpose.msk.msrb.mxu1 %vm1168_vm0, %v5743_v63 }
 0xa3d   : > { %4904 = vmatmul.msk.f32.vlgmr.msrb.gmra.mxu1 %vm1168_vm0, %v4873_v56 }
 0xa45   : > { %4905 = vmatmul.msk.f32.gmra.mxu1 %vm1168_vm0, %v4874_v0 }
 0xa4d   : > { %4906 = vmatmul.msk.f32.gmra.mxu1 %vm1168_vm0, %v4875_v1 }
 0xa55   : > { %4907 = vmatmul.msk.f32.gmra.mxu1 %vm1168_vm0, %v4876_v2 }
 0xa5d   : > { %4908 = vmatmul.msk.f32.gmra.mxu1 %vm1168_vm0, %v4877_v3  ;;  %v4883_v3 = vld [vmem:[%s6180_s8 + $0xb0] sm:$0xff] }
 0xa65   : > { %4909 = vmatmul.msk.f32.gmra.mxu1 %vm1168_vm0, %v4878_v4 }
 0xa6d   : > { %4910 = vmatmul.msk.f32.gmra.mxu1 %vm1168_vm0, %v4879_v5 }
 0xa75   : > { %4911 = vmatmul.msk.f32.gmra.mxu1 %vm1168_vm0, %v4880_v6 }
 0xa7d   : > { %4912 = vmatmul.msk.f32.gmra.mxu1 %vm1168_vm0, %v4881_v7 }
 0xa85   : > { %4913 = vmatmul.msk.f32.gmra.mxu1 %vm1168_vm0, %v4882_v20 }
 0xa8d   : > { %4914 = vmatmul.msk.f32.gmra.mxu1 %vm1168_vm0, %v4883_v3 }
 0xaba   : > { %v2314_v9 = vpop.f32.mrf.mxu1 }
 0xabb   : > { %v2315_v10 = vadd.f32 %v2314_v9, %v2198_v8 }
 0xabd   : > { %2350 = vxpose.xlu2.b32.start.end [1/1] (short) (narrow) %v2315_v10, 16 }
 0xac2   : > { %v2317_v11 = vpop.f32.mrf.mxu1 }
 0xac3   : > { %v2318_v41 = vadd.f32 %v2317_v11, %v2203_v30 }
 0xaca   : > { %v5765_v12 = vpop.f32.mrf.mxu1 }
 0xad2   : > { %v5767_v13 = vpop.f32.mrf.mxu1 }
 0xada   : > { %v2326_v15 = vpop.f32.mrf.mxu1 }
 0xadb   : > { %v2327_v16 = vadd.f32 %v2326_v15, %v2218_v14  ;;  %v4895_v15 = vld [vmem:[%s5396_s14 + $0xb0] sm:$0xff] }
 0xadd   : > { %2403 = vmatpush.msra.mxu3 %v2327_v16  ;;  %v4887_v16 = vld [vmem:[%s5396_s14 + $0x70] sm:$0xff] }
 0xae2   : > { %v2329_v42 = vpop.f32.mrf.mxu1 }
 0xaea   : > { %v5781_v44 = vpop.f32.mrf.mxu1 }
 0xaf2   : > { %v5783_v31 = vpop.f32.mrf.mxu1 }
 0xafa   : > { %v2338_v50 = vpop.f32.mrf.mxu1 }
 0xafb   : > { %v2339_v53 = vadd.f32 %v2338_v50, %v2238_v59  ;;  %v4892_v59 = vld [vmem:[%s5396_s14 + $0x98] sm:$0xff] }
 0xb56   : > { %v2366_v18 = vpop.trf.xlu2 }
 0xb57   : > { %4916 = vmatmul.msk.f32.vlgmr.msra.gmra.mxu3 %vm1455_vm8, %v2366_v18  ;;  %v4891_v18 = vld [vmem:[%s5396_s14 + $0x90] sm:$0xff] }
 0xb5e   : > { %v2367_v19 = vpop.trf.xlu2 }
 0xb5f   : > { %4917 = vmatmul.msk.f32.gmra.mxu3 %vm1455_vm8, %v2367_v19 }
 0xbda   : > { %v2405_v21 = vpop.f32.mrf.mxu3 }
 0xbdb   : > { %v2406_v22 = vadd.f32 %v5619_v24, %v2405_v21 }
 0xbdd   : > { %v2411_v23 = vsel %vm1485_vm9, %v2406_v22, -inf }
 0xbde   : > { %2412 = vmax.xlane.f32.xlu2 %v2411_v23 }
 0xbe2   : > { %v2408_v25 = vpop.f32.mrf.mxu3 }
 0xbe3   : > { %v2409_v26 = vadd.f32 %v5619_v24, %v2408_v25  ;;  %v2341_v25 = vpop.f32.mrf.mxu1 }
 0xbe5   : > { %v2414_v27 = vsel %vm1485_vm9, %v2409_v26, -inf }
 0xbe6   : > { %2415 = vmax.xlane.f32.xlu1 %v2414_v27 }
 0xbf6   : > { %2242 = vperm.xlu2 %5116, %v4894_v28  }
 0xbff   : > { %2222 = vperm.xlu1 %5117, %v4890_v29  }
 0xc51   : > { %v2413_v32 = vpop.xlane.xlu2 %2412 }
 0xc52   : > { %v2417_v33 = vsub.f32 %v2406_v22, %v2413_v32 }
 0xc54   : > { %v2419_v34 = vmul.f32 1.442695, %v2417_v33 }
 0xc56   : > { %5203 = vpow2.f32 %v2419_v34 }
 0xc59   : > { %v2416_v35 = vpop.xlane.xlu1 %2415 }
 0xc5a   : > { %v2418_v36 = vsub.f32 %v2409_v26, %v2416_v35  ;;  %v2243_v26 = vpop.permute.xlu2 %2242 }
 0xc5b   : > { %v2342_v28 = vadd.f32 %v2341_v25, %v2243_v26 }
 0xc5c   : > { %v5204_v37 = vpop.eup %5203  ;;  %v2421_v60 = vmul.f32 1.442695, %v2418_v36 }
 0xc5d   : > { %v2423_v38 = vsel %vm1485_vm9, %v5204_v37, 0.0 }
 0xc5e   : > { %5205 = vpow2.f32 %v2421_v60  ;;  %2424 = vadd.xlane.f32.xlu1 %v2423_v38  ;;  %v5295_v60 = vld [vmem:[%s5544_s17] ss:$0 sm:$0xff]  ;;  %s6191_s17 = sld [smem:[#allocation13_spill]] }
 0xc64   : > { %v5206_v39 = vpop.eup %5205 }
 0xc65   : > { %v2426_v40 = vsel %vm1485_vm9, %v5206_v39, 0.0 }
 0xc66   : > { %2427 = vadd.xlane.f32.xlu1 %v2426_v40 }
 0xc71   : > { %v2223_v43 = vpop.permute.xlu1 %2222 }
 0xc72   : > { %v2330_v52 = vadd.f32 %v2329_v42, %v2223_v43  ;;  %v4888_v42 = vld [vmem:[%s5396_s14 + $0x78] sm:$0xff] }
 0xca0   : > { %2462 = vxpose.xlu1.b32.start.end [1/1] (short) (narrow) %v2318_v41, 16 }
 0xcd1   : > { %v2425_v45 = vpop.xlane.xlu1 %2424 }
 0xcd9   : > { %v2428_v46 = vpop.xlane.xlu1 %2427 }
 0xcda   : > { %5207 = vrcp.f32 %v2428_v46 }
 0xcdb   : > { %5209 = vrcp.f32 %v2425_v45 }
 0xce0   : > { %v5208_v47 = vpop.eup %5207 }
 0xce1   : > { %v2432_v48 = vmul.f32 %v5208_v47, %v5206_v39  ;;  %v5210_v49 = vpop.eup %5209 }
 0xce2   : > { %v2431_v51 = vmul.f32 %v5210_v49, %v5204_v37 }
 0xce3   : > { %4918 = vmatpush.xpose.msk.msrb.mxu2 %vm1485_vm9, %v2432_v48 }
 0xce7   : > { %4919 = vmatpush.xpose.msk.msrb.mxu2 %vm1485_vm9, %v2431_v51 }
 0xcea   : > { %4920 = vmatmul.msk.f32.vlgmr.msrb.gmra.mxu2 %vm1485_vm9, %v2339_v53 }
 0xceb   : > { %2515 = vmatpush.msra.mxu2 %v2330_v52 }
 0xd44   : > { %v2478_v54 = vpop.trf.xlu1 }
 0xd45   : > { %4921 = vmatmul.msk.f32.vlgmr.msra.gmra.mxu2 %vm1455_vm8, %v2478_v54 }
 0xd4c   : > { %v2479_v55 = vpop.trf.xlu1 }
 0xd4d   : > { %4922 = vmatmul.msk.f32.gmra.mxu2 %vm1455_vm8, %v2479_v55 }
 0xd6d   : > { %v5790_v58 = vpop.f32.mrf.mxu2 }
 0xdc8   : > { %v2517_v61 = vpop.f32.mrf.mxu2 }
 0xdc9   : > { %v2518_v1 = vadd.f32 %v5619_v24, %v2517_v61 }
 0xdcb   : > { %v2523_v2 = vsel %vm1485_vm9, %v2518_v1, -inf }
 0xdd0   : > { %v2520_v62 = vpop.f32.mrf.mxu2 }
 0xdd1   : > { %v2521_v56 = vadd.f32 %v5619_v24, %v2520_v62 }
 0xdd3   : > { %v2526_v0 = vsel %vm1485_vm9, %v2521_v56, -inf }
 0xdd4   : > { %2527 = vmax.xlane.f32.xlu0 %v2526_v0  ;;  %v2344_v0 = vpop.f32.mrf.mxu1 }
 0xddc   : > { %2524 = vmax.xlane.f32.xlu0 %v2523_v2 }
 0xe47   : > { %v2528_v4 = vpop.xlane.xlu0 %2527 }
 0xe48   : > { %v2530_v5 = vsub.f32 %v2521_v56, %v2528_v4 }
 0xe4a   : > { %v2533_v6 = vmul.f32 1.442695, %v2530_v5 }
 0xe4c   : > { %5211 = vpow2.f32 %v2533_v6 }
 0xe4f   : > { %v2525_v7 = vpop.xlane.xlu0 %2524 }
 0xe50   : > { %v2529_v8 = vsub.f32 %v2518_v1, %v2525_v7 }
 0xe52   : > { %v5212_v9 = vpop.eup %5211  ;;  %v2531_v10 = vmul.f32 1.442695, %v2529_v8 }
 0xe53   : > { %v2538_v11 = vsel %vm1485_vm9, %v5212_v9, 0.0 }
 0xe54   : > { %5213 = vpow2.f32 %v2531_v10  ;;  %2539 = vadd.xlane.f32.xlu1 %v2538_v11 }
 0xe5a   : > { %v5214_v24 = vpop.eup %5213 }
 0xe5b   : > { %v2535_v14 = vsel %vm1485_vm9, %v5214_v24, 0.0 }
 0xe5c   : > { %2536 = vadd.xlane.f32.xlu0 %v2535_v14 }
 0xe6d   : > { %2247 = vperm.xlu1 %5117, %v4895_v15  }
 0xe70   : > { %2207 = vperm.xlu0 %5118, %v4887_v16  }
 0xe78   : > { %2227 = vperm.xlu0 %5118, %v4891_v18  }
 0xec7   : > { %v2540_v19 = vpop.xlane.xlu1 %2539 }
 0xec8   : > { %5215 = vrcp.f32 %v2540_v19 }
 0xece   : > { %v5216_v20 = vpop.eup %5215 }
 0xecf   : > { %v2544_v21 = vmul.f32 %v5216_v20, %v5212_v9  ;;  %v2537_v22 = vpop.xlane.xlu0 %2536 }
 0xed0   : > { %5217 = vrcp.f32 %v2537_v22 }
 0xed1   : > { %4923 = vmatpush.xpose.msk.msrb.mxu3 %vm1485_vm9, %v2544_v21 }
 0xed6   : > { %v5218_v23 = vpop.eup %5217 }
 0xed7   : > { %v2543_v27 = vmul.f32 %v5218_v23, %v5214_v24 }
 0xed9   : > { %4924 = vmatpush.xpose.msk.msrb.mxu3 %vm1485_vm9, %v2543_v27  ;;  %v4896_v27 = vld [vmem:[%s5396_s14 + $0xb8] sm:$0xff] }
 0xedc   : > { %4925 = vmatmul.msk.f32.vlgmr.msrb.gmra.mxu3 %vm1485_vm9, %v2342_v28 }
 0xedf   : > { %v2248_v1 = vpop.permute.xlu1 %2247 }
 0xee0   : > { %v2345_v3 = vadd.f32 %v2344_v0, %v2248_v1 }
 0xee2   : > { %v2208_v29 = vpop.permute.xlu0 %2207 }
 0xee3   : > { %v2321_v30 = vadd.f32 %v5765_v12, %v2208_v29 }
 0xee5   : > { %2574 = vxpose.xlu2.b32.start.end [1/1] (short) (narrow) %v2321_v30, 16 }
 0xeea   : > { %v2228_v32 = vpop.permute.xlu0 %2227 }
 0xeeb   : > { %v2333_v33 = vadd.f32 %v5781_v44, %v2228_v32 }
 0xeed   : > { %2627 = vmatpush.msra.mxu3 %v2333_v33 }
 0xf5f   : > { %v2571_v36 = vpop.f32.mrf.mxu3 }
 0xf7e   : > { %v2590_v34 = vpop.trf.xlu2 }
 0xf7f   : > { %4926 = vmatmul.msk.f32.vlgmr.msra.gmra.mxu3 %vm1455_vm8, %v2590_v34 }
 0xf86   : > { %v2591_v35 = vpop.trf.xlu2 }
 0xf87   : > { %4927 = vmatmul.msk.f32.gmra.mxu3 %vm1455_vm8, %v2591_v35 }
0x1002   : > { %v2629_v37 = vpop.f32.mrf.mxu3 }
0x1003   : > { %v2630_v38 = vadd.f32 %v5295_v60, %v2629_v37 }
0x1005   : > { %v2635_v39 = vsel %vm1485_vm9, %v2630_v38, -inf }
0x1006   : > { %2636 = vmax.xlane.f32.xlu2 %v2635_v39  ;;  %v4898_v39 = vld [vmem:[%s5401_s19 + $0x28] sm:$0xff] }
0x100a   : > { %v2632_v12 = vpop.f32.mrf.mxu3 }
0x100b   : > { %v2633_v40 = vadd.f32 %v5295_v60, %v2632_v12  ;;  %v4897_v12 = vld [vmem:[%s5401_s19 + $0x20] sm:$0xff] }
0x100d   : > { %v2638_v41 = vsel %vm1485_vm9, %v2633_v40, -inf }
0x100e   : > { %2639 = vmax.xlane.f32.xlu0 %v2638_v41 }
0x1022   : > { %2212 = vperm.xlu0 %5118, %v4888_v42  }
0x102f   : > { %2801 = vxpose.xlu2.b32.start [1/4] (short) (narrow) %v5790_v58, 16 }
0x1037   : > { %2802 = vxpose.xlu2.b32.cont [2/4] (short) (narrow) %v2571_v36, 16 }
0x1079   : > { %v2637_v43 = vpop.xlane.xlu2 %2636 }
0x107a   : > { %v2641_v44 = vsub.f32 %v2630_v38, %v2637_v43  ;;  %v4899_v38 = vld [vmem:[%s5401_s19 + $0x30] sm:$0xff]  ;;  %v5130_v43 = vld [vmem:[%s5406_s24 + $0x1] ss:$0 sm:$0xff] }
0x107c   : > { %v2643_v45 = vmul.f32 1.442695, %v2641_v44 }
0x107e   : > { %5219 = vpow2.f32 %v2643_v45 }
0x1081   : > { %v2640_v46 = vpop.xlane.xlu0 %2639 }
0x1082   : > { %v2642_v47 = vsub.f32 %v2633_v40, %v2640_v46 }
0x1084   : > { %v5220_v48 = vpop.eup %5219  ;;  %v2645_v49 = vmul.f32 1.442695, %v2642_v47 }
0x1085   : > { %v2647_v50 = vsel %vm1485_vm9, %v5220_v48, 0.0 }
0x1086   : > { %5221 = vpow2.f32 %v2645_v49  ;;  %2648 = vadd.xlane.f32.xlu0 %v2647_v50 }
0x108c   : > { %v5222_v51 = vpop.eup %5221 }
0x108d   : > { %v2650_v52 = vsel %vm1485_vm9, %v5222_v51, 0.0 }
0x108e   : > { %2651 = vadd.xlane.f32.xlu0 %v2650_v52 }
0x1094   : > { %v2213_v53 = vpop.permute.xlu0 %2212 }
0x1095   : > { %v2324_v54 = vadd.f32 %v5767_v13, %v2213_v53 }
0x10a2   : > { %2232 = vperm.xlu0 %5118, %v4892_v59  }
0x10c4   : > { %2686 = vxpose.xlu0.b32.start.end [1/1] (short) (narrow) %v2324_v54, 16 }
0x10f9   : > { %v2649_v55 = vpop.xlane.xlu0 %2648 }
0x1101   : > { %v2652_v58 = vpop.xlane.xlu0 %2651 }
0x1102   : > { %5223 = vrcp.f32 %v2652_v58  ;;  %v4942_v58 = vld [vmem:[%s5421_s12 + $0x30] sm:$0xff] }
0x1103   : > { %5225 = vrcp.f32 %v2649_v55  ;;  %v4943_v55 = vld [vmem:[%s5421_s12 + $0x38] sm:$0xff] }
0x1104   : > { %2956 = vmatpush.msra.mxu0 %v4943_v55 }
0x1106   : > { %2957 = vmatpush.msra.mxu0 %v4942_v58 }
0x1108   : > { %v5224_v61 = vpop.eup %5223 }
0x1109   : > { %v2656_v62 = vmul.f32 %v5224_v61, %v5222_v51  ;;  %v5226_v56 = vpop.eup %5225  ;;  %v4941_v61 = vld [vmem:[%s5421_s12 + $0x28] sm:$0xff] }
0x110a   : > { %v2655_v2 = vmul.f32 %v5226_v56, %v5220_v48  ;;  %2958 = vmatpush.msra.mxu0 %v4941_v61 }
0x110b   : > { %4928 = vmatpush.xpose.msk.msrb.mxu2 %vm1485_vm9, %v2656_v62  ;;  %v4940_v62 = vld [vmem:[%s5421_s12 + $0x20] sm:$0xff] }
0x110c   : > { %2959 = vmatpush.msra.mxu0 %v4940_v62 }
0x110f   : > { %4929 = vmatpush.xpose.msk.msrb.mxu2 %vm1485_vm9, %v2655_v2 }
0x1112   : > { %4930 = vmatmul.msk.f32.vlgmr.msrb.gmra.mxu2 %vm1485_vm9, %v2345_v3 }
0x1114   : > { %v2233_v4 = vpop.permute.xlu0 %2232 }
0x1115   : > { %v2336_v13 = vadd.f32 %v5783_v31, %v2233_v4  ;;  %v4884_v31 = vld [vmem:[%s6180_s8 + $0xb8] sm:$0xff]  ;;  %s6201_s8 = sld [smem:[#allocation18_spill]] }
0x1116   : > { %4915 = vmatmul.msk.f32.gmra.mxu1 %vm1168_vm0, %v4884_v31 }
0x1117   : > { %2739 = vmatpush.msra.mxu2 %v2336_v13 }
0x1168   : > { %v2702_v5 = vpop.trf.xlu0 }
0x1169   : > { %4931 = vmatmul.msk.f32.vlgmr.msra.gmra.mxu2 %vm1455_vm8, %v2702_v5 }
0x1170   : > { %v2703_v6 = vpop.trf.xlu0 }
0x1171   : > { %4932 = vmatmul.msk.f32.gmra.mxu2 %vm1455_vm8, %v2703_v6 }
0x1193   : > { %v2347_v35 = vpop.f32.mrf.mxu1 }
0x1195   : > { %v2683_v7 = vpop.f32.mrf.mxu2 }
0x1196   : > { %2803 = vxpose.xlu2.b32.cont [3/4] (short) (narrow) %v2683_v7, 16 }
0x11ec   : > { %v2741_v8 = vpop.f32.mrf.mxu2 }
0x11ed   : > { %v2742_v9 = vadd.f32 %v5295_v60, %v2741_v8 }
0x11ef   : > { %v2747_v10 = vsel %vm1485_vm9, %v2742_v9, -inf }
0x11f0   : > { %2748 = vmax.xlane.f32.xlu0 %v2747_v10 }
0x11f4   : > { %v2744_v11 = vpop.f32.mrf.mxu2 }
0x11f5   : > { %v2745_v24 = vadd.f32 %v5295_v60, %v2744_v11  ;;  %v4900_v60 = vld [vmem:[%s5401_s19 + $0x38] sm:$0xff] }
0x11f7   : > { %v2750_v14 = vsel %vm1485_vm9, %v2745_v24, -inf }
0x11f8   : > { %2751 = vmax.xlane.f32.xlu1 %v2750_v14 }
0x1263   : > { %v2749_v15 = vpop.xlane.xlu0 %2748 }
0x1264   : > { %v2753_v16 = vsub.f32 %v2742_v9, %v2749_v15 }
0x1266   : > { %v2755_v18 = vmul.f32 1.442695, %v2753_v16 }
0x1268   : > { %5227 = vpow2.f32 %v2755_v18 }
0x126b   : > { %v2752_v19 = vpop.xlane.xlu1 %2751 }
0x126c   : > { %v2754_v20 = vsub.f32 %v2745_v24, %v2752_v19 }
0x126e   : > { %v5228_v21 = vpop.eup %5227  ;;  %v2757_v22 = vmul.f32 1.442695, %v2754_v20 }
0x126f   : > { %v2759_v23 = vsel %vm1485_vm9, %v5228_v21, 0.0 }
0x1270   : > { %5229 = vpow2.f32 %v2757_v22  ;;  %2760 = vadd.xlane.f32.xlu1 %v2759_v23  ;;  %v5131_v22 = vld [vmem:[%s5411_s30 + $0x1] ss:$0 sm:$0xff] }
0x1276   : > { %v5230_v25 = vpop.eup %5229 }
0x1277   : > { %v2762_v26 = vsel %vm1485_vm9, %v5230_v25, 0.0 }
0x1278   : > { %2763 = vadd.xlane.f32.xlu1 %v2762_v26 }
0x1291   : > { %2252 = vperm.xlu1 %5117, %v4896_v27   ;;  %v5132_v27 = vld [vmem:[%s6181_s6 + $0x1] ss:$0 sm:$0xff]  ;;  %s6200_s6 = sld [smem:[#allocation17_spill]] }
0x12e3   : > { %v2761_v28 = vpop.xlane.xlu1 %2760 }
0x12eb   : > { %v2764_v29 = vpop.xlane.xlu1 %2763 }
0x12ec   : > { %5231 = vrcp.f32 %v2764_v29 }
0x12ed   : > { %5233 = vrcp.f32 %v2761_v28 }
0x12f2   : > { %v5232_v30 = vpop.eup %5231 }
0x12f3   : > { %v2768_v32 = vmul.f32 %v5232_v30, %v5230_v25  ;;  %v5234_v33 = vpop.eup %5233 }
0x12f4   : > { %v2767_v34 = vmul.f32 %v5234_v33, %v5228_v21 }
0x12f5   : > { %4933 = vmatpush.xpose.msk.msrb.mxu3 %vm1485_vm9, %v2768_v32 }
0x12f9   : > { %4934 = vmatpush.xpose.msk.msrb.mxu3 %vm1485_vm9, %v2767_v34 }
0x12fd   : > { %2851 = vmatpush.msra.mxu3 %v4900_v60 }
0x12ff   : > { %2852 = vmatpush.msra.mxu3 %v4899_v38  ;;  %v4954_v38 = vld [vmem:[%s5431_s27 + $0x78] sm:$0xff] }
0x1300   : > { %3013 = vmatpush.msrb.mxu2 %v4954_v38 }
0x1301   : > { %2853 = vmatpush.msra.mxu3 %v4898_v39  ;;  %v4953_v39 = vld [vmem:[%s5431_s27 + $0x70] sm:$0xff] }
0x1302   : > { %3014 = vmatpush.msrb.mxu2 %v4953_v39 }
0x1303   : > { %v2253_v36 = vpop.permute.xlu1 %2252  ;;  %2854 = vmatpush.msra.mxu3 %v4897_v12  ;;  %v4952_v12 = vld [vmem:[%s5431_s27 + $0x68] sm:$0xff] }
0x1304   : > { %v2348_v37 = vadd.f32 %v2347_v35, %v2253_v36  ;;  %3015 = vmatpush.msrb.mxu2 %v4952_v12 }
0x1306   : > { %4935 = vmatmul.msk.f32.vlgmr.msrb.gmra.mxu3 %vm1485_vm9, %v2348_v37 }
0x1389   : > { %v2795_v40 = vpop.f32.mrf.mxu3 }
0x138a   : > { %2804 = vxpose.xlu2.b32.end [4/4] (short) (narrow) %v2795_v40, 16  ;;  %v4951_v40 = vld [vmem:[%s5431_s27 + $0x60] sm:$0xff] }
0x138b   : > { %3016 = vmatpush.msrb.mxu2 %v4951_v40 }
0x140b   : > { %v2817_v41 = vpop.trf.xlu2 }
0x140c   : > { %4936 = vmatmul.msk.f32.vlgmr.msra.gmra.mxu3 %vm1168_vm0, %v2817_v41  ;;  %v4950_v41 = vld [vmem:[%s5431_s27 + $0x58] sm:$0xff] }
0x140d   : > { %3017 = vmatpush.msrb.mxu2 %v4950_v41 }
0x1413   : > { %v2818_v42 = vpop.trf.xlu2 }
0x1414   : > { %4937 = vmatmul.msk.f32.gmra.mxu3 %vm1168_vm0, %v2818_v42  ;;  %v4949_v42 = vld [vmem:[%s5431_s27 + $0x50] sm:$0xff] }
0x1415   : > { %3018 = vmatpush.msrb.mxu2 %v4949_v42 }
0x148f   : > { %v2856_v44 = vpop.f32.mrf.mxu3 }
0x1490   : > { %v2857_v45 = vadd.f32 %v5130_v43, %v2856_v44  ;;  %v4947_v44 = vld [vmem:[%s5431_s27 + $0x40] sm:$0xff] }
0x1492   : > { %v2862_v46 = vadd.f32 %v2857_v45, %v5743_v63  ;;  %v5133_v45 = vld [vmem:[%s5426_s20 + $0x1] ss:$0 sm:$0xff] }
0x1494   : > { %v2868_v47 = vsel %vm1168_vm0, %v2862_v46, 0.0  ;;  %v2876_v50 = vmul.f32 %v2862_v46, %v2862_v46 }
0x1495   : > { %2869 = vadd.xlane.f32.xlu1 %v2868_v47 }
0x1496   : > { %v2878_v52 = vsel %vm1168_vm0, %v2876_v50, 0.0 }
0x1497   : > { %v2859_v48 = vpop.f32.mrf.mxu3 }
0x1498   : > { %v2860_v49 = vadd.f32 %v5130_v43, %v2859_v48  ;;  %v4948_v43 = vld [vmem:[%s5431_s27 + $0x48] sm:$0xff] }
0x1499   : > { %3019 = vmatpush.msrb.mxu2 %v4948_v43 }
0x149a   : > { %v5845_v51 = vadd.f32 %v2860_v49, %v5739_v57 }
0x149b   : > { %3020 = vmatpush.msrb.mxu2 %v4947_v44 }
0x149c   : > { %v2871_v59 = vsel %vm1168_vm0, %v5845_v51, 0.0  ;;  %v2877_v63 = vmul.f32 %v5845_v51, %v5845_v51 }
0x149d   : > { %2879 = vadd.xlane.f32.xlu1 %v2878_v52  ;;  %2872 = vadd.xlane.f32.xlu2 %v2871_v59 }
0x149e   : > { %v2881_v53 = vsel %vm1168_vm0, %v2877_v63, 0.0 }
0x14a5   : > { %2882 = vadd.xlane.f32.xlu1 %v2881_v53 }
0x1508   : > { %v2870_v54 = vpop.xlane.xlu1 %2869 }
0x1509   : > { %v2874_v57 = vmul.f32 %v2870_v54, %v5563_v17 }
0x150b   : > { %v2886_v0 = vmul.f32 %v2874_v57, %v2874_v57  ;;  %v2892_v21 = vsub.f32 %v2862_v46, %v2874_v57 }
0x1510   : > { %v2880_v56 = vpop.xlane.xlu1 %2879  ;;  %v2873_v2 = vpop.xlane.xlu2 %2872 }
0x1511   : > { %v2884_v1 = vmul.f32 %v2880_v56, %v5563_v17  ;;  %v2875_v13 = vmul.f32 %v2873_v2, %v5563_v17 }
0x1513   : > { %v2888_v3 = vsub.f32 %v2884_v1, %v2886_v0  ;;  %v2887_v7 = vmul.f32 %v2875_v13, %v2875_v13  ;;  %v2893_v34 = vsub.f32 %v5845_v51, %v2875_v13  ;;  %v5134_v13 = vld [vmem:[%s6184_s10 + $0x1] ss:$0 sm:$0xff] }
0x1515   : > { %v2890_v4 = vmax.f32 %v2888_v3, 0.0 }
0x1517   : > { %v2894_v5 = vadd.f32 1e-12, %v2890_v4 }
0x1518   : > { %v2883_v6 = vpop.xlane.xlu1 %2882 }
0x1519   : > { %5235 = vrsqrt.f32 %v2894_v5  ;;  %v2885_v8 = vmul.f32 %v2883_v6, %v5563_v17  ;;  %vm2902_vm11 = vweird.f32 %v2894_v5 }
0x151b   : > { %v2889_v9 = vsub.f32 %v2885_v8, %v2887_v7 }
0x151d   : > { %v2891_v10 = vmax.f32 %v2889_v9, 0.0 }
0x151f   : > { %v5236_v11 = vpop.eup %5235  ;;  %v2895_v24 = vadd.f32 1e-12, %v2891_v10 }
0x1520   : > { %v2897_v14 = vmul.f32 %v5236_v11, %v2894_v5  ;;  %vm2903_vm10 = vweird.f32 %v5236_v11 }
0x1521   : > { %5237 = vrsqrt.f32 %v2895_v24  ;;  %vm2904_vm12 = vmor %vm2902_vm11, %vm2903_vm10  ;;  %vm2912_vm14 = vweird.f32 %v2895_v24  ;;  %vm3378_vm10 = vcmask 31744   ;;  %vm3742_vm11 = vcmask 257024  }
0x1522   : > { %v2898_v31 = vmul.f32 %v5236_v11, %v2897_v14 }
0x1524   : > { %v2899_v15 = vmul.f32 0.5, %v2898_v31 }
0x1526   : > { %v2900_v16 = vsub.f32 1.5, %v2899_v15 }
0x1527   : > { %v5238_v18 = vpop.eup %5237 }
0x1528   : > { %v2901_v19 = vmul.f32 %v5236_v11, %v2900_v16  ;;  %v2907_v20 = vmul.f32 %v5238_v18, %v2895_v24  ;;  %vm2913_vm13 = vweird.f32 %v5238_v18 }
0x1529   : > { %vm2914_vm15 = vmor %vm2912_vm14, %vm2913_vm13 }
0x152a   : > { %v2905_v23 = vsel %vm2904_vm12, %v5236_v11, %v2901_v19  ;;  %v2908_v25 = vmul.f32 %v5238_v18, %v2907_v20  ;;  %v3143_v19 = vld [vmem:[%s6187_s16 + $0x20] sm:$0xff] }
0x152b   : > { %v2916_v26 = vmul.f32 %v2905_v23, %v2892_v21  ;;  %v1163_v20 = vld [vmem:[%s5899_s22] sm:$0xf]  ;;  %v3144_v21 = vld [vmem:[%s6187_s16 + $0x28] sm:$0xff]  ;;  %v3145_v23 = vld [vmem:[%s6187_s16 + $0x30] sm:$0xff] }
0x152c   : > { %v2909_v28 = vmul.f32 0.5, %v2908_v25  ;;  %v3141_v25 = vld [vmem:[%s6187_s16 + $0x10] sm:$0xff] }
0x152d   : > { %v2921_v29 = vmul.f32 %v5131_v22, %v2916_v26  ;;  %v3142_v26 = vld [vmem:[%s6187_s16 + $0x18] sm:$0xff] }
0x152e   : > { %v2910_v30 = vsub.f32 1.5, %v2909_v28 }
0x152f   : > { %v2926_v32 = vadd.f32 %v5132_v27, %v2921_v29 }
0x1530   : > { %v2911_v33 = vmul.f32 %v5238_v18, %v2910_v30 }
0x1531   : > { %4945 = vmatmul.msk.f32.vlgmr.msra.gmra.mxu0 %vm1168_vm0, %v2926_v32 }
0x1532   : > { %v2915_v35 = vsel %vm2914_vm15, %v5238_v18, %v2911_v33  ;;  %v3139_v18 = vld [vmem:[%s6187_s16] sm:$0xff] }
0x1533   : > { %v2917_v36 = vmul.f32 %v2915_v35, %v2893_v34 }
0x1535   : > { %v2922_v37 = vmul.f32 %v5131_v22, %v2917_v36  ;;  %v3140_v22 = vld [vmem:[%s6187_s16 + $0x8] sm:$0xff] }
0x1537   : > { %v2927_v60 = vadd.f32 %v5132_v27, %v2922_v37  ;;  %v3146_v27 = vld [vmem:[%s6187_s16 + $0x38] sm:$0xff] }
0x1539   : > { %4946 = vmatmul.msk.f32.gmra.mxu0 %vm1168_vm0, %v2927_v60 }
0x15ae   : > { %v2961_v46 = vpop.f32.mrf.mxu0 }
0x15af   : > { %v2962_v47 = vadd.f32 %v5133_v45, %v2961_v46 }
0x15b1   : > { %v2967_v48 = vmul.f32 %v2962_v47, %v2962_v47 }
0x15b3   : > { %v2969_v49 = vmul.f32 %v2967_v48, %v2962_v47 }
0x15b5   : > { %v2971_v50 = vmul.f32 0.044715, %v2969_v49 }
0x15b6   : > { %v2964_v51 = vpop.f32.mrf.mxu0 }
0x15b7   : > { %v2973_v52 = vadd.f32 %v2971_v50, %v2962_v47  ;;  %v2965_v59 = vadd.f32 %v5133_v45, %v2964_v51 }
0x15b9   : > { %v2975_v63 = vmul.f32 0.7978846, %v2973_v52  ;;  %v2968_v53 = vmul.f32 %v2965_v59, %v2965_v59 }
0x15bb   : > { %5239 = vtanh.f32 %v2975_v63  ;;  %v2970_v54 = vmul.f32 %v2968_v53, %v2965_v59 }
0x15bd   : > { %v2972_v55 = vmul.f32 0.044715, %v2970_v54 }
0x15bf   : > { %v2974_v58 = vadd.f32 %v2972_v55, %v2965_v59 }
0x15c1   : > { %v5240_v57 = vpop.eup %5239  ;;  %v2976_v61 = vmul.f32 0.7978846, %v2974_v58  ;;  %v5135_v58 = vld [vmem:[%s6185_s11 + $0x1] ss:$0 sm:$0xff] }
0x15c2   : > { %v2979_v62 = vadd.f32 1.0, %v5240_v57 }
0x15c3   : > { %5241 = vtanh.f32 %v2976_v61 }
0x15c4   : > { %v2981_v56 = vmul.f32 0.5, %v2979_v62 }
0x15c6   : > { %v2983_v0 = vmul.f32 %v2981_v56, %v2962_v47 }
0x15c8   : > { %4956 = vmatmul.msk.f32.vlgmr.msrb.gmra.mxu2 %vm2068_vm1, %v2983_v0  ;;  %v5136_v0 = vld [vmem:[%s6186_s15 + $0x1] ss:$0 sm:$0xff] }
0x15c9   : > { %v5242_v1 = vpop.eup %5241 }
0x15ca   : > { %v2980_v2 = vadd.f32 1.0, %v5242_v1 }
0x15cc   : > { %v2982_v3 = vmul.f32 0.5, %v2980_v2 }
0x15ce   : > { %v2984_v4 = vmul.f32 %v2982_v3, %v2965_v59 }
0x15d0   : > { %4957 = vmatmul.msk.f32.gmra.mxu2 %vm2068_vm1, %v2984_v4  ;;  %v3094_v4 = vld [vmem:[%s1152_s2] sm:$0xf]  ;;  %s6197_s2 = sld [smem:[#allocation23_spill]] }
0x164b   : > { %v3022_v5 = vpop.f32.mrf.mxu2 }
0x164c   : > { %v3023_v6 = vadd.f32 %v5134_v13, %v3022_v5 }
0x164e   : > { %v5878_v7 = vadd.f32 %v3023_v6, %v2926_v32 }
0x1650   : > { %v3034_v8 = vsel %vm1168_vm0, %v5878_v7, 0.0  ;;  %v3042_v11 = vmul.f32 %v5878_v7, %v5878_v7 }
0x1651   : > { %3035 = vadd.xlane.f32.xlu0 %v3034_v8 }
0x1652   : > { %v3044_v14 = vsel %vm1168_vm0, %v3042_v11, 0.0  ;;  %v3128_v11 = vld [vmem:[%s6191_s17 + $0x8] sm:$0xff] }
0x1653   : > { %v3025_v9 = vpop.f32.mrf.mxu2 }
0x1654   : > { %v3026_v10 = vadd.f32 %v5134_v13, %v3025_v9 }
0x1656   : > { %v5884_v24 = vadd.f32 %v3026_v10, %v2927_v60  ;;  %v3127_v10 = vld [vmem:[%s6191_s17] sm:$0xff] }
0x1658   : > { %v3037_v31 = vsel %vm1168_vm0, %v5884_v24, 0.0  ;;  %v3043_v15 = vmul.f32 %v5884_v24, %v5884_v24 }
0x1659   : > { %3045 = vadd.xlane.f32.xlu0 %v3044_v14  ;;  %3038 = vadd.xlane.f32.xlu1 %v3037_v31  ;;  %v3130_v14 = vld [vmem:[%s6191_s17 + $0x18] sm:$0xff]  ;;  %v3131_v31 = vld [vmem:[%s6191_s17 + $0x20] sm:$0xff] }
0x165a   : > { %v3047_v16 = vsel %vm1168_vm0, %v3043_v15, 0.0  ;;  %v3132_v15 = vld [vmem:[%s6191_s17 + $0x28] sm:$0xff] }
0x1661   : > { %3048 = vadd.xlane.f32.xlu1 %v3047_v16  ;;  %v3133_v16 = vld [vmem:[%s6191_s17 + $0x30] sm:$0xff] }
0x166d   : > { %3158 = vperm.xlu0 %5118, %v3139_v18   ;;  %v3134_v18 = vld [vmem:[%s6191_s17 + $0x38] sm:$0xff] }
0x1675   : > { %3178 = vperm.xlu0 %5118, %v3143_v19  }
0x167a   : > { %3120 = vperm.xlu1 %5117, %v1163_v20  }
0x167d   : > { %3183 = vperm.xlu0 %5118, %v3144_v21  }
0x1682   : > { %3163 = vperm.xlu1 %5117, %v3140_v22  }
0x1685   : > { %3188 = vperm.xlu0 %5118, %v3145_v23  }
0x168a   : > { %3168 = vperm.xlu1 %5117, %v3141_v25  }
0x1692   : > { %3173 = vperm.xlu1 %5117, %v3142_v26  }
0x169a   : > { %3193 = vperm.xlu1 %5117, %v3146_v27  }
0x16c4   : > { %v3036_v28 = vpop.xlane.xlu0 %3035 }
0x16c5   : > { %v3040_v29 = vmul.f32 %v3036_v28, %v5563_v17 }
0x16c7   : > { %v3052_v33 = vmul.f32 %v3040_v29, %v3040_v29  ;;  %v3058_v53 = vsub.f32 %v5878_v7, %v3040_v29  ;;  %v3125_v7 = vld [vmem:[%s6190_s0] sm:$0xf]  ;;  %s6196_s0 = sld [smem:[#allocation20_spill]] }
0x16cc   : > { %v3046_v30 = vpop.xlane.xlu0 %3045  ;;  %v3039_v32 = vpop.xlane.xlu1 %3038 }
0x16cd   : > { %v3050_v34 = vmul.f32 %v3046_v30, %v5563_v17  ;;  %v3041_v37 = vmul.f32 %v3039_v32, %v5563_v17 }
0x16cf   : > { %v3054_v35 = vsub.f32 %v3050_v34, %v3052_v33  ;;  %v3053_v39 = vmul.f32 %v3041_v37, %v3041_v37  ;;  %v3059_v55 = vsub.f32 %v5884_v24, %v3041_v37  ;;  %v3129_v24 = vld [vmem:[%s6191_s17 + $0x10] sm:$0xff] }
0x16d1   : > { %v3056_v36 = vmax.f32 %v3054_v35, 0.0 }
0x16d3   : > { %v3060_v60 = vadd.f32 1e-12, %v3056_v36 }
0x16d4   : > { %v3049_v38 = vpop.xlane.xlu1 %3048 }
0x16d5   : > { %5243 = vrsqrt.f32 %v3060_v60  ;;  %v3051_v12 = vmul.f32 %v3049_v38, %v5563_v17  ;;  %vm3068_vm3 = vweird.f32 %v3060_v60 }
0x16d7   : > { %v3055_v40 = vsub.f32 %v3051_v12, %v3053_v39 }
0x16d9   : > { %v3057_v41 = vmax.f32 %v3055_v40, 0.0 }
0x16db   : > { %v5244_v42 = vpop.eup %5243  ;;  %v3061_v43 = vadd.f32 1e-12, %v3057_v41 }
0x16dc   : > { %v3063_v44 = vmul.f32 %v5244_v42, %v3060_v60  ;;  %vm3069_vm2 = vweird.f32 %v5244_v42 }
0x16dd   : > { %5245 = vrsqrt.f32 %v3061_v43  ;;  %vm3070_vm4 = vmor %vm3068_vm3, %vm3069_vm2  ;;  %vm3078_vm6 = vweird.f32 %v3061_v43 }
0x16de   : > { %v3064_v45 = vmul.f32 %v5244_v42, %v3063_v44 }
0x16df   : > { %v3159_v19 = vpop.permute.xlu0 %3158 }
0x16e0   : > { %v3065_v46 = vmul.f32 0.5, %v3064_v45 }
0x16e2   : > { %v3066_v47 = vsub.f32 1.5, %v3065_v46 }
0x16e3   : > { %v5246_v48 = vpop.eup %5245 }
0x16e4   : > { %v3073_v49 = vmul.f32 %v5246_v48, %v3061_v43  ;;  %v3067_v50 = vmul.f32 %v5244_v42, %v3066_v47  ;;  %vm3079_vm5 = vweird.f32 %v5246_v48  ;;  %v3135_v47 = vld [vmem:[%s6191_s17 + $0x40] sm:$0xff] }
0x16e5   : > { %vm3080_vm7 = vmor %vm3078_vm6, %vm3079_vm5 }
0x16e6   : > { %v3074_v51 = vmul.f32 %v5246_v48, %v3073_v49  ;;  %v3071_v63 = vsel %vm3070_vm4, %v5244_v42, %v3067_v50  ;;  %v3137_v49 = vld [vmem:[%s6191_s17 + $0x50] sm:$0xff]  ;;  %v5953_v50 = vld [vmem:[%s1148_s7] ss:$0 sm:$0xff]  ;;  %s6193_s7 = sld [smem:[#allocation16_spill]] }
0x16e7   : > { %v3082_v57 = vmul.f32 %v3071_v63, %v3058_v53  ;;  %v3179_v33 = vpop.permute.xlu0 %3178 }
0x16e8   : > { %v3075_v52 = vmul.f32 0.5, %v3074_v51 }
0x16e9   : > { %v3087_v1 = vmul.f32 %v5135_v58, %v3082_v57 }
0x16ea   : > { %v3076_v59 = vsub.f32 1.5, %v3075_v52 }
0x16eb   : > { %v3092_v3 = vadd.f32 %v5136_v0, %v3087_v1  ;;  %v3148_v1 = vld [vmem:[%s6187_s16 + $0x48] sm:$0xff] }
0x16ec   : > { %v3077_v54 = vmul.f32 %v5246_v48, %v3076_v59  ;;  %v3121_v13 = vpop.permute.xlu1 %3120 }
0x16ee   : > { %v3081_v61 = vsel %vm3080_vm7, %v5246_v48, %v3077_v54  ;;  %v3136_v48 = vld [vmem:[%s6191_s17 + $0x48] sm:$0xff] }
0x16ef   : > { %v3083_v62 = vmul.f32 %v3081_v61, %v3059_v55  ;;  %v3184_v36 = vpop.permute.xlu0 %3183 }
0x16f1   : > { %v3088_v56 = vmul.f32 %v5135_v58, %v3083_v62 }
0x16f3   : > { %v3093_v2 = vadd.f32 %v5136_v0, %v3088_v56  ;;  %v3149_v0 = vld [vmem:[%s6187_s16 + $0x50] sm:$0xff] }
0x16f4   : > { %v3164_v22 = vpop.permute.xlu1 %3163 }
0x16f5   : > { %3112 = vmatpush.msrb.mxu3 %v3093_v2 }
0x16f7   : > { %3113 = vmatpush.msrb.mxu3 %v3092_v3  ;;  %v3189_v38 = vpop.permute.xlu0 %3188 }
0x16f8   : > { %4960 = vmatmul.msk.f32.vlgmr.msrb.gmra.mxu3 %vm1485_vm9, %v3094_v4  ;;  %vm3366_vm9 = vcmask 27648   ;;  %v3138_v4 = vld [vmem:[%s6191_s17 + $0x58] sm:$0xff] }
0x16fc   : > { %v3169_v26 = vpop.permute.xlu1 %3168 }
0x1704   : > { %v3174_v29 = vpop.permute.xlu1 %3173 }
0x170c   : > { %v3194_v12 = vpop.permute.xlu1 %3193 }
0x177b   : > { %v3115_v5 = vpop.f32.mrf.mxu3 }
0x177c   : > { %v3123_v6 = vmul.f32 %v3121_v13, %v3115_v5 }
0x177e   : > { %v3124_v8 = vmul.f32 %v3123_v6, %v3121_v13 }
0x1780   : > { %v5920_v9 = vadd.f32 %v3125_v7, %v3124_v8 }
0x1782   : > { %4961 = vmatpush.xpose.msk.msrb.mxu0 %vm1168_vm0, %v5920_v9 }
0x1785   : > { %4962 = vmatmul.msk.f32.vlgmr.msrb.gmra.mxu0 %vm1168_vm0, %v3127_v10 }
0x178d   : > { %4963 = vmatmul.msk.f32.gmra.mxu0 %vm1168_vm0, %v3128_v11 }
0x1795   : > { %4964 = vmatmul.msk.f32.gmra.mxu0 %vm1168_vm0, %v3129_v24 }
0x179d   : > { %4965 = vmatmul.msk.f32.gmra.mxu0 %vm1168_vm0, %v3130_v14 }
0x17a5   : > { %4966 = vmatmul.msk.f32.gmra.mxu0 %vm1168_vm0, %v3131_v31 }
0x17ad   : > { %4967 = vmatmul.msk.f32.gmra.mxu0 %vm1168_vm0, %v3132_v15 }
0x17b5   : > { %4968 = vmatmul.msk.f32.gmra.mxu0 %vm1168_vm0, %v3133_v16 }
0x17bd   : > { %4969 = vmatmul.msk.f32.gmra.mxu0 %vm1168_vm0, %v3134_v18 }
0x17c5   : > { %4970 = vmatmul.msk.f32.gmra.mxu0 %vm1168_vm0, %v3135_v47 }
0x17cd   : > { %4971 = vmatmul.msk.f32.gmra.mxu0 %vm1168_vm0, %v3136_v48 }
0x17d5   : > { %4972 = vmatmul.msk.f32.gmra.mxu0 %vm1168_vm0, %v3137_v49 }
0x17dd   : > { %4973 = vmatmul.msk.f32.gmra.mxu0 %vm1168_vm0, %v3138_v4  ;;  %v5004_v4 = vld [vmem:[%s6187_s16 + $0x68] sm:$0xff] }
0x1802   : > { %v3272_v20 = vpop.f32.mrf.mxu0 }
0x1803   : > { %v3273_v21 = vadd.f32 %v3272_v20, %v3159_v19  ;;  %v3147_v19 = vld [vmem:[%s6187_s16 + $0x40] sm:$0xff]  ;;  %v3150_v20 = vld [vmem:[%s6187_s16 + $0x58] sm:$0xff] }
0x1805   : > { %3311 = vxpose.xlu0.b32.start.end [1/1] (short) (narrow) %v3273_v21, 8 }
0x180a   : > { %v3275_v23 = vpop.f32.mrf.mxu0 }
0x180b   : > { %v3276_v25 = vadd.f32 %v3275_v23, %v3164_v22 }
0x180d   : > { %3405 = vxpose.xlu1.b32.start.end [1/1] (short) (narrow) %v3276_v25, 8 }
0x1812   : > { %v3278_v27 = vpop.f32.mrf.mxu0 }
0x1813   : > { %v3279_v28 = vadd.f32 %v3278_v27, %v3169_v26 }
0x1815   : > { %3497 = vxpose.xlu0.b32.start.end [1/1] (short) (narrow) %v3279_v28, 8 }
0x181a   : > { %v3281_v30 = vpop.f32.mrf.mxu0 }
0x181b   : > { %v3282_v32 = vadd.f32 %v3281_v30, %v3174_v29 }
0x181d   : > { %3589 = vxpose.xlu2.b32.start.end [1/1] (short) (narrow) %v3282_v32, 8 }
0x1822   : > { %v3284_v34 = vpop.f32.mrf.mxu0 }
0x1823   : > { %v3285_v35 = vadd.f32 %v3284_v34, %v3179_v33 }
0x1825   : > { %3361 = vmatpush.msra.mxu2 %v3285_v35 }
0x182a   : > { %v3287_v37 = vpop.f32.mrf.mxu0 }
0x182b   : > { %v3288_v60 = vadd.f32 %v3287_v37, %v3184_v36 }
0x182d   : > { %3455 = vmatpush.msrb.mxu2 %v3288_v60 }
0x1832   : > { %v3290_v39 = vpop.f32.mrf.mxu0 }
0x1833   : > { %v3291_v40 = vadd.f32 %v3290_v39, %v3189_v38 }
0x183a   : > { %v3293_v42 = vpop.f32.mrf.mxu0 }
0x183b   : > { %v3294_v43 = vadd.f32 %v3293_v42, %v3194_v12 }
0x1842   : > { %v3296_v33 = vpop.f32.mrf.mxu0 }
0x184a   : > { %v3299_v39 = vpop.f32.mrf.mxu0 }
0x18a9   : > { %v3327_v41 = vpop.trf.xlu0 }
0x18aa   : > { %4974 = vmatmul.msk.f32.vlgmr.msra.gmra.mxu2 %vm1455_vm8, %v3327_v41  ;;  %v3302_v41 = vpop.f32.mrf.mxu0 }
0x18ab   : > { %3547 = vmatpush.msra.mxu2 %v3291_v40 }
0x18b1   : > { %v3421_v44 = vpop.trf.xlu1 }
0x18b2   : > { %4977 = vmatmul.msk.f32.vlgmr.msrb.gmra.mxu2 %vm1455_vm8, %v3421_v44 }
0x18b3   : > { %3639 = vmatpush.msrb.mxu2 %v3294_v43 }
0x18b6   : > { %v3605_v46 = vpop.trf.xlu2 }
0x18b9   : > { %v3513_v45 = vpop.trf.xlu0 }
0x18ba   : > { %4980 = vmatmul.msk.f32.vlgmr.msra.gmra.mxu2 %vm1455_vm8, %v3513_v45 }
0x18c2   : > { %4983 = vmatmul.msk.f32.vlgmr.msrb.gmra.mxu2 %vm1455_vm8, %v3605_v46  ;;  %v3305_v46 = vpop.f32.mrf.mxu0 }
0x192d   : > { %v3363_v51 = vpop.f32.mrf.mxu2 }
0x192e   : > { %v3364_v52 = vadd.f32 %v5953_v50, %v3363_v51 }
0x1930   : > { %v3367_v59 = vsel %vm3366_vm9, %v3364_v52, -inf }
0x1931   : > { %3368 = vmax.xlane.f32.xlu0 %v3367_v59 }
0x1935   : > { %v3457_v63 = vpop.f32.mrf.mxu2 }
0x1936   : > { %v3458_v53 = vadd.f32 %v5953_v50, %v3457_v63  ;;  %v3154_v63 = vld [vmem:[%s6192_s1 + $0x18] sm:$0xff] }
0x1938   : > { %v3460_v54 = vsel %vm3366_vm9, %v3458_v53, -inf }
0x1939   : > { %3461 = vmax.xlane.f32.xlu1 %v3460_v54  ;;  %v3152_v54 = vld [vmem:[%s6192_s1 + $0x8] sm:$0xff] }
0x193d   : > { %v3549_v55 = vpop.f32.mrf.mxu2 }
0x193e   : > { %v3550_v58 = vadd.f32 %v5953_v50, %v3549_v55  ;;  %v3151_v55 = vld [vmem:[%s6192_s1] sm:$0xff] }
0x1940   : > { %v3552_v57 = vsel %vm3366_vm9, %v3550_v58, -inf }
0x1941   : > { %3553 = vmax.xlane.f32.xlu2 %v3552_v57 }
0x1945   : > { %v3641_v61 = vpop.f32.mrf.mxu2 }
0x1946   : > { %v3642_v62 = vadd.f32 %v5953_v50, %v3641_v61  ;;  %v5137_v61 = vld [vmem:[%s6193_s7] ss:$0 sm:$0xff] }
0x1948   : > { %v3644_v56 = vsel %vm3366_vm9, %v3642_v62, -inf }
0x1949   : > { %3645 = vmax.xlane.f32.xlu1 %v3644_v56 }
0x1959   : > { %3208 = vperm.xlu2 %5116, %v3149_v0  }
0x1962   : > { %3203 = vperm.xlu1 %5117, %v3148_v1  }
0x19a4   : > { %v3369_v2 = vpop.xlane.xlu0 %3368 }
0x19a5   : > { %v3370_v3 = vsub.f32 %v3364_v52, %v3369_v2 }
0x19a7   : > { %v3371_v13 = vmul.f32 1.442695, %v3370_v3 }
0x19a9   : > { %5247 = vpow2.f32 %v3371_v13  ;;  %v5008_v13 = vld [vmem:[%s6187_s16 + $0x88] sm:$0xff] }
0x19ac   : > { %v3462_v5 = vpop.xlane.xlu1 %3461 }
0x19ad   : > { %v3463_v6 = vsub.f32 %v3458_v53, %v3462_v5  ;;  %v3153_v53 = vld [vmem:[%s6192_s1 + $0x10] sm:$0xff] }
0x19ae   : > { %v5009_v5 = vld [vmem:[%s6187_s16 + $0x90] sm:$0xff] }
0x19af   : > { %v5248_v7 = vpop.eup %5247  ;;  %v3464_v8 = vmul.f32 1.442695, %v3463_v6  ;;  %v3779_v6 = vld [vmem:[%s6194_s18 + $0x18] sm:$0xff] }
0x19b0   : > { %v3373_v10 = vsel %vm3366_vm9, %v5248_v7, 0.0  ;;  %3799 = vmatpush.msra.mxu2 %v3779_v6 }
0x19b1   : > { %5249 = vpow2.f32 %v3464_v8  ;;  %3374 = vadd.xlane.f32.xlu0 %v3373_v10  ;;  %v3776_v10 = vld [vmem:[%s6194_s18] sm:$0xff] }
0x19b4   : > { %v3554_v11 = vpop.xlane.xlu2 %3553 }
0x19b5   : > { %v3555_v24 = vsub.f32 %v3550_v58, %v3554_v11 }
0x19b7   : > { %v5250_v14 = vpop.eup %5249  ;;  %v3556_v31 = vmul.f32 1.442695, %v3555_v24 }
0x19b8   : > { %v3466_v15 = vsel %vm3366_vm9, %v5250_v14, 0.0 }
0x19b9   : > { %5251 = vpow2.f32 %v3556_v31  ;;  %3467 = vadd.xlane.f32.xlu1 %v3466_v15 }
0x19bc   : > { %v3646_v21 = vpop.xlane.xlu1 %3645  ;;  %v3209_v42 = vpop.permute.xlu2 %3208 }
0x19bd   : > { %v3647_v22 = vsub.f32 %v3642_v62, %v3646_v21  ;;  %v3303_v43 = vadd.f32 %v3302_v41, %v3209_v42 }
0x19bf   : > { %v5252_v16 = vpop.eup %5251  ;;  %v3648_v23 = vmul.f32 1.442695, %v3647_v22 }
0x19c0   : > { %v3558_v18 = vsel %vm3366_vm9, %v5252_v16, 0.0 }
0x19c1   : > { %3559 = vadd.xlane.f32.xlu1 %v3558_v18  ;;  %5253 = vpow2.f32 %v3648_v23 }
0x19c5   : > { %3198 = vperm.xlu0 %5118, %v3147_v19  }
0x19c7   : > { %v5254_v25 = vpop.eup %5253 }
0x19c8   : > { %v3650_v26 = vsel %vm3366_vm9, %v5254_v25, 0.0 }
0x19d4   : > { %v3204_v27 = vpop.permute.xlu1 %3203 }
0x19d5   : > { %v3300_v40 = vadd.f32 %v3299_v39, %v3204_v27  ;;  %v5138_v27 = vld [vmem:[%s6195_s26] ss:$0 sm:$0xff]  ;;  %v3817_v39 = vld [vmem:[%s6197_s2 + $0x8] sm:$0xff] }
0x19da   : > { %3213 = vperm.xlu1 %5117, %v3150_v20  }
0x19ef   : > { %3651 = vadd.xlane.f32.xlu0 %v3650_v26 }
0x1a24   : > { %v3375_v28 = vpop.xlane.xlu0 %3374 }
0x1a25   : > { %5255 = vrcp.f32 %v3375_v28 }
0x1a2b   : > { %v5256_v29 = vpop.eup %5255 }
0x1a2c   : > { %v3377_v30 = vmul.f32 %v5256_v29, %v5248_v7  ;;  %v3468_v32 = vpop.xlane.xlu1 %3467  ;;  %v3777_v7 = vld [vmem:[%s6194_s18 + $0x8] sm:$0xff] }
0x1a2d   : > { %5257 = vrcp.f32 %v3468_v32 }
0x1a2e   : > { %4975 = vmatpush.xpose.msk.msra.mxu3 %vm3378_vm10, %v3377_v30  ;;  %v5139_v30 = vld [vmem:[%s6196_s0] ss:$0 sm:$0xff] }
0x1a33   : > { %v5258_v34 = vpop.eup %5257 }
0x1a34   : > { %v3470_v35 = vmul.f32 %v5258_v34, %v5250_v14  ;;  %v3560_v36 = vpop.xlane.xlu1 %3559  ;;  %v3823_v34 = vld [vmem:[%s6197_s2 + $0x38] sm:$0xff] }
0x1a35   : > { %5259 = vrcp.f32 %v3560_v36  ;;  %v3821_v36 = vld [vmem:[%s6197_s2 + $0x28] sm:$0xff] }
0x1a36   : > { %4978 = vmatpush.xpose.msk.msrb.mxu3 %vm3378_vm10, %v3470_v35  ;;  %v3822_v35 = vld [vmem:[%s6197_s2 + $0x30] sm:$0xff] }
0x1a37   : > { %v3199_v37 = vpop.permute.xlu0 %3198 }
0x1a38   : > { %v3297_v60 = vadd.f32 %v3296_v33, %v3199_v37  ;;  %v3820_v37 = vld [vmem:[%s6197_s2 + $0x20] sm:$0xff] }
0x1a3a   : > { %4976 = vmatmul.msk.f32.vlgmr.msra.gmra.mxu3 %vm3378_vm10, %v3297_v60  ;;  %v3819_v60 = vld [vmem:[%s6197_s2 + $0x18] sm:$0xff] }
0x1a3b   : > { %v5260_v38 = vpop.eup %5259 }
0x1a3c   : > { %v3562_v12 = vmul.f32 %v5260_v38, %v5252_v16  ;;  %v3818_v38 = vld [vmem:[%s6197_s2 + $0x10] sm:$0xff] }
0x1a3e   : > { %4981 = vmatpush.xpose.msk.msra.mxu3 %vm3378_vm10, %v3562_v12  ;;  %v3816_v12 = vld [vmem:[%s6197_s2] sm:$0xff] }
0x1a42   : > { %4979 = vmatmul.msk.f32.vlgmr.msrb.gmra.mxu3 %vm3378_vm10, %v3300_v40  ;;  %v5140_v40 = vld [vmem:[%s6198_s3] ss:$0 sm:$0xff] }
0x1a43   : > { %3731 = vmatpush.msrb.mxu3 %v3154_v63 }
0x1a45   : > { %3732 = vmatpush.msrb.mxu3 %v3153_v53 }
0x1a47   : > { %3733 = vmatpush.msrb.mxu3 %v3152_v54 }
0x1a49   : > { %3734 = vmatpush.msrb.mxu3 %v3151_v55 }
0x1a4a   : > { %4982 = vmatmul.msk.f32.vlgmr.msra.gmra.mxu3 %vm3378_vm10, %v3303_v43 }
0x1a4c   : > { %v3214_v47 = vpop.permute.xlu1 %3213 }
0x1a4d   : > { %v3306_v49 = vadd.f32 %v3305_v46, %v3214_v47 }
0x1a62   : > { %v3652_v44 = vpop.xlane.xlu0 %3651 }
0x1a63   : > { %5261 = vrcp.f32 %v3652_v44 }
0x1a69   : > { %v5262_v45 = vpop.eup %5261 }
0x1a6a   : > { %v3654_v48 = vmul.f32 %v5262_v45, %v5254_v25 }
0x1a6c   : > { %4984 = vmatpush.xpose.msk.msra.mxu1 %vm3378_vm10, %v3654_v48 }
0x1a6f   : > { %4985 = vmatmul.msk.f32.vlgmr.msra.gmra.mxu1 %vm3378_vm10, %v3306_v49 }
0x1a70   : > { %3839 = vmatpush.msrb.mxu1 %v3823_v34 }
0x1a72   : > { %3840 = vmatpush.msrb.mxu1 %v3822_v35 }
0x1a74   : > { %3841 = vmatpush.msrb.mxu1 %v3821_v36 }
0x1a76   : > { %3842 = vmatpush.msrb.mxu1 %v3820_v37 }
0x1a78   : > { %3843 = vmatpush.msrb.mxu1 %v3819_v60 }
0x1a7a   : > { %3844 = vmatpush.msrb.mxu1 %v3818_v38 }
0x1a7c   : > { %3845 = vmatpush.msrb.mxu1 %v3817_v39 }
0x1a7e   : > { %3846 = vmatpush.msrb.mxu1 %v3816_v12 }
0x1abd   : > { %v3402_v51 = vpop.f32.mrf.mxu3 }
0x1abe   : > { %3684 = vxpose.xlu1.b32.start [1/4] (short) (narrow) %v3402_v51, 8 }
0x1ac5   : > { %v3494_v52 = vpop.f32.mrf.mxu3 }
0x1ac6   : > { %3685 = vxpose.xlu1.b32.cont [2/4] (short) (narrow) %v3494_v52, 8 }
0x1acd   : > { %v3586_v59 = vpop.f32.mrf.mxu3 }
0x1ace   : > { %3686 = vxpose.xlu1.b32.cont [3/4] (short) (narrow) %v3586_v59, 8  ;;  %v5141_v59 = vld [vmem:[%s6199_s5] ss:$0 sm:$0xff] }
0x1aec   : > { %v3678_v58 = vpop.f32.mrf.mxu1 }
0x1aed   : > { %3687 = vxpose.xlu1.b32.end [4/4] (short) (narrow) %v3678_v58, 8 }
0x1b79   : > { %v3700_v57 = vpop.trf.xlu1 }
0x1b7a   : > { %4986 = vmatmul.msk.f32.vlgmr.msrb.gmra.mxu3 %vm1168_vm0, %v3700_v57 }
0x1bfd   : > { %v3736_v62 = vpop.f32.mrf.mxu3 }
0x1bfe   : > { %v3737_v56 = vadd.f32 %v5137_v61, %v3736_v62  ;;  %v5003_v61 = vld [vmem:[%s6187_s16 + $0x60] sm:$0xff] }
0x1bff   : > { %v5007_v62 = vld [vmem:[%s6187_s16 + $0x80] sm:$0xff] }
0x1c00   : > { %v5988_v0 = vadd.f32 %v3737_v56, %v5920_v9  ;;  %v3778_v9 = vld [vmem:[%s6194_s18 + $0x10] sm:$0xff] }
0x1c01   : > { %3800 = vmatpush.msra.mxu2 %v3778_v9  ;;  %v5005_v56 = vld [vmem:[%s6187_s16 + $0x70] sm:$0xff] }
0x1c02   : > { %v3743_v1 = vsel %vm3742_vm11, %v5988_v0, 0.0  ;;  %v3747_v2 = vmul.f32 %v5988_v0, %v5988_v0 }
0x1c03   : > { %3744 = vadd.xlane.f32.xlu2 %v3743_v1  ;;  %3801 = vmatpush.msra.mxu2 %v3777_v7  ;;  %v5006_v1 = vld [vmem:[%s6187_s16 + $0x78] sm:$0xff] }
0x1c04   : > { %v3748_v3 = vsel %vm3742_vm11, %v3747_v2, 0.0 }
0x1c05   : > { %3749 = vadd.xlane.f32.xlu0 %v3748_v3  ;;  %3802 = vmatpush.msra.mxu2 %v3776_v10 }
0x1c1b   : > { %3929 = vperm.xlu2 %5116, %v5004_v4  }
0x1c23   : > { %3949 = vperm.xlu2 %5116, %v5008_v13  }
0x1c2b   : > { %3954 = vperm.xlu2 %5116, %v5009_v5  }
0x1c76   : > { %v3745_v8 = vpop.xlane.xlu2 %3744 }
0x1c77   : > { %v3746_v11 = vmul.f32 %v3745_v8, %v5563_v17 }
0x1c78   : > { %v3750_v24 = vpop.xlane.xlu0 %3749 }
0x1c79   : > { %v3752_v14 = vmul.f32 %v3746_v11, %v3746_v11  ;;  %v3751_v31 = vmul.f32 %v3750_v24, %v5563_v17  ;;  %v3755_v26 = vsub.f32 %v5988_v0, %v3746_v11 }
0x1c7b   : > { %v3753_v15 = vsub.f32 %v3751_v31, %v3752_v14 }
0x1c7d   : > { %v3754_v16 = vmax.f32 %v3753_v15, 0.0 }
0x1c7e   : > { %v3930_v12 = vpop.permute.xlu2 %3929 }
0x1c7f   : > { %v3756_v18 = vadd.f32 1e-06, %v3754_v16  ;;  %v5142_v16 = vld [vmem:[%s6200_s6 + $0x1] ss:$0 sm:$0xff]  ;;  %s1160_s6 = scalar_lea.vmem %s5529_s21, %s5894_s23 }
0x1c81   : > { %5263 = vrsqrt.f32 %v3756_v18  ;;  %vm3763_vm13 = vweird.f32 %v3756_v18 }
0x1c87   : > { %v5264_v19 = vpop.eup %5263 }
0x1c88   : > { %v3758_v20 = vmul.f32 %v5264_v19, %v3756_v18  ;;  %vm3764_vm12 = vweird.f32 %v5264_v19 }
0x1c89   : > { %vm3765_vm14 = vmor %vm3763_vm13, %vm3764_vm12 }
0x1c8a   : > { %v3759_v21 = vmul.f32 %v5264_v19, %v3758_v20  ;;  %v5143_v20 = vld [vmem:[%s6201_s8 + $0x1] ss:$0 sm:$0xff]  ;;  %s6202_s8 = sld [smem:[#allocation25_spill]] }
0x1c8c   : > { %v3760_v22 = vmul.f32 0.5, %v3759_v21 }
0x1c8e   : > { %v3761_v23 = vsub.f32 1.5, %v3760_v22 }
0x1c90   : > { %v3762_v25 = vmul.f32 %v5264_v19, %v3761_v23  ;;  %v4991_v23 = vld [vmem:[%s6191_s17 + $0x60] sm:$0xff] }
0x1c92   : > { %v3766_v28 = vsel %vm3765_vm14, %v5264_v19, %v3762_v25  ;;  %v4994_v25 = vld [vmem:[%s6191_s17 + $0x78] sm:$0xff] }
0x1c93   : > { %v3767_v29 = vmul.f32 %v3766_v28, %v3755_v26  ;;  %v4992_v26 = vld [vmem:[%s6191_s17 + $0x68] sm:$0xff]  ;;  %v4993_v28 = vld [vmem:[%s6191_s17 + $0x70] sm:$0xff] }
0x1c95   : > { %v3771_v32 = vmul.f32 %v5138_v27, %v3767_v29  ;;  %v4995_v27 = vld [vmem:[%s6191_s17 + $0x80] sm:$0xff]  ;;  %v4996_v29 = vld [vmem:[%s6191_s17 + $0x88] sm:$0xff] }
0x1c97   : > { %v3775_v33 = vadd.f32 %v5139_v30, %v3771_v32  ;;  %v4997_v30 = vld [vmem:[%s6191_s17 + $0x90] sm:$0xff]  ;;  %v4998_v32 = vld [vmem:[%s6191_s17 + $0x98] sm:$0xff] }
0x1c99   : > { %4987 = vmatmul.msk.f32.vlgmr.msra.gmra.mxu2 %vm1168_vm0, %v3775_v33 }
0x1d1c   : > { %v3804_v41 = vpop.f32.mrf.mxu2 }
0x1d1d   : > { %v3805_v42 = vadd.f32 %v5140_v40, %v3804_v41 }
0x1d1f   : > { %v3807_v43 = vmul.f32 %v3805_v42, %v3805_v42 }
0x1d21   : > { %v3808_v44 = vmul.f32 %v3807_v43, %v3805_v42 }
0x1d23   : > { %v3809_v45 = vmul.f32 0.044715, %v3808_v44  ;;  %v3950_v44 = vpop.permute.xlu2 %3949 }
0x1d25   : > { %v3810_v46 = vadd.f32 %v3809_v45, %v3805_v42 }
0x1d27   : > { %v3811_v47 = vmul.f32 0.7978846, %v3810_v46 }
0x1d29   : > { %5265 = vtanh.f32 %v3811_v47 }
0x1d2f   : > { %v5266_v48 = vpop.eup %5265 }
0x1d30   : > { %v3813_v49 = vadd.f32 1.0, %v5266_v48 }
0x1d32   : > { %v3814_v51 = vmul.f32 0.5, %v3813_v49  ;;  %v3955_v49 = vpop.permute.xlu2 %3954 }
0x1d34   : > { %v3815_v52 = vmul.f32 %v3814_v51, %v3805_v42 }
0x1d36   : > { %4988 = vmatmul.msk.f32.vlgmr.msrb.gmra.mxu1 %vm2068_vm1, %v3815_v52 }
0x1db3   : > { %v3848_v63 = vpop.f32.mrf.mxu1 }
0x1db4   : > { %v3849_v53 = vadd.f32 %v5141_v59, %v3848_v63 }
0x1db6   : > { %v6020_v54 = vadd.f32 %v3849_v53, %v5988_v0  ;;  %v5010_v0 = vld [vmem:[%s6187_s16 + $0x98] sm:$0xff] }
0x1db8   : > { %v3856_v55 = vsel %vm3742_vm11, %v6020_v54, 0.0  ;;  %v3860_v58 = vmul.f32 %v6020_v54, %v6020_v54 }
0x1db9   : > { %3857 = vadd.xlane.f32.xlu0 %v3856_v55 }
0x1dba   : > { %v3861_v57 = vsel %vm3742_vm11, %v3860_v58, 0.0 }
0x1dc1   : > { %3862 = vadd.xlane.f32.xlu0 %v3861_v57 }
0x1dd5   : > { %3924 = vperm.xlu0 %5118, %v5003_v61  }
0x1ddd   : > { %3944 = vperm.xlu0 %5118, %v5007_v62   ;;  %v4999_v62 = vld [vmem:[%s6191_s17 + $0xa0] sm:$0xff] }
0x1de5   : > { %3934 = vperm.xlu0 %5118, %v5005_v56   ;;  %v5000_v56 = vld [vmem:[%s6191_s17 + $0xa8] sm:$0xff] }
0x1ded   : > { %3939 = vperm.xlu0 %5118, %v5006_v1   ;;  %v5001_v1 = vld [vmem:[%s6191_s17 + $0xb0] sm:$0xff] }
0x1df5   : > { %3959 = vperm.xlu0 %5118, %v5010_v0  }
0x1e2c   : > { %v3858_v2 = vpop.xlane.xlu0 %3857 }
0x1e2d   : > { %v3859_v3 = vmul.f32 %v3858_v2, %v5563_v17  ;;  %v5002_v2 = vld [vmem:[%s6191_s17 + $0xb8] sm:$0xff] }
0x1e2f   : > { %v3865_v13 = vmul.f32 %v3859_v3, %v3859_v3  ;;  %v3868_v15 = vsub.f32 %v6020_v54, %v3859_v3 }
0x1e34   : > { %v3863_v4 = vpop.xlane.xlu0 %3862 }
0x1e35   : > { %v3864_v5 = vmul.f32 %v3863_v4, %v5563_v17 }
0x1e37   : > { %v3866_v6 = vsub.f32 %v3864_v5, %v3865_v13 }
0x1e39   : > { %v3867_v9 = vmax.f32 %v3866_v6, 0.0 }
0x1e3b   : > { %v3869_v7 = vadd.f32 1e-06, %v3867_v9 }
0x1e3d   : > { %5267 = vrsqrt.f32 %v3869_v7  ;;  %vm3876_vm2 = vweird.f32 %v3869_v7 }
0x1e43   : > { %v5268_v8 = vpop.eup %5267 }
0x1e44   : > { %v3871_v10 = vmul.f32 %v5268_v8, %v3869_v7  ;;  %vm3877_vm15 = vweird.f32 %v5268_v8 }
0x1e45   : > { %vm3878_vm3 = vmor %vm3876_vm2, %vm3877_vm15 }
0x1e46   : > { %v3872_v11 = vmul.f32 %v5268_v8, %v3871_v10 }
0x1e47   : > { %v3925_v33 = vpop.permute.xlu0 %3924 }
0x1e48   : > { %v3873_v24 = vmul.f32 0.5, %v3872_v11 }
0x1e4a   : > { %v3874_v14 = vsub.f32 1.5, %v3873_v24 }
0x1e4c   : > { %v3875_v31 = vmul.f32 %v5268_v8, %v3874_v14  ;;  %v5012_v14 = vld [vmem:[%s6187_s16 + $0xa8] sm:$0xff] }
0x1e4e   : > { %v3879_v18 = vsel %vm3878_vm3, %v5268_v8, %v3875_v31  ;;  %v5014_v31 = vld [vmem:[%s6187_s16 + $0xb8] sm:$0xff] }
0x1e4f   : > { %v3880_v19 = vmul.f32 %v3879_v18, %v3868_v15  ;;  %v3945_v34 = vpop.permute.xlu0 %3944 }
0x1e51   : > { %v3884_v21 = vmul.f32 %v5142_v16, %v3880_v19 }
0x1e53   : > { %v3888_v22 = vadd.f32 %v5143_v20, %v3884_v21 }
0x1e55   : > { %5020 = vmatpush.xpose.msk.msrb.mxu2 %vm1168_vm0, %v3888_v22  ;;  %5068 = vmatpush.xpose.msk.msra.mxu3 %vm1168_vm0, %v3888_v22 }
0x1e57   : > { %v3935_v35 = vpop.permute.xlu0 %3934 }
0x1e58   : > { %5021 = vmatmul.msk.f32.vlgmr.msrb.gmra.mxu2 %vm1168_vm0, %v4991_v23  ;;  %5024 = vmatmul.msk.f32.vlgmr.msra.gmra.mxu3 %vm1168_vm0, %v4994_v25 }
0x1e5f   : > { %v3940_v36 = vpop.permute.xlu0 %3939 }
0x1e60   : > { %5022 = vmatmul.msk.f32.gmra.mxu2 %vm1168_vm0, %v4992_v26  ;;  %5025 = vmatmul.msk.f32.gmra.mxu3 %vm1168_vm0, %v4995_v27 }
0x1e67   : > { %v3960_v63 = vpop.permute.xlu0 %3959 }
0x1e68   : > { %5023 = vmatmul.msk.f32.gmra.mxu2 %vm1168_vm0, %v4993_v28  ;;  %5026 = vmatmul.msk.f32.gmra.mxu3 %vm1168_vm0, %v4996_v29 }
0x1e70   : > { %5027 = vmatmul.msk.f32.gmra.mxu3 %vm1168_vm0, %v4997_v30 }
0x1e78   : > { %5028 = vmatmul.msk.f32.gmra.mxu3 %vm1168_vm0, %v4998_v32  ;;  %v5011_v32 = vld [vmem:[%s6187_s16 + $0xa0] sm:$0xff] }
0x1e80   : > { %5029 = vmatmul.msk.f32.gmra.mxu3 %vm1168_vm0, %v4999_v62 }
0x1e88   : > { %5030 = vmatmul.msk.f32.gmra.mxu3 %vm1168_vm0, %v5000_v56 }
0x1e90   : > { %5031 = vmatmul.msk.f32.gmra.mxu3 %vm1168_vm0, %v5001_v1 }
0x1e98   : > { %5032 = vmatmul.msk.f32.gmra.mxu3 %vm1168_vm0, %v5002_v2 }
0x1edb   : > { %v4038_v37 = vpop.f32.mrf.mxu2  ;;  %v4047_v60 = vpop.f32.mrf.mxu3 }
0x1edc   : > { %v4039_v38 = vadd.f32 %v4038_v37, %v3925_v33  ;;  %v4048_v39 = vadd.f32 %v4047_v60, %v3940_v36  ;;  %v5013_v33 = vld [vmem:[%s6187_s16 + $0xb0] sm:$0xff] }
0x1ede   : > { %4074 = vxpose.xlu1.b32.start.end [1/1] (short) (narrow) %v4039_v38, 8  ;;  %4350 = vxpose.xlu0.b32.start.end [1/1] (short) (narrow) %v4048_v39, 8 }
0x1ee3   : > { %v4041_v40 = vpop.f32.mrf.mxu2  ;;  %v4050_v41 = vpop.f32.mrf.mxu3 }
0x1ee4   : > { %v4042_v42 = vadd.f32 %v4041_v40, %v3930_v12  ;;  %v4051_v43 = vadd.f32 %v4050_v41, %v3945_v34 }
0x1ee6   : > { %4124 = vmatpush.msra.mxu2 %v4051_v43  ;;  %4166 = vxpose.xlu2.b32.start.end [1/1] (short) (narrow) %v4042_v42, 8 }
0x1eeb   : > { %v4044_v45 = vpop.f32.mrf.mxu2  ;;  %v4053_v46 = vpop.f32.mrf.mxu3 }
0x1eec   : > { %v4045_v47 = vadd.f32 %v4044_v45, %v3935_v35  ;;  %v4054_v48 = vadd.f32 %v4053_v46, %v3950_v44 }
0x1eee   : > { %4258 = vxpose.xlu1.b32.start.end [1/1] (short) (narrow) %v4045_v47, 8  ;;  %4216 = vmatpush.msra.mxu1 %v4054_v48 }
0x1ef3   : > { %v4056_v51 = vpop.f32.mrf.mxu3 }
0x1ef4   : > { %v4057_v52 = vadd.f32 %v4056_v51, %v3955_v49 }
0x1ef6   : > { %4308 = vmatpush.msrb.mxu1 %v4057_v52 }
0x1efb   : > { %v4059_v59 = vpop.f32.mrf.mxu3 }
0x1efc   : > { %v4060_v53 = vadd.f32 %v4059_v59, %v3960_v63 }
0x1f03   : > { %v4062_v44 = vpop.f32.mrf.mxu3 }
0x1f0b   : > { %v4065_v49 = vpop.f32.mrf.mxu3 }
0x1f13   : > { %v4068_v63 = vpop.f32.mrf.mxu3 }
0x1f7f   : > { %v4182_v55 = vpop.trf.xlu2 }
0x1f80   : > { %5036 = vmatmul.msk.f32.vlgmr.msra.gmra.mxu1 %vm1455_vm8, %v4182_v55 }
0x1f81   : > { %4400 = vmatpush.msra.mxu1 %v4060_v53 }
0x1f82   : > { %v4090_v58 = vpop.trf.xlu1  ;;  %v4366_v61 = vpop.trf.xlu0 }
0x1f83   : > { %5033 = vmatmul.msk.f32.vlgmr.msra.gmra.mxu2 %vm1455_vm8, %v4090_v58 }
0x1f92   : > { %v4274_v57 = vpop.trf.xlu1 }
0x1f93   : > { %5039 = vmatmul.msk.f32.vlgmr.msrb.gmra.mxu1 %vm1455_vm8, %v4274_v57  ;;  %v4071_v57 = vpop.f32.mrf.mxu3 }
0x1f9b   : > { %5042 = vmatmul.msk.f32.vlgmr.msra.gmra.mxu1 %vm1455_vm8, %v4366_v61 }
0x1ffd   : > { %v4218_v0 = vpop.f32.mrf.mxu1 }
0x1ffe   : > { %v4219_v3 = vadd.f32 %v5953_v50, %v4218_v0 }
0x2000   : > { %v4221_v4 = vsel %vm3366_vm9, %v4219_v3, -inf }
0x2001   : > { %4222 = vmax.xlane.f32.xlu2 %v4221_v4  ;;  %v5017_v4 = vld [vmem:[%s6192_s1 + $0x30] sm:$0xff] }
0x2006   : > { %v4126_v13 = vpop.f32.mrf.mxu2 }
0x2007   : > { %v4127_v5 = vadd.f32 %v5953_v50, %v4126_v13  ;;  %v5016_v13 = vld [vmem:[%s6192_s1 + $0x28] sm:$0xff] }
0x2009   : > { %v4129_v6 = vsel %vm3366_vm9, %v4127_v5, -inf }
0x200a   : > { %4130 = vmax.xlane.f32.xlu1 %v4129_v6 }
0x2010   : > { %v4310_v9 = vpop.f32.mrf.mxu1 }
0x2011   : > { %v4311_v7 = vadd.f32 %v5953_v50, %v4310_v9 }
0x2013   : > { %v4313_v8 = vsel %vm3366_vm9, %v4311_v7, -inf }
0x2014   : > { %4314 = vmax.xlane.f32.xlu0 %v4313_v8 }
0x2018   : > { %v4402_v10 = vpop.f32.mrf.mxu1 }
0x2019   : > { %v4403_v11 = vadd.f32 %v5953_v50, %v4402_v10 }
0x201b   : > { %v4405_v24 = vsel %vm3366_vm9, %v4403_v11, -inf }
0x201c   : > { %4406 = vmax.xlane.f32.xlu1 %v4405_v24 }
0x2028   : > { %3969 = vperm.xlu0 %5118, %v5012_v14  }
0x2030   : > { %3979 = vperm.xlu0 %5118, %v5014_v31  }
0x2074   : > { %v4223_v15 = vpop.xlane.xlu2 %4222 }
0x2075   : > { %v4224_v19 = vsub.f32 %v4219_v3, %v4223_v15  ;;  %v5018_v3 = vld [vmem:[%s6192_s1 + $0x38] sm:$0xff] }
0x2076   : > { %4492 = vmatpush.msrb.mxu1 %v5018_v3  ;;  %v5051_v15 = vld [vmem:[%s6194_s18 + $0x38] sm:$0xff] }
0x2077   : > { %v4225_v21 = vmul.f32 1.442695, %v4224_v19  ;;  %v5049_v19 = vld [vmem:[%s6194_s18 + $0x28] sm:$0xff] }
0x2078   : > { %4493 = vmatpush.msrb.mxu1 %v5017_v4 }
0x207a   : > { %4494 = vmatpush.msrb.mxu1 %v5016_v13 }
0x207d   : > { %v4131_v16 = vpop.xlane.xlu1 %4130 }
0x207e   : > { %v4132_v18 = vsub.f32 %v4127_v5, %v4131_v16  ;;  %v5015_v5 = vld [vmem:[%s6192_s1 + $0x20] sm:$0xff]  ;;  %v5050_v16 = vld [vmem:[%s6194_s18 + $0x30] sm:$0xff] }
0x207f   : > { %4495 = vmatpush.msrb.mxu1 %v5015_v5 }
0x2080   : > { %v4133_v20 = vmul.f32 1.442695, %v4132_v18 }
0x2082   : > { %5269 = vpow2.f32 %v4133_v20 }
0x2083   : > { %5271 = vpow2.f32 %v4225_v21 }
0x2087   : > { %v4315_v22 = vpop.xlane.xlu0 %4314 }
0x2088   : > { %v5270_v23 = vpop.eup %5269  ;;  %v4316_v50 = vsub.f32 %v4311_v7, %v4315_v22  ;;  %v5144_v7 = vld [vmem:[%s6193_s7 + $0x1] ss:$0 sm:$0xff] }
0x2089   : > { %v4135_v25 = vsel %vm3366_vm9, %v5270_v23, 0.0  ;;  %v5272_v27 = vpop.eup %5271 }
0x208a   : > { %v4317_v26 = vmul.f32 1.442695, %v4316_v50  ;;  %4136 = vadd.xlane.f32.xlu1 %v4135_v25  ;;  %v4227_v28 = vsel %vm3366_vm9, %v5272_v27, 0.0 }
0x208c   : > { %5273 = vpow2.f32 %v4317_v26 }
0x208f   : > { %v4407_v34 = vpop.xlane.xlu1 %4406 }
0x2090   : > { %v4408_v35 = vsub.f32 %v4403_v11, %v4407_v34 }
0x2092   : > { %v5274_v29 = vpop.eup %5273  ;;  %4228 = vadd.xlane.f32.xlu1 %v4227_v28  ;;  %v4409_v36 = vmul.f32 1.442695, %v4408_v35  ;;  %v5145_v35 = vld [vmem:[%s6195_s26 + $0x1] ss:$0 sm:$0xff] }
0x2093   : > { %v4319_v30 = vsel %vm3366_vm9, %v5274_v29, 0.0 }
0x2094   : > { %4320 = vadd.xlane.f32.xlu2 %v4319_v30  ;;  %5275 = vpow2.f32 %v4409_v36 }
0x209a   : > { %v5276_v37 = vpop.eup %5275  ;;  %v3970_v51 = vpop.permute.xlu0 %3969 }
0x209b   : > { %v4411_v60 = vsel %vm3366_vm9, %v5276_v37, 0.0  ;;  %v4066_v52 = vadd.f32 %v4065_v49, %v3970_v51 }
0x20a2   : > { %v3980_v61 = vpop.permute.xlu0 %3979 }
0x20a3   : > { %v4072_v56 = vadd.f32 %v4071_v57, %v3980_v61 }
0x20ab   : > { %3964 = vperm.xlu1 %5117, %v5011_v32  }
0x20ac   : > { %3974 = vperm.xlu2 %5116, %v5013_v33  }
0x20d5   : > { %4412 = vadd.xlane.f32.xlu1 %v4411_v60 }
0x20fd   : > { %v4137_v38 = vpop.xlane.xlu1 %4136 }
0x20fe   : > { %5277 = vrcp.f32 %v4137_v38 }
0x2104   : > { %v5278_v39 = vpop.eup %5277 }
0x2105   : > { %v4139_v12 = vmul.f32 %v5278_v39, %v5270_v23  ;;  %v4229_v40 = vpop.xlane.xlu1 %4228 }
0x2106   : > { %5279 = vrcp.f32 %v4229_v40  ;;  %v5060_v40 = vld [vmem:[%s6197_s2 + $0x70] sm:$0xff] }
0x2107   : > { %5034 = vmatpush.xpose.msk.msrb.mxu2 %vm3378_vm10, %v4139_v12  ;;  %v4321_v43 = vpop.xlane.xlu2 %4320  ;;  %v5061_v12 = vld [vmem:[%s6197_s2 + $0x78] sm:$0xff] }
0x2108   : > { %5281 = vrcp.f32 %v4321_v43  ;;  %4605 = vmatpush.msra.mxu1 %v5061_v12  ;;  %v5057_v43 = vld [vmem:[%s6197_s2 + $0x58] sm:$0xff] }
0x210a   : > { %4606 = vmatpush.msra.mxu1 %v5060_v40 }
0x210c   : > { %v5280_v41 = vpop.eup %5279 }
0x210d   : > { %v4231_v42 = vmul.f32 %v5280_v41, %v5272_v27  ;;  %v5059_v41 = vld [vmem:[%s6197_s2 + $0x68] sm:$0xff] }
0x210e   : > { %v5282_v45 = vpop.eup %5281  ;;  %4607 = vmatpush.msra.mxu1 %v5059_v41 }
0x210f   : > { %5037 = vmatpush.xpose.msk.msra.mxu2 %vm3378_vm10, %v4231_v42  ;;  %v4323_v48 = vmul.f32 %v5282_v45, %v5274_v29  ;;  %v3975_v59 = vpop.permute.xlu2 %3974  ;;  %v5058_v42 = vld [vmem:[%s6197_s2 + $0x60] sm:$0xff]  ;;  %v5055_v45 = vld [vmem:[%s6197_s2 + $0x48] sm:$0xff] }
0x2110   : > { %v4069_v53 = vadd.f32 %v4068_v63, %v3975_v59  ;;  %4608 = vmatpush.msra.mxu1 %v5058_v42  ;;  %v5296_v42 = vld [vmem:[%s5899_s22] sm:$0xf] }
0x2112   : > { %4609 = vmatpush.msra.mxu1 %v5057_v43 }
0x211d   : > { %v3965_v46 = vpop.permute.xlu1 %3964 }
0x211e   : > { %v4063_v47 = vadd.f32 %v4062_v44, %v3965_v46  ;;  %v5056_v44 = vld [vmem:[%s6197_s2 + $0x50] sm:$0xff]  ;;  %v5054_v46 = vld [vmem:[%s6197_s2 + $0x40] sm:$0xff] }
0x211f   : > { %4610 = vmatpush.msra.mxu1 %v5056_v44 }
0x2120   : > { %5035 = vmatmul.msk.f32.vlgmr.msrb.gmra.mxu2 %vm3378_vm10, %v4063_v47  ;;  %v5147_v47 = vld [vmem:[%s6198_s3 + $0x1] ss:$0 sm:$0xff] }
0x2121   : > { %5040 = vmatpush.xpose.msk.msrb.mxu2 %vm3378_vm10, %v4323_v48  ;;  %4611 = vmatpush.msra.mxu1 %v5055_v45 }
0x2123   : > { %4612 = vmatpush.msra.mxu1 %v5054_v46 }
0x2128   : > { %5038 = vmatmul.msk.f32.vlgmr.msra.gmra.mxu2 %vm3378_vm10, %v4066_v52 }
0x2130   : > { %5041 = vmatmul.msk.f32.vlgmr.msrb.gmra.mxu2 %vm3378_vm10, %v4069_v53 }
0x2148   : > { %v4413_v55 = vpop.xlane.xlu1 %4412 }
0x2149   : > { %5283 = vrcp.f32 %v4413_v55 }
0x214f   : > { %v5284_v58 = vpop.eup %5283 }
0x2150   : > { %v4415_v62 = vmul.f32 %v5284_v58, %v5276_v37  ;;  %v5146_v37 = vld [vmem:[%s6196_s0 + $0x1] ss:$0 sm:$0xff] }
0x2152   : > { %5043 = vmatpush.xpose.msk.msra.mxu2 %vm3378_vm10, %v4415_v62  ;;  %v5148_v62 = vld [vmem:[%s6199_s5 + $0x1] ss:$0 sm:$0xff] }
0x2155   : > { %5044 = vmatmul.msk.f32.vlgmr.msra.gmra.mxu2 %vm3378_vm10, %v4072_v56 }
0x2156   : > { %4563 = vmatpush.msrb.mxu2 %v5051_v15 }
0x2158   : > { %4564 = vmatpush.msrb.mxu2 %v5050_v16 }
0x215a   : > { %4565 = vmatpush.msrb.mxu2 %v5049_v19 }
0x21a3   : > { %v4163_v1 = vpop.f32.mrf.mxu2 }
0x21a4   : > { %4445 = vxpose.xlu0.b32.start [1/4] (short) (narrow) %v4163_v1, 8 }
0x21ab   : > { %v4255_v0 = vpop.f32.mrf.mxu2 }
0x21ac   : > { %4446 = vxpose.xlu0.b32.cont [2/4] (short) (narrow) %v4255_v0, 8 }
0x21b3   : > { %v4347_v2 = vpop.f32.mrf.mxu2 }
0x21b4   : > { %4447 = vxpose.xlu0.b32.cont [3/4] (short) (narrow) %v4347_v2, 8 }
0x21d8   : > { %v4439_v6 = vpop.f32.mrf.mxu2 }
0x21d9   : > { %4448 = vxpose.xlu0.b32.end [4/4] (short) (narrow) %v4439_v6, 8 }
0x2265   : > { %v4461_v9 = vpop.trf.xlu0 }
0x2266   : > { %5045 = vmatmul.msk.f32.vlgmr.msrb.gmra.mxu1 %vm1168_vm0, %v4461_v9 }
0x22e3   : > { %v4497_v8 = vpop.f32.mrf.mxu1 }
0x22e4   : > { %v4498_v10 = vadd.f32 %v5144_v7, %v4497_v8 }
0x22e6   : > { %v6098_v11 = vadd.f32 %v4498_v10, %v6020_v54  ;;  %v5048_v54 = vld [vmem:[%s6194_s18 + $0x20] sm:$0xff] }
0x22e7   : > { %4566 = vmatpush.msrb.mxu2 %v5048_v54 }
0x22e8   : > { %v4505_v24 = vsel %vm3742_vm11, %v6098_v11, 0.0  ;;  %v4509_v14 = vmul.f32 %v6098_v11, %v6098_v11 }
0x22e9   : > { %4506 = vadd.xlane.f32.xlu2 %v4505_v24 }
0x22ea   : > { %v4510_v31 = vsel %vm3742_vm11, %v4509_v14, 0.0 }
0x22eb   : > { %4511 = vadd.xlane.f32.xlu1 %v4510_v31 }
0x235c   : > { %v4507_v18 = vpop.xlane.xlu2 %4506 }
0x235d   : > { %v4508_v20 = vmul.f32 %v4507_v18, %v5563_v17 }
0x235e   : > { %v4512_v21 = vpop.xlane.xlu1 %4511 }
0x235f   : > { %v4514_v22 = vmul.f32 %v4508_v20, %v4508_v20  ;;  %v4513_v23 = vmul.f32 %v4512_v21, %v5563_v17  ;;  %v4517_v34 = vsub.f32 %v6098_v11, %v4508_v20  ;;  %v5149_v20 = vld [vmem:[%s6202_s8] ss:$0 sm:$0xff] }
0x2361   : > { %v4515_v50 = vsub.f32 %v4513_v23, %v4514_v22  ;;  %v5151_v23 = vld [vmem:[%s5521_s25] ss:$0 sm:$0xff] }
0x2363   : > { %v4516_v25 = vmax.f32 %v4515_v50, 0.0 }
0x2365   : > { %v4518_v26 = vadd.f32 1e-06, %v4516_v25 }
0x2367   : > { %5285 = vrsqrt.f32 %v4518_v26  ;;  %vm4525_vm4 = vweird.f32 %v4518_v26 }
0x236d   : > { %v5286_v27 = vpop.eup %5285 }
0x236e   : > { %v4520_v28 = vmul.f32 %v5286_v27, %v4518_v26  ;;  %vm4526_vm8 = vweird.f32 %v5286_v27 }
0x236f   : > { %vm4527_vm5 = vmor %vm4525_vm4, %vm4526_vm8 }
0x2370   : > { %v4521_v29 = vmul.f32 %v5286_v27, %v4520_v28 }
0x2372   : > { %v4522_v30 = vmul.f32 0.5, %v4521_v29 }
0x2374   : > { %v4523_v32 = vsub.f32 1.5, %v4522_v30 }
0x2376   : > { %v4524_v33 = vmul.f32 %v5286_v27, %v4523_v32 }
0x2378   : > { %v4528_v36 = vsel %vm4527_vm5, %v5286_v27, %v4524_v33  ;;  %v5152_v27 = vld [vmem:[#allocation2] ss:$0 sm:$0xff] }
0x2379   : > { %v4529_v60 = vmul.f32 %v4528_v36, %v4517_v34 }
0x237b   : > { %v4533_v38 = vmul.f32 %v5145_v35, %v4529_v60 }
0x237d   : > { %v4537_v39 = vadd.f32 %v5146_v37, %v4533_v38 }
0x237f   : > { %5053 = vmatmul.msk.f32.vlgmr.msrb.gmra.mxu2 %vm1168_vm0, %v4537_v39 }
0x2402   : > { %v4568_v48 = vpop.f32.mrf.mxu2 }
0x2403   : > { %v4569_v49 = vadd.f32 %v5147_v47, %v4568_v48 }
0x2405   : > { %v4571_v51 = vmul.f32 %v4569_v49, %v4569_v49 }
0x2407   : > { %v4572_v52 = vmul.f32 %v4571_v51, %v4569_v49 }
0x2409   : > { %v4573_v59 = vmul.f32 0.044715, %v4572_v52 }
0x240b   : > { %v4574_v63 = vadd.f32 %v4573_v59, %v4569_v49 }
0x240d   : > { %v4575_v53 = vmul.f32 0.7978846, %v4574_v63 }
0x240f   : > { %5287 = vtanh.f32 %v4575_v53 }
0x2415   : > { %v5288_v55 = vpop.eup %5287 }
0x2416   : > { %v4577_v58 = vadd.f32 1.0, %v5288_v55 }
0x2418   : > { %v4578_v57 = vmul.f32 0.5, %v4577_v58 }
0x241a   : > { %v4579_v61 = vmul.f32 %v4578_v57, %v4569_v49 }
0x241c   : > { %5063 = vmatmul.msk.f32.vlgmr.msra.gmra.mxu1 %vm2068_vm1, %v4579_v61 }
0x2499   : > { %v4614_v56 = vpop.f32.mrf.mxu1 }
0x249a   : > { %v4615_v1 = vadd.f32 %v5148_v62, %v4614_v56 }
0x249c   : > { %v4617_v0 = vadd.f32 %v4615_v1, %v6098_v11 }
0x249e   : > { %v4620_v2 = vsel %vm3742_vm11, %v4617_v0, 0.0  ;;  %v4624_v3 = vmul.f32 %v4617_v0, %v4617_v0 }
0x249f   : > { %4621 = vadd.xlane.f32.xlu1 %v4620_v2 }
0x24a0   : > { %v4625_v4 = vsel %vm3742_vm11, %v4624_v3, 0.0 }
0x24a7   : > { %4626 = vadd.xlane.f32.xlu1 %v4625_v4 }
0x2512   : > { %v4622_v13 = vpop.xlane.xlu1 %4621 }
0x2513   : > { %v4623_v5 = vmul.f32 %v4622_v13, %v5563_v17 }
0x2515   : > { %v4629_v9 = vmul.f32 %v4623_v5, %v4623_v5  ;;  %v4632_v19 = vsub.f32 %v4617_v0, %v4623_v5 }
0x251a   : > { %v4627_v6 = vpop.xlane.xlu1 %4626 }
0x251b   : > { %v4628_v7 = vmul.f32 %v4627_v6, %v5563_v17  ;;  %v5150_v17 = vld [vmem:[%s5516_s4] ss:$0 sm:$0xff] }
0x251d   : > { %v4630_v8 = vsub.f32 %v4628_v7, %v4629_v9 }
0x251f   : > { %v4631_v10 = vmax.f32 %v4630_v8, 0.0 }
0x2521   : > { %v4633_v24 = vadd.f32 1e-06, %v4631_v10 }
0x2523   : > { %5289 = vrsqrt.f32 %v4633_v24  ;;  %vm4640_vm1 = vweird.f32 %v4633_v24 }
0x2529   : > { %v5290_v11 = vpop.eup %5289 }
0x252a   : > { %v4635_v14 = vmul.f32 %v5290_v11, %v4633_v24  ;;  %vm4641_vm0 = vweird.f32 %v5290_v11 }
0x252b   : > { %vm4642_vm6 = vmor %vm4640_vm1, %vm4641_vm0 }
0x252c   : > { %v4636_v31 = vmul.f32 %v5290_v11, %v4635_v14 }
0x252e   : > { %v4637_v15 = vmul.f32 0.5, %v4636_v31 }
0x2530   : > { %v4638_v16 = vsub.f32 1.5, %v4637_v15 }
0x2532   : > { %v4639_v18 = vmul.f32 %v5290_v11, %v4638_v16 }
0x2534   : > { %v4643_v54 = vsel %vm4642_vm6, %v5290_v11, %v4639_v18 }
0x2535   : > { %v4644_v21 = vmul.f32 %v4643_v54, %v4632_v19 }
0x2537   : > { %v4648_v22 = vmul.f32 %v5149_v20, %v4644_v21 }
0x2539   : > { %v4652_v50 = vadd.f32 %v5150_v17, %v4648_v22 }
0x253b   : > { %v4657_v25 = vmul.f32 %v5151_v23, %v4652_v50 }
0x253d   : > { %v4658_v26 = vsel %vm3742_vm11, %v4657_v25, 0.0 }
0x253e   : > { %4659 = vadd.xlane.f32.xlu1 %v4658_v26 }
0x25b1   : > { %v4660_v28 = vpop.xlane.xlu1 %4659 }
0x25b2   : > { %v4665_v29 = vadd.f32 %v5152_v27, %v4660_v28 }
0x25b4   : > { %v5064_v30 = vmul.f32 -1.442695, %v4665_v29 }
0x25b6   : > { %5291 = vpow2.f32 %v5064_v30 }
0x25bc   : > { %v5292_v32 = vpop.eup %5291 }
0x25bd   : > { %v4669_v33 = vadd.f32 1.0, %v5292_v32 }
0x25bf   : > { %5293 = vrcp.f32 %v4669_v33  ;;  %v4681_v37 = vand.u32 2147483648, %v4669_v33  ;;  %v4679_v38 = vand.u32 2147483647, %v4669_v33  ;;  %vm4675_vm9 = vweird.f32 %v4669_v33 }
0x25c1   : > { %v4682_v12 = vor.u32 1.1754944e-38, %v4681_v37  ;;  %vm4680_vm11 = vcmp.eq.f32.partialorder %v4679_v38, 8.507059e+37 }
0x25c5   : > { %v5294_v34 = vpop.eup %5293 }
0x25c6   : > { %v4671_v35 = vmul.f32 %v5294_v34, %v4669_v33  ;;  %vm4676_vm7 = vweird.f32 %v5294_v34 }
0x25c7   : > { %vm4677_vm10 = vmor %vm4675_vm9, %vm4676_vm7 }
0x25c8   : > { %v4672_v36 = vsub.f32 1.0, %v4671_v35 }
0x25ca   : > { %v4673_v60 = vmul.f32 %v5294_v34, %v4672_v36 }
0x25cc   : > { %v4674_v39 = vadd.f32 %v5294_v34, %v4673_v60 }
0x25ce   : > { %v4678_v40 = vsel %vm4677_vm10, %v5294_v34, %v4674_v39 }
0x25cf   : > { %v4683_v41 = vsel %vm4680_vm11, %v4682_v12, %v4678_v40 }
0x25d0   : > { %v4685_v43 = vmul.f32 %v5296_v42, %v4683_v41 }
0x25d2   : > { %4688 = vperm.xlu2 %5116, %v4685_v43  }
0x262c   : > { %v4689_v44 = vpop.permute.xlu2 %4688 }
0x262d   : > { %4691 = vst [vmem:[%s1160_s6] sm:$0xf] %v4689_v44 }
0x262e PF: > { %s85_s28 = sadd.s32 1, %s5303_s28  }
0x262f   : > { %p82_p4 = scmp.ge.s32.totalorder %s85_s28, 4  }
0x2631   :  { %84 = sbr.rel (!%p82_p4) target bundleno = 71 (0x47), region = 266 }

</bundles_post_ra>
